<compile_context>
chip_gen: v7x
topology: tpu7x:2x2x1
jax: 0.10.0
libtpu: 0.0.40
codegen_flags: <defaults>
</compile_context>

<pallas_src>
import jax
import jax.numpy as jnp
from jax.experimental import pallas as pl
from jax.experimental.pallas import tpu as pltpu

_LANE = 128


def _round_up(a, b):
    return -(-a // b) * b


def _divisors_desc(n):
    return [d for d in range(n, 0, -1) if n % d == 0]


def _vmem_capacity_bytes():
    """Physical VMEM per core (64 MiB on v7x, 128 MiB on v5e/v6e)."""
    try:
        cap = getattr(pltpu.get_tpu_info(), "vmem_capacity_bytes", None)
        if cap:
            return int(cap)
    except Exception:
        pass
    return 64 * 1024 * 1024          # conservative (v7x-sized) default


# ---------------------------------------------------------------------------
# Kernels (NHWC blocks: channels on the 128-wide lane axis, W on sublanes).
# ---------------------------------------------------------------------------
def _dwconv_img_kernel(x_ref, w_ref, b_ref, o_ref, slab_ref):
    """Whole-image depthwise conv: block = (TB, H, W, TC), no halos."""
    K = w_ref.shape[0]
    p = K // 2
    TB, H, W, TC = o_ref.shape
    Hp, Wp, _ = slab_ref.shape

    w = w_ref[...]                    # (K, K, TC) f32, loaded once per step
    bias = b_ref[0]                   # (TC,)      f32

    # Constant zero border of the 'same'-padding slab: written once per grid
    # step (tiny vs. the tile), reused across the TB sub-images below.
    slab_ref[0:p, :, :] = jnp.zeros((p, Wp, TC), jnp.float32)
    slab_ref[p + H:, :, :] = jnp.zeros((Hp - (p + H), Wp, TC), jnp.float32)
    slab_ref[:, 0:p, :] = jnp.zeros((Hp, p, TC), jnp.float32)
    slab_ref[:, p + W:, :] = jnp.zeros((Hp, Wp - (p + W), TC), jnp.float32)

    for ti in range(TB):              # static unroll over images in the block
        # Single f32 cast/copy of the tile into the zero-bordered slab.
        slab_ref[p:p + H, p:p + W, :] = x_ref[ti].astype(jnp.float32)
        acc = jnp.broadcast_to(bias, (H, W, TC))
        for kh in range(K):           # K*K shifted MACs, all in f32
            for kw in range(K):
                acc = acc + slab_ref[kh:kh + H, kw:kw + W, :] * w[kh, kw]
        o_ref[ti] = acc.astype(o_ref.dtype)


def _dwconv_1x1_kernel(x_ref, w_ref, b_ref, o_ref):
    """K == 1: per-channel scale + bias; no padding, no halos, no slab."""
    TB = o_ref.shape[0]
    w0 = w_ref[...][0, 0]             # (TC,) f32
    bias = b_ref[0]                   # (TC,) f32
    for ti in range(TB):
        o_ref[ti] = (x_ref[ti].astype(jnp.float32) * w0 + bias).astype(o_ref.dtype)


def _dwconv_rows_kernel(x_ref, top_ref, bot_ref, w_ref, b_ref, o_ref, slab_ref):
    """Row-tiled fallback (p-row halos) for images too large for one block."""
    K = w_ref.shape[0]
    p = K // 2
    _, TH, W, TC = o_ref.shape
    Hp, Wp, _ = slab_ref.shape

    i = pl.program_id(2)              # row-tile axis (innermost)
    n_h = pl.num_programs(2)

    w = w_ref[...]
    bias = b_ref[0]

    # Constant zero columns (left pad + right sublane-alignment pad).
    slab_ref[:, 0:p, :] = jnp.zeros((Hp, p, TC), jnp.float32)
    slab_ref[:, p + W:, :] = jnp.zeros((Hp, Wp - (p + W), TC), jnp.float32)

    # Row halos from the neighbouring tiles, zero-masked at the image borders.
    top = top_ref[0].astype(jnp.float32)
    slab_ref[0:p, p:p + W, :] = jnp.where(i > 0, top, jnp.zeros_like(top))
    bot = bot_ref[0].astype(jnp.float32)
    slab_ref[TH + p:, p:p + W, :] = jnp.where(i < n_h - 1, bot, jnp.zeros_like(bot))

    # Interior: single f32 cast/copy.
    slab_ref[p:p + TH, p:p + W, :] = x_ref[0].astype(jnp.float32)

    acc = jnp.broadcast_to(bias, (TH, W, TC))
    for kh in range(K):
        for kw in range(K):
            acc = acc + slab_ref[kh:kh + TH, kw:kw + W, :] * w[kh, kw]
    o_ref[0] = acc.astype(o_ref.dtype)


# ---------------------------------------------------------------------------
# Wrapper
# ---------------------------------------------------------------------------
def custom_dwconv(x, weight, bias, H, W, *, step_budget_bytes=None):
    """Pallas equivalent of CustomDWConv.forward.

    x: (B, N, C) with N == H*W;  weight: (C, 1, K, K);  bias: (C,).
    Returns (B, N, C).
    """
    B, N, C = x.shape
    assert N == H * W
    K = weight.shape[-1]
    assert weight.shape == (C, 1, K, K) and bias.shape == (C,)
    # TODO(synk): even kernel sizes need asymmetric 'same' padding; odd-only here.
    assert K % 2 == 1
    p = K // 2

    x_img = x.reshape(B, H, W, C)     # (B, N, C) -> NHWC, free reshape

    # Lane-dense channels: pad C up to a multiple of 128 once in HBM (sliced off
    # at the end) so every tile keeps full-lane vregs and unmasked stores.
    C_pad = _round_up(C, _LANE)
    if C_pad != C:
        x_img = jnp.pad(x_img, ((0, 0), (0, 0), (0, 0), (0, C_pad - C)))
    w_hwc = jnp.transpose(weight[:, 0, :, :], (1, 2, 0)).astype(jnp.float32)  # (K,K,C)
    b_row = bias.astype(jnp.float32)
    if C_pad != C:
        w_hwc = jnp.pad(w_hwc, ((0, 0), (0, 0), (0, C_pad - C)))
        b_row = jnp.pad(b_row, ((0, C_pad - C),))
    b_2d = b_row.reshape(1, C_pad)

    # --- generation-aware VMEM budgeting (v7x: 64 MiB, v5e/v6e: 128 MiB) ---
    itemsize = x.dtype.itemsize
    vmem_cap = _vmem_capacity_bytes()
    vmem_limit = int(min(vmem_cap * 3 // 4, vmem_cap - (8 << 20)))
    step_budget = step_budget_bytes if step_budget_bytes is not None else vmem_limit // 2

    Wp = _round_up(W + 2 * p, 8)      # sublane-aligned slab width

    def step_bytes(tb, th, tc):
        blk = tb * th * W * tc                     # one in / out block (elems)
        slab = (th + 2 * p) * Wp * tc              # f32 padded slab
        acc = th * W * tc                          # f32 accumulator
        return 4 * blk * itemsize + 4 * (slab + acc)   # 2x double-buffered in+out

    tc_cands = [t for t in range(C_pad, 0, -_LANE) if C_pad % t == 0]

    # Preferred path: whole-image blocks (no halos), batch folded into the block.
    TC = next((t for t in tc_cands if step_bytes(1, H, t) <= step_budget), None)
    use_whole = TC is not None or p == 0

    if use_whole:
        if TC is None:
            TC = _LANE
            # TODO(synk): a K==1 image too large for one block should also be row-tiled.
        TB = next((t for t in _divisors_desc(B)
                   if step_bytes(t, H, TC) <= step_budget), 1)
        # Keep >= 2 grid steps so both v7x TensorCores get work, when possible.
        if (B // TB) * (C_pad // TC) < 2:
            smaller_tc = [t for t in tc_cands if t < TC]
            smaller_tb = [t for t in _divisors_desc(B) if t < TB]
            if smaller_tc:
                TC = smaller_tc[0]
            elif smaller_tb:
                TB = smaller_tb[0]

        grid = (C_pad // TC, B // TB)  # channels outer, batch inner -> weights stay resident
        if K == 1:
            kernel, scratch = _dwconv_1x1_kernel, []
        else:
            kernel = _dwconv_img_kernel
            scratch = [pltpu.VMEM((H + 2 * p, Wp, TC), jnp.float32)]
        in_specs = [
            pl.BlockSpec((TB, H, W, TC), lambda c, b: (b, 0, 0, c)),
            pl.BlockSpec((K, K, TC), lambda c, b: (0, 0, c)),
            pl.BlockSpec((1, TC), lambda c, b: (0, c)),
        ]
        out_spec = pl.BlockSpec((TB, H, W, TC), lambda c, b: (b, 0, 0, c))
        operands = (x_img, w_hwc, b_2d)
        semantics = ("parallel", "parallel")
    else:
        # Row-tiled fallback with p-row halos (large feature maps, K > 1).
        TC = _LANE
        th_cands = [t for t in _divisors_desc(H) if t < H and t % p == 0]
        TH = next((t for t in th_cands if step_bytes(1, t, TC) <= step_budget),
                  th_cands[-1] if th_cands else H)
        nH = H // TH
        grid = (B, C_pad // TC, nH)    # rows innermost -> weights/bias stay resident
        kernel = _dwconv_rows_kernel
        scratch = [pltpu.VMEM((TH + 2 * p, Wp, TC), jnp.float32)]
        if nH > 1:
            tpb = TH // p              # halo blocks are p rows; index in p-row units

            def top_map(b, c, i):
                return (b, jnp.maximum(i * tpb - 1, 0), 0, c)

            def bot_map(b, c, i):
                return (b, jnp.minimum((i + 1) * tpb, H // p - 1), 0, c)
        else:
            def top_map(b, c, i):
                return (b, 0, 0, c)

            bot_map = top_map
        in_specs = [
            pl.BlockSpec((1, TH, W, TC), lambda b, c, i: (b, i, 0, c)),
            pl.BlockSpec((1, p, W, TC), top_map),
            pl.BlockSpec((1, p, W, TC), bot_map),
            pl.BlockSpec((K, K, TC), lambda b, c, i: (0, 0, c)),
            pl.BlockSpec((1, TC), lambda b, c, i: (0, c)),
        ]
        out_spec = pl.BlockSpec((1, TH, W, TC), lambda b, c, i: (b, i, 0, c))
        operands = (x_img, x_img, x_img, w_hwc, b_2d)
        semantics = ("parallel", "parallel", "parallel")

    out_nhwc = pl.pallas_call(
        kernel,
        out_shape=jax.ShapeDtypeStruct((B, H, W, C_pad), x.dtype),
        grid_spec=pltpu.PrefetchScalarGridSpec(
            num_scalar_prefetch=0,
            grid=grid,
            in_specs=in_specs,
            out_specs=out_spec,
            scratch_shapes=scratch,
        ),
        compiler_params=pltpu.CompilerParams(
            dimension_semantics=semantics,
            vmem_limit_bytes=vmem_limit,
        ),
    )(*operands)

    if C_pad != C:
        out_nhwc = out_nhwc[..., :C]
    # flatten(2).transpose(1, 2)  ==  (B, H*W, C) in row-major (H, W) order
    return out_nhwc.reshape(B, H * W, C)


# ---------------------------------------------------------------------------
# Reference + tests
# ---------------------------------------------------------------------------
def _reference_dwconv(x, weight, bias, H, W):
    """Pure-JAX reference (lax depthwise conv) for a sanity check."""
    B, N, C = x.shape
    x_nchw = jnp.transpose(x, (0, 2, 1)).reshape(B, C, H, W)
    y = jax.lax.conv_general_dilated(
        x_nchw, weight, window_strides=(1, 1), padding="SAME",
        dimension_numbers=("NCHW", "OIHW", "NCHW"), feature_group_count=C)
    y = y + bias.reshape(1, C, 1, 1)
    return jnp.transpose(y.reshape(B, C, H * W), (0, 2, 1))


def _make_inputs(key, B, C, H, W, K):
    kx, kw, kb = jax.random.split(key, 3)
    x = jax.random.normal(kx, (B, H * W, C), dtype=jnp.float32)
    fan_in = 1 * K * K     # kaiming_normal_(mode='fan_in', nonlinearity='relu')
    w_std = (2.0 / fan_in) ** 0.5
    weight = w_std * jax.random.normal(kw, (C, 1, K, K), dtype=jnp.float32)
    bound = 1.0 / (fan_in ** 0.5)   # Conv2d default bias init
    bias = jax.random.uniform(kb, (C,), jnp.float32, -bound, bound)
    return x, weight, bias


def _check(out, ref):
    assert out.shape == ref.shape
    assert jnp.allclose(out, ref, atol=1e-4, rtol=1e-4), \
        float(jnp.max(jnp.abs(out - ref)))


if __name__ == "__main__":
    key = jax.random.PRNGKey(0)
    k1, k2, k3 = jax.random.split(key, 3)

    # Whole-image path: C multiple of 128, batch folded, channel-tiled grid.
    B, C, H, W, K = 2, 256, 16, 16, 3
    x, w, b = _make_inputs(k1, B, C, H, W, K)
    out = jax.block_until_ready(custom_dwconv(x, w, b, H, W))
    _check(out, _reference_dwconv(x, w, b, H, W))

    # C not a multiple of 128 -> lane-padding path.
    B2, C2, H2, W2, K2 = 2, 32, 8, 8, 3
    x2, w2, b2 = _make_inputs(k2, B2, C2, H2, W2, K2)
    out2 = jax.block_until_ready(custom_dwconv(x2, w2, b2, H2, W2))
    _check(out2, _reference_dwconv(x2, w2, b2, H2, W2))

    # Row-tiled fallback (forced with a tiny budget), K=5 halos at tile seams.
    B3, C3, H3, W3, K3 = 2, 128, 16, 16, 5
    x3, w3, b3 = _make_inputs(k3, B3, C3, H3, W3, K3)
    out3 = jax.block_until_ready(
        custom_dwconv(x3, w3, b3, H3, W3, step_budget_bytes=1 << 16))
    _check(out3, _reference_dwconv(x3, w3, b3, H3, W3))

    print("KERNEL_OK")
</pallas_src>

<mosaic_0001>
module attributes {stable_mosaic.version = 11 : i64} {
  func.func @_dwconv_img_kernel(%arg0: i32, %arg1: i32, %arg2: memref<2x16x16x128xf32, #tpu.memory_space<vmem>>, %arg3: memref<3x3x128xf32, #tpu.memory_space<vmem>>, %arg4: memref<1x128xf32, #tpu.memory_space<vmem>>, %arg5: memref<2x16x16x128xf32, #tpu.memory_space<vmem>>, %arg6: memref<18x24x128xf32, #tpu.memory_space<vmem>>) attributes {dimension_semantics = [#tpu.dimension_semantics<parallel>, #tpu.dimension_semantics<parallel>], iteration_bounds = array<i64: 2, 1>, scalar_prefetch = 0 : i64, scratch_operands = 1 : i64, tpu.core_type = #tpu.core_type<tc>, window_params = [{transform_indices = @transform_0, window_bounds = array<i64: 2, 16, 16, 128>}, {transform_indices = @transform_1, window_bounds = array<i64: 3, 3, 128>}, {transform_indices = @transform_2, window_bounds = array<i64: 1, 128>}, {transform_indices = @transform_3, window_bounds = array<i64: 2, 16, 16, 128>}]} {
    %c0 = arith.constant 0 : index
    %c0_0 = arith.constant 0 : index
    %c0_1 = arith.constant 0 : index
    %0 = vector.load %arg3[%c0, %c0_0, %c0_1] : memref<3x3x128xf32, #tpu.memory_space<vmem>>, vector<3x3x128xf32>
    %c0_2 = arith.constant 0 : index
    %c0_3 = arith.constant 0 : index
    %1 = vector.load %arg4[%c0_2, %c0_3] : memref<1x128xf32, #tpu.memory_space<vmem>>, vector<1x128xf32>
    %2 = vector.shape_cast %1 : vector<1x128xf32> to vector<128xf32>
    %cst = arith.constant 0.000000e+00 : f32
    %3 = vector.broadcast %cst : f32 to vector<1x24x128xf32>
    %c0_4 = arith.constant 0 : index
    %c0_5 = arith.constant 0 : index
    %c0_6 = arith.constant 0 : index
    %4 = vector.load %arg6[%c0_4, %c0_5, %c0_6] : memref<18x24x128xf32, #tpu.memory_space<vmem>>, vector<1x24x128xf32>
    tpu.vector_store %arg6[%c0_4, %c0_5, %c0_6], %3 {strides = array<i32>} : memref<18x24x128xf32, #tpu.memory_space<vmem>>, vector<1x24x128xf32>,
    %cst_7 = arith.constant 0.000000e+00 : f32
    %5 = vector.broadcast %cst_7 : f32 to vector<1x24x128xf32>
    %c17 = arith.constant 17 : index
    %c0_8 = arith.constant 0 : index
    %c0_9 = arith.constant 0 : index
    %6 = vector.load %arg6[%c17, %c0_8, %c0_9] : memref<18x24x128xf32, #tpu.memory_space<vmem>>, vector<1x24x128xf32>
    tpu.vector_store %arg6[%c17, %c0_8, %c0_9], %5 {strides = array<i32>} : memref<18x24x128xf32, #tpu.memory_space<vmem>>, vector<1x24x128xf32>,
    %cst_10 = arith.constant 0.000000e+00 : f32
    %7 = vector.broadcast %cst_10 : f32 to vector<18x1x128xf32>
    %c0_11 = arith.constant 0 : index
    %c0_12 = arith.constant 0 : index
    %c0_13 = arith.constant 0 : index
    %8 = vector.load %arg6[%c0_11, %c0_12, %c0_13] : memref<18x24x128xf32, #tpu.memory_space<vmem>>, vector<18x1x128xf32>
    tpu.vector_store %arg6[%c0_11, %c0_12, %c0_13], %7 {strides = array<i32>} : memref<18x24x128xf32, #tpu.memory_space<vmem>>, vector<18x1x128xf32>,
    %cst_14 = arith.constant 0.000000e+00 : f32
    %9 = vector.broadcast %cst_14 : f32 to vector<18x7x128xf32>
    %c0_15 = arith.constant 0 : index
    %c17_16 = arith.constant 17 : index
    %c0_17 = arith.constant 0 : index
    %10 = vector.load %arg6[%c0_15, %c17_16, %c0_17] : memref<18x24x128xf32, #tpu.memory_space<vmem>>, vector<18x7x128xf32>
    tpu.vector_store %arg6[%c0_15, %c17_16, %c0_17], %9 {strides = array<i32>} : memref<18x24x128xf32, #tpu.memory_space<vmem>>, vector<18x7x128xf32>,
    %c0_18 = arith.constant 0 : index
    %c0_19 = arith.constant 0 : index
    %c0_20 = arith.constant 0 : index
    %c0_21 = arith.constant 0 : index
    %11 = vector.load %arg2[%c0_18, %c0_19, %c0_20, %c0_21] : memref<2x16x16x128xf32, #tpu.memory_space<vmem>>, vector<1x16x16x128xf32>
    %12 = vector.shape_cast %11 : vector<1x16x16x128xf32> to vector<16x16x128xf32>
    %c1 = arith.constant 1 : index
    %c1_22 = arith.constant 1 : index
    %c0_23 = arith.constant 0 : index
    %13 = vector.load %arg6[%c1, %c1_22, %c0_23] : memref<18x24x128xf32, #tpu.memory_space<vmem>>, vector<16x16x128xf32>
    tpu.vector_store %arg6[%c1, %c1_22, %c0_23], %12 {strides = array<i32>} : memref<18x24x128xf32, #tpu.memory_space<vmem>>, vector<16x16x128xf32>,
    %14 = vector.shape_cast %2 : vector<128xf32> to vector<1x1x128xf32>
    %15 = vector.broadcast %14 : vector<1x1x128xf32> to vector<16x16x128xf32>
    %c0_24 = arith.constant 0 : index
    %c0_25 = arith.constant 0 : index
    %c0_26 = arith.constant 0 : index
    %16 = vector.load %arg6[%c0_24, %c0_25, %c0_26] : memref<18x24x128xf32, #tpu.memory_space<vmem>>, vector<16x16x128xf32>
    %17 = vector.extract_strided_slice %0 {offsets = [0, 0, 0], sizes = [1, 1, 128], strides = [1, 1, 1]} : vector<3x3x128xf32> to vector<1x1x128xf32>
    %18 = vector.shape_cast %17 : vector<1x1x128xf32> to vector<128xf32>
    %19 = vector.shape_cast %18 : vector<128xf32> to vector<1x1x128xf32>
    %20 = vector.broadcast %19 : vector<1x1x128xf32> to vector<16x16x128xf32>
    %21 = arith.mulf %16, %20 : vector<16x16x128xf32>
    %22 = arith.addf %15, %21 : vector<16x16x128xf32>
    %c0_27 = arith.constant 0 : index
    %c1_28 = arith.constant 1 : index
    %c0_29 = arith.constant 0 : index
    %23 = vector.load %arg6[%c0_27, %c1_28, %c0_29] : memref<18x24x128xf32, #tpu.memory_space<vmem>>, vector<16x16x128xf32>
    %24 = vector.extract_strided_slice %0 {offsets = [0, 1, 0], sizes = [1, 1, 128], strides = [1, 1, 1]} : vector<3x3x128xf32> to vector<1x1x128xf32>
    %25 = vector.shape_cast %24 : vector<1x1x128xf32> to vector<128xf32>
    %26 = vector.shape_cast %25 : vector<128xf32> to vector<1x1x128xf32>
    %27 = vector.broadcast %26 : vector<1x1x128xf32> to vector<16x16x128xf32>
    %28 = arith.mulf %23, %27 : vector<16x16x128xf32>
    %29 = arith.addf %22, %28 : vector<16x16x128xf32>
    %c0_30 = arith.constant 0 : index
    %c2 = arith.constant 2 : index
    %c0_31 = arith.constant 0 : index
    %30 = vector.load %arg6[%c0_30, %c2, %c0_31] : memref<18x24x128xf32, #tpu.memory_space<vmem>>, vector<16x16x128xf32>
    %31 = vector.extract_strided_slice %0 {offsets = [0, 2, 0], sizes = [1, 1, 128], strides = [1, 1, 1]} : vector<3x3x128xf32> to vector<1x1x128xf32>
    %32 = vector.shape_cast %31 : vector<1x1x128xf32> to vector<128xf32>
    %33 = vector.shape_cast %32 : vector<128xf32> to vector<1x1x128xf32>
    %34 = vector.broadcast %33 : vector<1x1x128xf32> to vector<16x16x128xf32>
    %35 = arith.mulf %30, %34 : vector<16x16x128xf32>
    %36 = arith.addf %29, %35 : vector<16x16x128xf32>
    %c1_32 = arith.constant 1 : index
    %c0_33 = arith.constant 0 : index
    %c0_34 = arith.constant 0 : index
    %37 = vector.load %arg6[%c1_32, %c0_33, %c0_34] : memref<18x24x128xf32, #tpu.memory_space<vmem>>, vector<16x16x128xf32>
    %38 = vector.extract_strided_slice %0 {offsets = [1, 0, 0], sizes = [1, 1, 128], strides = [1, 1, 1]} : vector<3x3x128xf32> to vector<1x1x128xf32>
    %39 = vector.shape_cast %38 : vector<1x1x128xf32> to vector<128xf32>
    %40 = vector.shape_cast %39 : vector<128xf32> to vector<1x1x128xf32>
    %41 = vector.broadcast %40 : vector<1x1x128xf32> to vector<16x16x128xf32>
    %42 = arith.mulf %37, %41 : vector<16x16x128xf32>
    %43 = arith.addf %36, %42 : vector<16x16x128xf32>
    %c1_35 = arith.constant 1 : index
    %c1_36 = arith.constant 1 : index
    %c0_37 = arith.constant 0 : index
    %44 = vector.load %arg6[%c1_35, %c1_36, %c0_37] : memref<18x24x128xf32, #tpu.memory_space<vmem>>, vector<16x16x128xf32>
    %45 = vector.extract_strided_slice %0 {offsets = [1, 1, 0], sizes = [1, 1, 128], strides = [1, 1, 1]} : vector<3x3x128xf32> to vector<1x1x128xf32>
    %46 = vector.shape_cast %45 : vector<1x1x128xf32> to vector<128xf32>
    %47 = vector.shape_cast %46 : vector<128xf32> to vector<1x1x128xf32>
    %48 = vector.broadcast %47 : vector<1x1x128xf32> to vector<16x16x128xf32>
    %49 = arith.mulf %44, %48 : vector<16x16x128xf32>
    %50 = arith.addf %43, %49 : vector<16x16x128xf32>
    %c1_38 = arith.constant 1 : index
    %c2_39 = arith.constant 2 : index
    %c0_40 = arith.constant 0 : index
    %51 = vector.load %arg6[%c1_38, %c2_39, %c0_40] : memref<18x24x128xf32, #tpu.memory_space<vmem>>, vector<16x16x128xf32>
    %52 = vector.extract_strided_slice %0 {offsets = [1, 2, 0], sizes = [1, 1, 128], strides = [1, 1, 1]} : vector<3x3x128xf32> to vector<1x1x128xf32>
    %53 = vector.shape_cast %52 : vector<1x1x128xf32> to vector<128xf32>
    %54 = vector.shape_cast %53 : vector<128xf32> to vector<1x1x128xf32>
    %55 = vector.broadcast %54 : vector<1x1x128xf32> to vector<16x16x128xf32>
    %56 = arith.mulf %51, %55 : vector<16x16x128xf32>
    %57 = arith.addf %50, %56 : vector<16x16x128xf32>
    %c2_41 = arith.constant 2 : index
    %c0_42 = arith.constant 0 : index
    %c0_43 = arith.constant 0 : index
    %58 = vector.load %arg6[%c2_41, %c0_42, %c0_43] : memref<18x24x128xf32, #tpu.memory_space<vmem>>, vector<16x16x128xf32>
    %59 = vector.extract_strided_slice %0 {offsets = [2, 0, 0], sizes = [1, 1, 128], strides = [1, 1, 1]} : vector<3x3x128xf32> to vector<1x1x128xf32>
    %60 = vector.shape_cast %59 : vector<1x1x128xf32> to vector<128xf32>
    %61 = vector.shape_cast %60 : vector<128xf32> to vector<1x1x128xf32>
    %62 = vector.broadcast %61 : vector<1x1x128xf32> to vector<16x16x128xf32>
    %63 = arith.mulf %58, %62 : vector<16x16x128xf32>
    %64 = arith.addf %57, %63 : vector<16x16x128xf32>
    %c2_44 = arith.constant 2 : index
    %c1_45 = arith.constant 1 : index
    %c0_46 = arith.constant 0 : index
    %65 = vector.load %arg6[%c2_44, %c1_45, %c0_46] : memref<18x24x128xf32, #tpu.memory_space<vmem>>, vector<16x16x128xf32>
    %66 = vector.extract_strided_slice %0 {offsets = [2, 1, 0], sizes = [1, 1, 128], strides = [1, 1, 1]} : vector<3x3x128xf32> to vector<1x1x128xf32>
    %67 = vector.shape_cast %66 : vector<1x1x128xf32> to vector<128xf32>
    %68 = vector.shape_cast %67 : vector<128xf32> to vector<1x1x128xf32>
    %69 = vector.broadcast %68 : vector<1x1x128xf32> to vector<16x16x128xf32>
    %70 = arith.mulf %65, %69 : vector<16x16x128xf32>
    %71 = arith.addf %64, %70 : vector<16x16x128xf32>
    %c2_47 = arith.constant 2 : index
    %c2_48 = arith.constant 2 : index
    %c0_49 = arith.constant 0 : index
    %72 = vector.load %arg6[%c2_47, %c2_48, %c0_49] : memref<18x24x128xf32, #tpu.memory_space<vmem>>, vector<16x16x128xf32>
    %73 = vector.extract_strided_slice %0 {offsets = [2, 2, 0], sizes = [1, 1, 128], strides = [1, 1, 1]} : vector<3x3x128xf32> to vector<1x1x128xf32>
    %74 = vector.shape_cast %73 : vector<1x1x128xf32> to vector<128xf32>
    %75 = vector.shape_cast %74 : vector<128xf32> to vector<1x1x128xf32>
    %76 = vector.broadcast %75 : vector<1x1x128xf32> to vector<16x16x128xf32>
    %77 = arith.mulf %72, %76 : vector<16x16x128xf32>
    %78 = arith.addf %71, %77 : vector<16x16x128xf32>
    %c0_50 = arith.constant 0 : index
    %c0_51 = arith.constant 0 : index
    %c0_52 = arith.constant 0 : index
    %c0_53 = arith.constant 0 : index
    %79 = vector.load %arg5[%c0_50, %c0_51, %c0_52, %c0_53] : memref<2x16x16x128xf32, #tpu.memory_space<vmem>>, vector<1x16x16x128xf32>
    %80 = vector.shape_cast %79 : vector<1x16x16x128xf32> to vector<16x16x128xf32>
    %81 = vector.shape_cast %78 : vector<16x16x128xf32> to vector<1x16x16x128xf32>
    tpu.vector_store %arg5[%c0_50, %c0_51, %c0_52, %c0_53], %81 {strides = array<i32>} : memref<2x16x16x128xf32, #tpu.memory_space<vmem>>, vector<1x16x16x128xf32>,
    %c1_54 = arith.constant 1 : index
    %c0_55 = arith.constant 0 : index
    %c0_56 = arith.constant 0 : index
    %c0_57 = arith.constant 0 : index
    %82 = vector.load %arg2[%c1_54, %c0_55, %c0_56, %c0_57] : memref<2x16x16x128xf32, #tpu.memory_space<vmem>>, vector<1x16x16x128xf32>
    %83 = vector.shape_cast %82 : vector<1x16x16x128xf32> to vector<16x16x128xf32>
    %c1_58 = arith.constant 1 : index
    %c1_59 = arith.constant 1 : index
    %c0_60 = arith.constant 0 : index
    %84 = vector.load %arg6[%c1_58, %c1_59, %c0_60] : memref<18x24x128xf32, #tpu.memory_space<vmem>>, vector<16x16x128xf32>
    tpu.vector_store %arg6[%c1_58, %c1_59, %c0_60], %83 {strides = array<i32>} : memref<18x24x128xf32, #tpu.memory_space<vmem>>, vector<16x16x128xf32>,
    %85 = vector.shape_cast %2 : vector<128xf32> to vector<1x1x128xf32>
    %86 = vector.broadcast %85 : vector<1x1x128xf32> to vector<16x16x128xf32>
    %c0_61 = arith.constant 0 : index
    %c0_62 = arith.constant 0 : index
    %c0_63 = arith.constant 0 : index
    %87 = vector.load %arg6[%c0_61, %c0_62, %c0_63] : memref<18x24x128xf32, #tpu.memory_space<vmem>>, vector<16x16x128xf32>
    %88 = vector.extract_strided_slice %0 {offsets = [0, 0, 0], sizes = [1, 1, 128], strides = [1, 1, 1]} : vector<3x3x128xf32> to vector<1x1x128xf32>
    %89 = vector.shape_cast %88 : vector<1x1x128xf32> to vector<128xf32>
    %90 = vector.shape_cast %89 : vector<128xf32> to vector<1x1x128xf32>
    %91 = vector.broadcast %90 : vector<1x1x128xf32> to vector<16x16x128xf32>
    %92 = arith.mulf %87, %91 : vector<16x16x128xf32>
    %93 = arith.addf %86, %92 : vector<16x16x128xf32>
    %c0_64 = arith.constant 0 : index
    %c1_65 = arith.constant 1 : index
    %c0_66 = arith.constant 0 : index
    %94 = vector.load %arg6[%c0_64, %c1_65, %c0_66] : memref<18x24x128xf32, #tpu.memory_space<vmem>>, vector<16x16x128xf32>
    %95 = vector.extract_strided_slice %0 {offsets = [0, 1, 0], sizes = [1, 1, 128], strides = [1, 1, 1]} : vector<3x3x128xf32> to vector<1x1x128xf32>
    %96 = vector.shape_cast %95 : vector<1x1x128xf32> to vector<128xf32>
    %97 = vector.shape_cast %96 : vector<128xf32> to vector<1x1x128xf32>
    %98 = vector.broadcast %97 : vector<1x1x128xf32> to vector<16x16x128xf32>
    %99 = arith.mulf %94, %98 : vector<16x16x128xf32>
    %100 = arith.addf %93, %99 : vector<16x16x128xf32>
    %c0_67 = arith.constant 0 : index
    %c2_68 = arith.constant 2 : index
    %c0_69 = arith.constant 0 : index
    %101 = vector.load %arg6[%c0_67, %c2_68, %c0_69] : memref<18x24x128xf32, #tpu.memory_space<vmem>>, vector<16x16x128xf32>
    %102 = vector.extract_strided_slice %0 {offsets = [0, 2, 0], sizes = [1, 1, 128], strides = [1, 1, 1]} : vector<3x3x128xf32> to vector<1x1x128xf32>
    %103 = vector.shape_cast %102 : vector<1x1x128xf32> to vector<128xf32>
    %104 = vector.shape_cast %103 : vector<128xf32> to vector<1x1x128xf32>
    %105 = vector.broadcast %104 : vector<1x1x128xf32> to vector<16x16x128xf32>
    %106 = arith.mulf %101, %105 : vector<16x16x128xf32>
    %107 = arith.addf %100, %106 : vector<16x16x128xf32>
    %c1_70 = arith.constant 1 : index
    %c0_71 = arith.constant 0 : index
    %c0_72 = arith.constant 0 : index
    %108 = vector.load %arg6[%c1_70, %c0_71, %c0_72] : memref<18x24x128xf32, #tpu.memory_space<vmem>>, vector<16x16x128xf32>
    %109 = vector.extract_strided_slice %0 {offsets = [1, 0, 0], sizes = [1, 1, 128], strides = [1, 1, 1]} : vector<3x3x128xf32> to vector<1x1x128xf32>
    %110 = vector.shape_cast %109 : vector<1x1x128xf32> to vector<128xf32>
    %111 = vector.shape_cast %110 : vector<128xf32> to vector<1x1x128xf32>
    %112 = vector.broadcast %111 : vector<1x1x128xf32> to vector<16x16x128xf32>
    %113 = arith.mulf %108, %112 : vector<16x16x128xf32>
    %114 = arith.addf %107, %113 : vector<16x16x128xf32>
    %c1_73 = arith.constant 1 : index
    %c1_74 = arith.constant 1 : index
    %c0_75 = arith.constant 0 : index
    %115 = vector.load %arg6[%c1_73, %c1_74, %c0_75] : memref<18x24x128xf32, #tpu.memory_space<vmem>>, vector<16x16x128xf32>
    %116 = vector.extract_strided_slice %0 {offsets = [1, 1, 0], sizes = [1, 1, 128], strides = [1, 1, 1]} : vector<3x3x128xf32> to vector<1x1x128xf32>
    %117 = vector.shape_cast %116 : vector<1x1x128xf32> to vector<128xf32>
    %118 = vector.shape_cast %117 : vector<128xf32> to vector<1x1x128xf32>
    %119 = vector.broadcast %118 : vector<1x1x128xf32> to vector<16x16x128xf32>
    %120 = arith.mulf %115, %119 : vector<16x16x128xf32>
    %121 = arith.addf %114, %120 : vector<16x16x128xf32>
    %c1_76 = arith.constant 1 : index
    %c2_77 = arith.constant 2 : index
    %c0_78 = arith.constant 0 : index
    %122 = vector.load %arg6[%c1_76, %c2_77, %c0_78] : memref<18x24x128xf32, #tpu.memory_space<vmem>>, vector<16x16x128xf32>
    %123 = vector.extract_strided_slice %0 {offsets = [1, 2, 0], sizes = [1, 1, 128], strides = [1, 1, 1]} : vector<3x3x128xf32> to vector<1x1x128xf32>
    %124 = vector.shape_cast %123 : vector<1x1x128xf32> to vector<128xf32>
    %125 = vector.shape_cast %124 : vector<128xf32> to vector<1x1x128xf32>
    %126 = vector.broadcast %125 : vector<1x1x128xf32> to vector<16x16x128xf32>
    %127 = arith.mulf %122, %126 : vector<16x16x128xf32>
    %128 = arith.addf %121, %127 : vector<16x16x128xf32>
    %c2_79 = arith.constant 2 : index
    %c0_80 = arith.constant 0 : index
    %c0_81 = arith.constant 0 : index
    %129 = vector.load %arg6[%c2_79, %c0_80, %c0_81] : memref<18x24x128xf32, #tpu.memory_space<vmem>>, vector<16x16x128xf32>
    %130 = vector.extract_strided_slice %0 {offsets = [2, 0, 0], sizes = [1, 1, 128], strides = [1, 1, 1]} : vector<3x3x128xf32> to vector<1x1x128xf32>
    %131 = vector.shape_cast %130 : vector<1x1x128xf32> to vector<128xf32>
    %132 = vector.shape_cast %131 : vector<128xf32> to vector<1x1x128xf32>
    %133 = vector.broadcast %132 : vector<1x1x128xf32> to vector<16x16x128xf32>
    %134 = arith.mulf %129, %133 : vector<16x16x128xf32>
    %135 = arith.addf %128, %134 : vector<16x16x128xf32>
    %c2_82 = arith.constant 2 : index
    %c1_83 = arith.constant 1 : index
    %c0_84 = arith.constant 0 : index
    %136 = vector.load %arg6[%c2_82, %c1_83, %c0_84] : memref<18x24x128xf32, #tpu.memory_space<vmem>>, vector<16x16x128xf32>
    %137 = vector.extract_strided_slice %0 {offsets = [2, 1, 0], sizes = [1, 1, 128], strides = [1, 1, 1]} : vector<3x3x128xf32> to vector<1x1x128xf32>
    %138 = vector.shape_cast %137 : vector<1x1x128xf32> to vector<128xf32>
    %139 = vector.shape_cast %138 : vector<128xf32> to vector<1x1x128xf32>
    %140 = vector.broadcast %139 : vector<1x1x128xf32> to vector<16x16x128xf32>
    %141 = arith.mulf %136, %140 : vector<16x16x128xf32>
    %142 = arith.addf %135, %141 : vector<16x16x128xf32>
    %c2_85 = arith.constant 2 : index
    %c2_86 = arith.constant 2 : index
    %c0_87 = arith.constant 0 : index
    %143 = vector.load %arg6[%c2_85, %c2_86, %c0_87] : memref<18x24x128xf32, #tpu.memory_space<vmem>>, vector<16x16x128xf32>
    %144 = vector.extract_strided_slice %0 {offsets = [2, 2, 0], sizes = [1, 1, 128], strides = [1, 1, 1]} : vector<3x3x128xf32> to vector<1x1x128xf32>
    %145 = vector.shape_cast %144 : vector<1x1x128xf32> to vector<128xf32>
    %146 = vector.shape_cast %145 : vector<128xf32> to vector<1x1x128xf32>
    %147 = vector.broadcast %146 : vector<1x1x128xf32> to vector<16x16x128xf32>
    %148 = arith.mulf %143, %147 : vector<16x16x128xf32>
    %149 = arith.addf %142, %148 : vector<16x16x128xf32>
    %c1_88 = arith.constant 1 : index
    %c0_89 = arith.constant 0 : index
    %c0_90 = arith.constant 0 : index
    %c0_91 = arith.constant 0 : index
    %150 = vector.load %arg5[%c1_88, %c0_89, %c0_90, %c0_91] : memref<2x16x16x128xf32, #tpu.memory_space<vmem>>, vector<1x16x16x128xf32>
    %151 = vector.shape_cast %150 : vector<1x16x16x128xf32> to vector<16x16x128xf32>
    %152 = vector.shape_cast %149 : vector<16x16x128xf32> to vector<1x16x16x128xf32>
    tpu.vector_store %arg5[%c1_88, %c0_89, %c0_90, %c0_91], %152 {strides = array<i32>} : memref<2x16x16x128xf32, #tpu.memory_space<vmem>>, vector<1x16x16x128xf32>,
    return
  }
  func.func @transform_0(%arg0: i32, %arg1: i32) -> (i32, i32, i32, i32) {
    %c0_i32 = arith.constant 0 : i32
    %c0_i32_0 = arith.constant 0 : i32
    %c0_i32_1 = arith.constant 0 : i32
    return %arg1, %c0_i32, %c0_i32_0, %arg0 : i32, i32, i32, i32
  }
  func.func @transform_1(%arg0: i32, %arg1: i32) -> (i32, i32, i32) {
    %c0_i32 = arith.constant 0 : i32
    %c0_i32_0 = arith.constant 0 : i32
    %c0_i32_1 = arith.constant 0 : i32
    return %c0_i32, %c0_i32_0, %arg0 : i32, i32, i32
  }
  func.func @transform_2(%arg0: i32, %arg1: i32) -> (i32, i32) {
    %c0_i32 = arith.constant 0 : i32
    %c0_i32_0 = arith.constant 0 : i32
    return %c0_i32, %arg0 : i32, i32
  }
  func.func @transform_3(%arg0: i32, %arg1: i32) -> (i32, i32, i32, i32) {
    %c0_i32 = arith.constant 0 : i32
    %c0_i32_0 = arith.constant 0 : i32
    %c0_i32_1 = arith.constant 0 : i32
    return %arg1, %c0_i32, %c0_i32_0, %arg0 : i32, i32, i32, i32
  }
}

</mosaic_0001>

<bundles_post_ra>
// kernel: tpu_custom_call.1
= control target key start
LH: loop header
LB: loop body
LE: loop exit
PB: predicated region body
PF: predicated region fallthrough
CT: control target
= control target key end

     0   :  { %8 = vsyncpa [#allocation4], 0  ;;  %s4292_s0 = inlined_call_operand.hbm [shape: f32[2,16,16,256], index: 0, kind: input, shape index: {}]   ;;  %s4293_s1 = inlined_call_operand.hbm [shape: f32[3,3,256], index: 1, kind: input, shape index: {}]   ;;  %s4294_s2 = inlined_call_operand.vmem [shape: f32[1,256], index: 2, kind: input, shape index: {}]   ;;  %s4295_s3 = inlined_call_operand.hbm [shape: f32[2,16,16,256], index: 3, kind: output, shape index: {}]  }
   0x1   :  { %10 = vsyncpa [#allocation4 + $0x1], 0 }
   0x2   :  { %11 = vsyncpa [#allocation7], 0 }
   0x3   :  { %13 = vsyncpa [#allocation7 + $0x1], 0 }
   0x4   :  { %14 = vsyncpa [#allocation5], 0 }
   0x5   :  { %16 = vsyncpa [#allocation5 + $0x1], 0  ;;  %s2749_s12 = smov 0   ;;  %s2751_s13 = smov 0  }
   0x6   :  { %s2753_s14 = smov 0   ;;  %s2755_s15 = smov 0  }
   0x7   :  { %s2757_s16 = smov 0   ;;  %s2759_s17 = smov 0  }
   0x8 LB: > { %s2408_s18 = sadd.s32 4294967295, %s2715_s17   ;;  %s2409_s19 = sadd.s32 4294967294, %s2715_s17   ;;  %s2715_s17 = sphi %s2759_s17, %s22_s17   ;;  %s2711_s16 = sphi %s2757_s16, %s4529_s16   ;;  %s2707_s15 = sphi %s2755_s15, %s4528_s15   ;;  %s2703_s14 = sphi %s2753_s14, %s4527_s14   ;;  %s2699_s13 = sphi %s2751_s13, %s4526_s13   ;;  %s2695_s12 = sphi %s2749_s12, %s4525_s12  }
   0x9   : > { %s34_s20 = sadd.s32 1, %s2711_s16  ;;  %s43_s21 = sadd.s32 1, %s2703_s14 }
   0xa   : > { %p36_p0 = scmp.ge.s32.totalorder %s34_s20, 2  ;;  %p50_p1 = scmp.ne.s32.totalorder %s2703_s14, %s2699_s13 }
   0xb   : > { %p51_p2 = scmp.eq.s32.totalorder %s2715_s17, 0  ;;  %p56_p3 = scmp.ne.s32.totalorder %s2699_s13, %s2695_s12 }
   0xc   : > { %s4531_s20 = smov (%p36_p0, %s34_s20), 0  ;;  %p57_p5 = scmp.eq.s32.totalorder %s2408_s18, 0 }
   0xd   : > { %p2790_p4 = por %p51_p2, %p50_p1  ;;  %s39_s23 = ssub.s32 %s2711_s16, %s4531_s20 }
   0xe   : > { %p134_p6 = scmp.eq.s32.totalorder %s2408_s18, 1  ;;  %p41_p7 = scmp.eq.s32.totalorder %s39_s23, 0 }
   0xf   : > { %p2796_p8 = por %p57_p5, %p56_p3  ;;  %p140_p10 = scmp.eq.s32.totalorder %s2409_s19, 1 }
  0x10   : > { %p2800_p9 = por %p134_p6, %p50_p1  ;;  %p2506_p13 = scmp.lt.s32.totalorder %s2715_s17, 2 }
  0x11   : > { %s4386_s24 = scalar_select %p2796_p8, 1, 0 }
  0x12   : > { %s4387_s25 = scalar_select %p2800_p9, 1, 0 }
  0x13   : > { %s2805_s26 = scalar_select %p41_p7, %s2703_s14, %s43_s21  }
  0x14   : > { %p2807_p11 = por %p140_p10, %p56_p3  ;;  %s2814_s28 = sand.u32 1, %s2703_s14  }
  0x15   : > { %s2412_s29 = sshll.u32 %s2814_s28, 9  ;;  %s2413_s30 = sshll.u32 %s2711_s16, 7 }
  0x16   : > { %s4388_s27 = scalar_select %p2807_p11, 1, 0 }
  0x17   : > { %s2821_s6 = scalar_lea.hbm %s4292_s0, %s2413_s30  ;;  %s164_s7 = scalar_lea.vmem [#allocation3], %s2412_s29 }
  0x18   : > { %s173_s8 = sshll.u32 %s164_s7, 4  ;;  %p2827_p0 = pnand %p2506_p13, %p2790_p4  ;;  %s2823_s8 = int_to_ptr.vmem [resolvable:$true] %s173_s8 }
  0x19   : > { %s161_s10 = scalar_lea.sflag [#allocation4], %s2814_s28  ;;  %s2569_s11 = scalar_lea.hbm %s2821_s6, 8192 }
  0x1a   : > { %p2570_p1 = scmp.ne.s32.totalorder %s2821_s6, %s2569_s11  ;;  %p2571_p2 = pneg %p2827_p0 }
  0x1b   : > { %s2574_s21 = scalar_lea.hbm %s4292_s0, 16384  ;;  %p2575_p4 = scmp.lt.u32.totalorder %s2821_s6, %s4292_s0 }
  0x1c   : > { %p2572_p3 = pnand %p2571_p2, %p2570_p1  ;;  %p2576_p6 = scmp.lt.u32.totalorder %s2574_s21, %s2569_s11 }
  0x1d   : > { %p2578_p10 = scmp.lt.u32.totalorder %s2569_s11, %s2821_s6 }
  0x1e   : > { %p2573_p5 = pneg %p2572_p3  ;;  %p2577_p7 = por %p2576_p6, %p2575_p4 }
  0x20   : > { %p2579_p13 = por %p2578_p10, %p2577_p7 }
  0x22   : > { %p2580_p12 = pnand %p2579_p13, %p2573_p5 }
  0x24   : > { %2583 = shalt.err (!%p2580_p12)
}
  0x25   : > { %s2584_s29 = scalar_lea.vmem %s2823_s8, 8192  ;;  %s2717_s30 = smov [#allocation3]  }
  0x26   : > { %p2585_p1 = scmp.ne.s32.totalorder %s2823_s8, %s2584_s29  ;;  %s2589_s4 = sshll.u32 %s2717_s30, 4  ;;  %s2590_s4 = int_to_ptr.vmem [resolvable:$false] %s2589_s4 }
  0x27   : > { %s2591_s5 = scalar_lea.vmem %s2590_s4, 16384  ;;  %p2592_p9 = scmp.lt.s32.totalorder %s2823_s8, %s2590_s4 }
  0x28   : > { %p2587_p3 = pnand %p2585_p1, %p2571_p2  ;;  %p2593_p4 = scmp.lt.s32.totalorder %s2591_s5, %s2584_s29 }
  0x2a   : > { %p2588_p11 = pneg %p2587_p3  ;;  %p2594_p6 = por %p2593_p4, %p2592_p9 }
  0x2c   : > { %p2595_p7 = pnand %p2594_p6, %p2588_p11 }
  0x2e   : > { %2598 = shalt.err (!%p2595_p7)
}
  0x2f   : > { %s2718_s7 = smov 256   ;;  %s2719_s11 = smov 128  }
  0x30   : > { %s2720_s18 = smov 8   ;;  %p2415_p9 = scmp.ge.s32.totalorder %s2715_s17, 1 }
  0x31   : > { %2498 = dma.hbm_to_vmem [thread:$0]  (!%p2827_p0), %s2821_s6, 8192, %s2823_s8, %s161_s10, %s2718_s7, %s2719_s11, %s2720_s18  }
  0x32   : > { %p207_p11 = scmp.lt.s32.totalorder %s2715_s17, 3  ;;  %s2487_s19 = smul.u32 12, %s2814_s28 }
  0x33   : > { %s2414_s22 = sshll.u32 %s2711_s16, 6  ;;  %s184_s6 = scalar_lea.sflag [#allocation7], %s2814_s28 }
  0x34   : > { %p2863_p12 = pnand %p2415_p9, %p207_p11  ;;  %s2871_s30 = scalar_lea.hbm %s4293_s1, %s2414_s22 }
  0x35   : > { %s187_s4 = scalar_lea.vmem [#allocation6], %s2487_s19  ;;  %s2599_s8 = scalar_lea.hbm %s2871_s30, 192 }
  0x36   : > { %s193_s5 = sshll.u32 %s187_s4, 4  ;;  %p2600_p5 = scmp.ne.s32.totalorder %s2871_s30, %s2599_s8  ;;  %s2873_s5 = int_to_ptr.vmem [resolvable:$true] %s193_s5 }
  0x37   : > { %s2604_s18 = scalar_lea.hbm %s4293_s1, 384  ;;  %p2605_p1 = scmp.lt.u32.totalorder %s2871_s30, %s4293_s1 }
  0x38   : > { %p2602_p10 = pnand %p2600_p5, %p2571_p2  ;;  %p2606_p3 = scmp.lt.u32.totalorder %s2604_s18, %s2599_s8 }
  0x39   : > { %p2608_p6 = scmp.lt.u32.totalorder %s2599_s8, %s2871_s30 }
  0x3a   : > { %p2603_p13 = pneg %p2602_p10  ;;  %p2607_p4 = por %p2606_p3, %p2605_p1 }
  0x3c   : > { %p2609_p7 = por %p2608_p6, %p2607_p4 }
  0x3e   : > { %p2610_p9 = pnand %p2609_p7, %p2603_p13 }
  0x40   : > { %2613 = shalt.err (!%p2610_p9)
}
  0x41   : > { %s2614_s19 = scalar_lea.vmem %s2873_s5, 192  ;;  %s2721_s29 = smov [#allocation6]  }
  0x42   : > { %p2615_p11 = scmp.ne.s32.totalorder %s2873_s5, %s2614_s19  ;;  %s2619_s4 = sshll.u32 %s2721_s29, 4  ;;  %s2620_s4 = int_to_ptr.vmem [resolvable:$false] %s2619_s4 }
  0x43   : > { %s2621_s10 = scalar_lea.vmem %s2620_s4, 384  ;;  %p2622_p8 = scmp.lt.s32.totalorder %s2873_s5, %s2620_s4 }
  0x44   : > { %p2617_p5 = pnand %p2615_p11, %p2571_p2  ;;  %p2623_p1 = scmp.lt.s32.totalorder %s2621_s10, %s2614_s19 }
  0x46   : > { %p2618_p10 = pneg %p2617_p5  ;;  %p2624_p3 = por %p2623_p1, %p2622_p8 }
  0x48   : > { %p2625_p4 = pnand %p2624_p3, %p2618_p10 }
  0x4a   : > { %2628 = shalt.err (!%p2625_p4)
}
  0x4b   : > { %s2722_s8 = smov 64   ;;  %s2723_s7 = smov 4  }
  0x4c   : > { %2501 = dma.hbm_to_vmem [thread:$0]  (!%p2827_p0), %s2871_s30, 192, %s2873_s5, %s184_s6, %s2719_s11, %s2722_s8, %s2723_s7  }
  0x4d   : > { %211 = sbr.rel (%p2863_p12) target bundleno = 491 (0x1eb), region = 32 }
  0x54   : > { %s2905_s18 = sand.u32 1, %s2699_s13   ;;  %p4391_p8 = scmp.ne.s32.totalorder %s4386_s24, 0 }
  0x55   : > { %s2416_s22 = sshll.u32 %s2905_s18, 9  ;;  %s214_s23 = scalar_lea.sflag [#allocation4], %s2905_s18 }
  0x56   : > { %s2911_s19 = scalar_lea.vmem [#allocation3], %s2416_s22 }
  0x57   : > { %2682 = dma.done.wait (%p4391_p8), %s214_s23, 8192  }
  0x58   : > { %2684 = vsyncadd (%p4391_p8), %s214_s23, 4294959104  ;;  %s2488_s28 = smul.u32 12, %s2905_s18  ;;  %s223_s9 = scalar_lea.sflag [#allocation7], %s2905_s18 }
  0x5a   : > { %s2919_s11 = scalar_lea.vmem [#allocation6], %s2488_s28 }
  0x5b   : > { %2686 = dma.done.wait (%p4391_p8), %s223_s9, 192  }
  0x5c   : > { %2688 = vsyncadd (%p4391_p8), %s223_s9, 4294967104  ;;  %v2724_v0 = vmov 0.0   ;;  %v2926_v1 = vld [vmem:[%s2911_s19] sm:$0xff]  ;;  %v2929_v2 = vld [vmem:[%s2911_s19 + $0x8] sm:$0xff]  ;;  %p258_p0 = scmp.lt.s32.totalorder %s2707_s15, 1  ;;  %s3325_s6 = scalar_lea.vmem [#allocation8], %s2416_s22 }
  0x5d   : > { %266 = vst [vmem:[#allocation2] sm:$0xff] %v2724_v0  ;;  %267 = vst [vmem:[#allocation2 + $0x8] sm:$0xff] %v2724_v0  ;;  %v2932_v3 = vld [vmem:[%s2911_s19 + $0x10] sm:$0xff]  ;;  %v2938_v4 = vld [vmem:[%s2911_s19 + $0x18] sm:$0xff]  ;;  %s2484_s29 = sshll.u32 %s2707_s15, 7  ;;  %s2291_s4 = sshll.u32 %s3325_s6, 4  ;;  %s4242_s4 = int_to_ptr.vmem [resolvable:$true] %s2291_s4 }
  0x5e   : > { %268 = vst [vmem:[#allocation2 + $0x10] sm:$0xff] %v2724_v0  ;;  %270 = vst [vmem:[#allocation2 + $0x198] sm:$0xff] %v2724_v0  ;;  %v2941_v5 = vld [vmem:[%s2911_s19 + $0x20] sm:$0xff]  ;;  %v2944_v6 = vld [vmem:[%s2911_s19 + $0x28] sm:$0xff]  ;;  %s259_s24 = scalar_select %p258_p0, %s2707_s15, 1 }
  0x5f   : > { %271 = vst [vmem:[#allocation2 + $0x1a0] sm:$0xff] %v2724_v0  ;;  %272 = vst [vmem:[#allocation2 + $0x1a8] sm:$0xff] %v2724_v0  ;;  %v2950_v7 = vld [vmem:[%s2911_s19 + $0x30] sm:$0xff]  ;;  %v2953_v8 = vld [vmem:[%s2911_s19 + $0x38] sm:$0xff]  ;;  %s4240_s7 = scalar_lea.hbm %s4295_s3, %s2484_s29  ;;  %s2276_s22 = scalar_lea.sflag [#allocation5], %s2905_s18 }
  0x60   : > { %274 = vst [vmem:[#allocation2 + $0x18] sm:$0x1] %v2724_v0  ;;  %275 = vst [vmem:[#allocation2 + $0x30] sm:$0x1] %v2724_v0  ;;  %v2956_v9 = vld [vmem:[%s2911_s19 + $0x40] sm:$0xff]  ;;  %v2962_v10 = vld [vmem:[%s2911_s19 + $0x48] sm:$0xff]  ;;  %s3212_s5 = scalar_lea.vmem %s4294_s2, %s259_s24 }
  0x61   : > { %276 = vst [vmem:[#allocation2 + $0x48] sm:$0x1] %v2724_v0  ;;  %277 = vst [vmem:[#allocation2 + $0x60] sm:$0x1] %v2724_v0  ;;  %v2965_v11 = vld [vmem:[%s2911_s19 + $0x50] sm:$0xff]  ;;  %v2968_v12 = vld [vmem:[%s2911_s19 + $0x58] sm:$0xff] }
  0x62   : > { %278 = vst [vmem:[#allocation2 + $0x78] sm:$0x1] %v2724_v0  ;;  %279 = vst [vmem:[#allocation2 + $0x90] sm:$0x1] %v2724_v0  ;;  %v2974_v13 = vld [vmem:[%s2911_s19 + $0x60] sm:$0xff]  ;;  %v2977_v14 = vld [vmem:[%s2911_s19 + $0x68] sm:$0xff] }
  0x63   : > { %280 = vst [vmem:[#allocation2 + $0xa8] sm:$0x1] %v2724_v0  ;;  %281 = vst [vmem:[#allocation2 + $0xc0] sm:$0x1] %v2724_v0  ;;  %v2980_v15 = vld [vmem:[%s2911_s19 + $0x70] sm:$0xff]  ;;  %v2986_v16 = vld [vmem:[%s2911_s19 + $0x78] sm:$0xff] }
  0x64   : > { %282 = vst [vmem:[#allocation2 + $0xd8] sm:$0x1] %v2724_v0  ;;  %283 = vst [vmem:[#allocation2 + $0xf0] sm:$0x1] %v2724_v0  ;;  %v2989_v17 = vld [vmem:[%s2911_s19 + $0x80] sm:$0xff]  ;;  %v2992_v18 = vld [vmem:[%s2911_s19 + $0x88] sm:$0xff] }
  0x65   : > { %284 = vst [vmem:[#allocation2 + $0x108] sm:$0x1] %v2724_v0  ;;  %285 = vst [vmem:[#allocation2 + $0x120] sm:$0x1] %v2724_v0  ;;  %v2998_v19 = vld [vmem:[%s2911_s19 + $0x90] sm:$0xff]  ;;  %v3001_v20 = vld [vmem:[%s2911_s19 + $0x98] sm:$0xff] }
  0x66   : > { %286 = vst [vmem:[#allocation2 + $0x138] sm:$0x1] %v2724_v0  ;;  %287 = vst [vmem:[#allocation2 + $0x150] sm:$0x1] %v2724_v0  ;;  %v3004_v21 = vld [vmem:[%s2911_s19 + $0xa0] sm:$0xff]  ;;  %v3010_v22 = vld [vmem:[%s2911_s19 + $0xa8] sm:$0xff] }
  0x67   : > { %288 = vst [vmem:[#allocation2 + $0x168] sm:$0x1] %v2724_v0  ;;  %289 = vst [vmem:[#allocation2 + $0x180] sm:$0x1] %v2724_v0  ;;  %v3013_v23 = vld [vmem:[%s2911_s19 + $0xb0] sm:$0xff]  ;;  %v3016_v24 = vld [vmem:[%s2911_s19 + $0xb8] sm:$0xff] }
  0x68   : > { %292 = vst [vmem:[#allocation2 + $0x29] sm:$0x7f] %v2724_v0  ;;  %293 = vst [vmem:[#allocation2 + $0x41] sm:$0x7f] %v2724_v0  ;;  %v3022_v25 = vld [vmem:[%s2911_s19 + $0xc0] sm:$0xff]  ;;  %v3025_v26 = vld [vmem:[%s2911_s19 + $0xc8] sm:$0xff] }
  0x69   : > { %294 = vst [vmem:[#allocation2 + $0x59] sm:$0x7f] %v2724_v0  ;;  %295 = vst [vmem:[#allocation2 + $0x71] sm:$0x7f] %v2724_v0  ;;  %v3036_v30 = vld [vmem:[%s2911_s19 + $0xd0] sm:$0xff]  ;;  %v3050_v36 = vld [vmem:[%s2911_s19 + $0xd8] sm:$0xff] }
  0x6a   : > { %296 = vst [vmem:[#allocation2 + $0x89] sm:$0x7f] %v2724_v0  ;;  %297 = vst [vmem:[#allocation2 + $0xa1] sm:$0x7f] %v2724_v0  ;;  %v3053_v37 = vld [vmem:[%s2911_s19 + $0xe0] sm:$0xff]  ;;  %v3056_v38 = vld [vmem:[%s2911_s19 + $0xe8] sm:$0xff] }
  0x6b   : > { %298 = vst [vmem:[#allocation2 + $0xb9] sm:$0x7f] %v2724_v0  ;;  %299 = vst [vmem:[#allocation2 + $0xd1] sm:$0x7f] %v2724_v0  ;;  %v3076_v46 = vld [vmem:[%s2911_s19 + $0xf0] sm:$0xff]  ;;  %v3079_v47 = vld [vmem:[%s2911_s19 + $0xf8] sm:$0xff] }
  0x6c   : > { %300 = vst [vmem:[#allocation2 + $0xe9] sm:$0x7f] %v2724_v0  ;;  %301 = vst [vmem:[#allocation2 + $0x101] sm:$0x7f] %v2724_v0  ;;  %v2419_v56 = vld [vmem:[%s2911_s19 + $0x100] sm:$0xff]  ;;  %v2420_v62 = vld [vmem:[%s2911_s19 + $0x108] sm:$0xff] }
  0x6d   : > { %302 = vst [vmem:[#allocation2 + $0x119] sm:$0x7f] %v2724_v0  ;;  %303 = vst [vmem:[#allocation2 + $0x131] sm:$0x7f] %v2724_v0  ;;  %v2421_v63 = vld [vmem:[%s2911_s19 + $0x110] sm:$0xff]  ;;  %s2629_s15 = scalar_lea.vmem %s4242_s4, 8192 }
  0x6e   : > { %304 = vst [vmem:[#allocation2 + $0x149] sm:$0x7f] %v2724_v0  ;;  %305 = vst [vmem:[#allocation2 + $0x161] sm:$0x7f] %v2724_v0  ;;  %p2630_p2 = scmp.ne.s32.totalorder %s4242_s4, %s2629_s15  ;;  %p4522_p12 = scmp.ne.s32.totalorder %s4387_s25, 0 }
  0x6f   : > { %306 = vst [vmem:[#allocation2 + $0x179] sm:$0x7f] %v2724_v0  ;;  %307 = vst [vmem:[#allocation2 + $0x191] sm:$0x7f] %v2724_v0  ;;  %s2725_s23 = smov [#allocation8]  }
  0x70   : > { %273 = vst [vmem:[#allocation2] sm:$0x1] %v2724_v0  ;;  %290 = vst [vmem:[#allocation2 + $0x198] sm:$0x1] %v2724_v0  ;;  %p2631_p13 = pnand %p2630_p2, %p4522_p12 }
  0x71   : > { %291 = vst [vmem:[#allocation2 + $0x11] sm:$0x7f] %v2724_v0  ;;  %308 = vst [vmem:[#allocation2 + $0x1a9] sm:$0x7f] %v2724_v0  ;;  %v2422_v0 = vld [vmem:[%s2911_s19 + $0x118] sm:$0xff] }
  0x72   : > { %342 = vst [vmem:[#allocation2 + $0x19] sm:$0xff] %v2926_v1  ;;  %343 = vst [vmem:[#allocation2 + $0x21] sm:$0xff] %v2929_v2  ;;  %p2632_p6 = pneg %p2631_p13 }
  0x73   : > { %344 = vst [vmem:[#allocation2 + $0x31] sm:$0xff] %v2932_v3  ;;  %345 = vst [vmem:[#allocation2 + $0x39] sm:$0xff] %v2938_v4 }
  0x74   : > { %346 = vst [vmem:[#allocation2 + $0x49] sm:$0xff] %v2941_v5  ;;  %347 = vst [vmem:[#allocation2 + $0x51] sm:$0xff] %v2944_v6 }
  0x75   : > { %348 = vst [vmem:[#allocation2 + $0x61] sm:$0xff] %v2950_v7  ;;  %349 = vst [vmem:[#allocation2 + $0x69] sm:$0xff] %v2953_v8 }
  0x76   : > { %350 = vst [vmem:[#allocation2 + $0x79] sm:$0xff] %v2956_v9  ;;  %4392 = vst [vmem:[#allocation12_spill] sm:$0xff] %v2965_v11 }
  0x77   : > { %4393 = vst [vmem:[#allocation13_spill] sm:$0xff] %v2968_v12  ;;  %351 = vst [vmem:[#allocation2 + $0x81] sm:$0xff] %v2962_v10 }
  0x78   : > { %352 = vst [vmem:[#allocation2 + $0x91] sm:$0xff] %v2965_v11  ;;  %353 = vst [vmem:[#allocation2 + $0x99] sm:$0xff] %v2968_v12 }
  0x79   : > { %4394 = vst [vmem:[#allocation14_spill] sm:$0xff] %v2974_v13  ;;  %4395 = vst [vmem:[#allocation15_spill] sm:$0xff] %v2977_v14  ;;  %v3081_v48 = vld [vmem:[#allocation2 + $0x18] sm:$0xff]  ;;  %v3095_v54 = vld [vmem:[#allocation2 + $0x20] sm:$0xff] }
  0x7a   : > { %4396 = vst [vmem:[#allocation16_spill] sm:$0xff] %v2980_v15  ;;  %354 = vst [vmem:[#allocation2 + $0xa9] sm:$0xff] %v2974_v13  ;;  %v3029_v27 = vld [vmem:[#allocation2 + $0x30] sm:$0xff]  ;;  %v3031_v28 = vld [vmem:[#allocation2 + $0x38] sm:$0xff] }
  0x7b   : > { %355 = vst [vmem:[#allocation2 + $0xb1] sm:$0xff] %v2977_v14  ;;  %356 = vst [vmem:[#allocation2 + $0xc1] sm:$0xff] %v2980_v15  ;;  %v3033_v29 = vld [vmem:[#allocation2 + $0x32] sm:$0xff]  ;;  %v3038_v31 = vld [vmem:[#allocation2 + $0x3a] sm:$0xff] }
  0x7c   : > { %4397 = vst [vmem:[#allocation17_spill] sm:$0xff] %v2986_v16  ;;  %4398 = vst [vmem:[#allocation18_spill] sm:$0xff] %v2989_v17  ;;  %v3040_v32 = vld [vmem:[#allocation2 + $0x48] sm:$0xff]  ;;  %v3042_v33 = vld [vmem:[#allocation2 + $0x50] sm:$0xff] }
  0x7d   : > { %4399 = vst [vmem:[#allocation19_spill] sm:$0xff] %v2992_v18  ;;  %357 = vst [vmem:[#allocation2 + $0xc9] sm:$0xff] %v2986_v16  ;;  %v3044_v34 = vld [vmem:[#allocation2 + $0x4a] sm:$0xff]  ;;  %v3046_v35 = vld [vmem:[#allocation2 + $0x52] sm:$0xff] }
  0x7e   : > { %358 = vst [vmem:[#allocation2 + $0xd9] sm:$0xff] %v2989_v17  ;;  %359 = vst [vmem:[#allocation2 + $0xe1] sm:$0xff] %v2992_v18  ;;  %v3058_v39 = vld [vmem:[#allocation2 + $0x60] sm:$0xff]  ;;  %v3060_v40 = vld [vmem:[#allocation2 + $0x68] sm:$0xff] }
  0x7f   : > { %4400 = vst [vmem:[#allocation20_spill] sm:$0xff] %v2998_v19  ;;  %4401 = vst [vmem:[#allocation21_spill] sm:$0xff] %v3001_v20  ;;  %v3062_v41 = vld [vmem:[#allocation2 + $0x62] sm:$0xff]  ;;  %v3064_v42 = vld [vmem:[#allocation2 + $0x6a] sm:$0xff] }
  0x80   : > { %4402 = vst [vmem:[#allocation22_spill] sm:$0xff] %v3004_v21  ;;  %360 = vst [vmem:[#allocation2 + $0xf1] sm:$0xff] %v2998_v19  ;;  %v3066_v43 = vld [vmem:[#allocation2 + $0x78] sm:$0xff]  ;;  %v3068_v44 = vld [vmem:[#allocation2 + $0x80] sm:$0xff] }
  0x81   : > { %361 = vst [vmem:[#allocation2 + $0xf9] sm:$0xff] %v3001_v20  ;;  %362 = vst [vmem:[#allocation2 + $0x109] sm:$0xff] %v3004_v21  ;;  %v3070_v45 = vld [vmem:[#allocation2 + $0x7a] sm:$0xff]  ;;  %v3083_v49 = vld [vmem:[#allocation2 + $0x82] sm:$0xff] }
  0x82   : > { %4403 = vst [vmem:[#allocation23_spill] sm:$0xff] %v3010_v22  ;;  %4404 = vst [vmem:[#allocation24_spill] sm:$0xff] %v3013_v23  ;;  %v3085_v50 = vld [vmem:[#allocation2 + $0x90] sm:$0xff]  ;;  %v3087_v51 = vld [vmem:[#allocation2 + $0x98] sm:$0xff] }
  0x83   : > { %4405 = vst [vmem:[#allocation25_spill] sm:$0xff] %v3016_v24  ;;  %363 = vst [vmem:[#allocation2 + $0x111] sm:$0xff] %v3010_v22  ;;  %v3089_v52 = vld [vmem:[#allocation2 + $0x92] sm:$0xff]  ;;  %v3091_v53 = vld [vmem:[#allocation2 + $0x9a] sm:$0xff] }
  0x84   : > { %364 = vst [vmem:[#allocation2 + $0x121] sm:$0xff] %v3013_v23  ;;  %365 = vst [vmem:[#allocation2 + $0x129] sm:$0xff] %v3016_v24  ;;  %v3097_v55 = vld [vmem:[#allocation2 + $0x1a] sm:$0xff]  ;;  %v3100_v57 = vld [vmem:[#allocation2 + $0xa8] sm:$0xff] }
  0x85   : > { %4406 = vst [vmem:[#allocation26_spill] sm:$0xff] %v3022_v25  ;;  %4407 = vst [vmem:[#allocation27_spill] sm:$0xff] %v3025_v26  ;;  %v3102_v58 = vld [vmem:[#allocation2 + $0xb0] sm:$0xff]  ;;  %v3108_v61 = vld [vmem:[#allocation2 + $0x22] sm:$0xff] }
  0x86   : > { %366 = vst [vmem:[#allocation2 + $0x139] sm:$0xff] %v3022_v25  ;;  %367 = vst [vmem:[#allocation2 + $0x141] sm:$0xff] %v3025_v26  ;;  %v3104_v59 = vld [vmem:[#allocation2 + $0xaa] sm:$0xff]  ;;  %v3106_v60 = vld [vmem:[#allocation2 + $0xb2] sm:$0xff] }
  0x87   : > { %4408 = vst [vmem:[#allocation28_spill] sm:$0xff] %v3036_v30  ;;  %368 = vst [vmem:[#allocation2 + $0x151] sm:$0xff] %v3036_v30  ;;  %v3118_v30 = vld [vmem:[#allocation2 + $0xc0] sm:$0xff]  ;;  %v3129_v25 = vld [vmem:[#allocation2 + $0xd8] sm:$0xff] }
  0x88   : > { %4409 = vst [vmem:[#allocation29_spill] sm:$0xff] %v3050_v36  ;;  %4410 = vst [vmem:[#allocation30_spill] sm:$0xff] %v3053_v37  ;;  %v3122_v26 = vld [vmem:[#allocation2 + $0xc2] sm:$0xff]  ;;  %v3133_v23 = vld [vmem:[#allocation2 + $0xda] sm:$0xff] }
  0x89   : > { %4411 = vst [vmem:[#allocation31_spill] sm:$0xff] %v3056_v38  ;;  %369 = vst [vmem:[#allocation2 + $0x159] sm:$0xff] %v3050_v36  ;;  %v2427_v36 = vld [vmem:[%s2911_s19 + $0x140] sm:$0xff]  ;;  %v3131_v24 = vld [vmem:[#allocation2 + $0xe0] sm:$0xff] }
  0x8a   : > { %370 = vst [vmem:[#allocation2 + $0x169] sm:$0xff] %v3053_v37  ;;  %371 = vst [vmem:[#allocation2 + $0x171] sm:$0xff] %v3056_v38  ;;  %v2425_v38 = vld [vmem:[%s2911_s19 + $0x130] sm:$0xff]  ;;  %v2426_v37 = vld [vmem:[%s2911_s19 + $0x138] sm:$0xff] }
  0x8b   : > { %4412 = vst [vmem:[#allocation32_spill] sm:$0xff] %v3076_v46  ;;  %4413 = vst [vmem:[#allocation33_spill] sm:$0xff] %v3079_v47  ;;  %v3135_v22 = vld [vmem:[#allocation2 + $0xe2] sm:$0xff]  ;;  %v3137_v21 = vld [vmem:[#allocation2 + $0xf0] sm:$0xff] }
  0x8c   : > { %4414 = vst [vmem:[#allocation34_spill] sm:$0xff] %v3087_v51  ;;  %4415 = vst [vmem:[#allocation35_spill] sm:$0xff] %v3089_v52  ;;  %v2432_v20 = vld [vmem:[%s2911_s19 + $0x168] sm:$0xff]  ;;  %v3148_v18 = vld [vmem:[#allocation2 + $0x108] sm:$0xff] }
  0x8d   : > { %4416 = vst [vmem:[#allocation36_spill] sm:$0xff] %v3091_v53  ;;  %372 = vst [vmem:[#allocation2 + $0x181] sm:$0xff] %v3076_v46  ;;  %v2424_v46 = vld [vmem:[%s2911_s19 + $0x128] sm:$0xff]  ;;  %v481_v16 = vld [vmem:[#allocation2 + $0x9] sm:$0xff] }
  0x8e   : > { %373 = vst [vmem:[#allocation2 + $0x189] sm:$0xff] %v3079_v47  ;;  %4417 = vst [vmem:[#allocation37_spill] sm:$0xff] %v3100_v57  ;;  %v2423_v47 = vld [vmem:[%s2911_s19 + $0x120] sm:$0xff]  ;;  %v3146_v19 = vld [vmem:[#allocation2 + $0xfa] sm:$0xff] }
  0x8f   : > { %4418 = vst [vmem:[#allocation38_spill] sm:$0xff] %v3102_v58  ;;  %4419 = vst [vmem:[#allocation39_spill] sm:$0xff] %v3104_v59 }
  0x90   : > { %4420 = vst [vmem:[#allocation40_spill] sm:$0xff] %v3106_v60  ;;  %1346 = vst [vmem:[#allocation2 + $0x19] sm:$0xff] %v2419_v56  ;;  %v3120_v56 = vld [vmem:[#allocation2 + $0xc8] sm:$0xff] }
  0x91   : > { %1347 = vst [vmem:[#allocation2 + $0x21] sm:$0xff] %v2420_v62  ;;  %1348 = vst [vmem:[#allocation2 + $0x31] sm:$0xff] %v2421_v63  ;;  %v3124_v62 = vld [vmem:[#allocation2 + $0xca] sm:$0xff]  ;;  %v2428_v63 = vld [vmem:[%s2911_s19 + $0x148] sm:$0xff] }
  0x92   : > { %1349 = vst [vmem:[#allocation2 + $0x39] sm:$0xff] %v2422_v0  ;;  %1350 = vst [vmem:[#allocation2 + $0x49] sm:$0xff] %v2423_v47  ;;  %v2429_v47 = vld [vmem:[%s2911_s19 + $0x150] sm:$0xff]  ;;  %v412_v0 = vlaneseq }
  0x93   : > { %1351 = vst [vmem:[#allocation2 + $0x51] sm:$0xff] %v2424_v46  ;;  %4421 = vst [vmem:[#allocation41_spill] sm:$0xff] %v3118_v30  ;;  %v2430_v46 = vld [vmem:[%s2911_s19 + $0x158] sm:$0xff] }
  0x94   : > { %4422 = vst [vmem:[#allocation42_spill] sm:$0xff] %v3120_v56  ;;  %4423 = vst [vmem:[#allocation43_spill] sm:$0xff] %v3122_v26 }
  0x95   : > { %4424 = vst [vmem:[#allocation44_spill] sm:$0xff] %v3124_v62  ;;  %1352 = vst [vmem:[#allocation2 + $0x61] sm:$0xff] %v2425_v38  ;;  %v3139_v38 = vld [vmem:[#allocation2 + $0xf8] sm:$0xff] }
  0x96   : > { %1353 = vst [vmem:[#allocation2 + $0x69] sm:$0xff] %v2426_v37  ;;  %1354 = vst [vmem:[#allocation2 + $0x79] sm:$0xff] %v2427_v36  ;;  %v3141_v37 = vld [vmem:[#allocation2 + $0xf2] sm:$0xff] }
  0x97   : > { %4425 = vst [vmem:[#allocation45_spill] sm:$0xff] %v3129_v25  ;;  %4426 = vst [vmem:[#allocation46_spill] sm:$0xff] %v3131_v24  ;;  %v2431_v36 = vld [vmem:[%s2911_s19 + $0x160] sm:$0xff] }
  0x98   : > { %4427 = vst [vmem:[#allocation47_spill] sm:$0xff] %v3133_v23  ;;  %4428 = vst [vmem:[#allocation48_spill] sm:$0xff] %v3135_v22  ;;  %v3150_v24 = vld [vmem:[#allocation2 + $0x110] sm:$0xff]  ;;  %v3226_v22 = vld [vmem:[%s3212_s5] ss:$0 sm:$0xff] }
  0x99   : > { %4429 = vst [vmem:[#allocation49_spill] sm:$0xff] %v3137_v21  ;;  %4430 = vst [vmem:[#allocation50_spill] sm:$0xff] %v3139_v38  ;;  %v3152_v23 = vld [vmem:[#allocation2 + $0x10a] sm:$0xff]  ;;  %v3154_v21 = vld [vmem:[#allocation2 + $0x112] sm:$0xff] }
  0x9a   : > { %4431 = vst [vmem:[#allocation51_spill] sm:$0xff] %v3141_v37  ;;  %1355 = vst [vmem:[#allocation2 + $0x81] sm:$0xff] %v2428_v63  ;;  %v3156_v63 = vld [vmem:[#allocation2 + $0x120] sm:$0xff]  ;;  %v3162_v38 = vld [vmem:[#allocation2 + $0x12a] sm:$0xff] }
  0x9b   : > { %1356 = vst [vmem:[#allocation2 + $0x91] sm:$0xff] %v2429_v47  ;;  %1357 = vst [vmem:[#allocation2 + $0x99] sm:$0xff] %v2430_v46  ;;  %v3158_v47 = vld [vmem:[#allocation2 + $0x128] sm:$0xff] }
  0x9c   : > { %4432 = vst [vmem:[#allocation52_spill] sm:$0xff] %v3146_v19  ;;  %4433 = vst [vmem:[#allocation53_spill] sm:$0xff] %v3148_v18  ;;  %v3160_v46 = vld [vmem:[#allocation2 + $0x122] sm:$0xff]  ;;  %v3164_v19 = vld [vmem:[#allocation2 + $0x138] sm:$0xff] }
  0x9d   : > { %4434 = vst [vmem:[#allocation54_spill] sm:$0xff] %v3150_v24  ;;  %4435 = vst [vmem:[#allocation55_spill] sm:$0xff] %v3152_v23  ;;  %v3166_v18 = vld [vmem:[#allocation2 + $0x140] sm:$0xff] }
  0x9e   : > { %4436 = vst [vmem:[#allocation56_spill] sm:$0xff] %v3154_v21  ;;  %1358 = vst [vmem:[#allocation2 + $0xa9] sm:$0xff] %v2431_v36  ;;  %v3168_v24 = vld [vmem:[#allocation2 + $0x13a] sm:$0xff]  ;;  %v3170_v21 = vld [vmem:[#allocation2 + $0x142] sm:$0xff] }
  0x9f   : > { %1359 = vst [vmem:[#allocation2 + $0xb1] sm:$0xff] %v2432_v20  ;;  %4437 = vst [vmem:[#allocation57_spill] sm:$0xff] %v3156_v63  ;;  %v3172_v20 = vld [vmem:[#allocation2 + $0x150] sm:$0xff]  ;;  %v3174_v36 = vld [vmem:[#allocation2 + $0x158] sm:$0xff] }
  0xa0   : > { %4438 = vst [vmem:[#allocation58_spill] sm:$0xff] %v3158_v47  ;;  %4439 = vst [vmem:[#allocation59_spill] sm:$0xff] %v3160_v46  ;;  %v3176_v47 = vld [vmem:[#allocation2 + $0x152] sm:$0xff]  ;;  %v413_v46 = vshrl.u32 %v412_v0, 7  ;;  %v3186_v63 = vld [vmem:[#allocation2 + $0x16a] sm:$0xff] }
  0xa1   : > { %4440 = vst [vmem:[#allocation60_spill] sm:$0xff] %v3162_v38  ;;  %4441 = vst [vmem:[#allocation61_spill] sm:$0xff] %v3164_v19  ;;  %v3178_v38 = vld [vmem:[#allocation2 + $0x15a] sm:$0xff]  ;;  %v2438_v0 = vld [vmem:[%s2911_s19 + $0x198] sm:$0xff] }
  0xa2   : > { %4442 = vst [vmem:[#allocation62_spill] sm:$0xff] %v3166_v18  ;;  %4443 = vst [vmem:[#allocation63_spill] sm:$0xff] %v3168_v24  ;;  %v2433_v19 = vld [vmem:[%s2911_s19 + $0x170] sm:$0xff]  ;;  %v2434_v18 = vld [vmem:[%s2911_s19 + $0x178] sm:$0xff]  ;;  %v414_v23 = vsub.s32 0, %v413_v46  ;;  %v614_v37 = vsub.s32 2, %v413_v46 }
  0xa3   : > { %4444 = vst [vmem:[#allocation64_spill] sm:$0xff] %v3170_v21  ;;  %4445 = vst [vmem:[#allocation65_spill] sm:$0xff] %v3172_v20  ;;  %v3182_v24 = vld [vmem:[#allocation2 + $0x168] sm:$0xff]  ;;  %v3184_v21 = vld [vmem:[#allocation2 + $0x170] sm:$0xff] }
  0xa4   : > { %4446 = vst [vmem:[#allocation66_spill] sm:$0xff] %v3174_v36  ;;  %4447 = vst [vmem:[#allocation67_spill] sm:$0xff] %v3176_v47  ;;  %v3188_v20 = vld [vmem:[#allocation2 + $0x172] sm:$0xff]  ;;  %v2437_v47 = vld [vmem:[%s2911_s19 + $0x190] sm:$0xff] }
  0xa5   : > { %4448 = vst [vmem:[#allocation68_spill] sm:$0xff] %v3178_v38  ;;  %4449 = vst [vmem:[#allocation69_spill] sm:$0xff] %v3182_v24  ;;  %v2435_v38 = vld [vmem:[%s2911_s19 + $0x180] sm:$0xff]  ;;  %v2436_v36 = vld [vmem:[%s2911_s19 + $0x188] sm:$0xff] }
  0xa6   : > { %4450 = vst [vmem:[#allocation70_spill] sm:$0xff] %v3184_v21  ;;  %4451 = vst [vmem:[#allocation71_spill] sm:$0xff] %v3186_v63  ;;  %v2439_v21 = vld [vmem:[%s2911_s19 + $0x1a0] sm:$0xff]  ;;  %v2440_v63 = vld [vmem:[%s2911_s19 + $0x1a8] sm:$0xff] }
  0xa7   : > { %4452 = vst [vmem:[#allocation72_spill] sm:$0xff] %v3188_v20  ;;  %1360 = vst [vmem:[#allocation2 + $0xc1] sm:$0xff] %v2433_v19  ;;  %v2442_v19 = vld [vmem:[%s2911_s19 + $0x1b8] sm:$0xff]  ;;  %v2443_v20 = vld [vmem:[%s2911_s19 + $0x1c0] sm:$0xff] }
  0xa8   : > { %1361 = vst [vmem:[#allocation2 + $0xc9] sm:$0xff] %v2434_v18  ;;  %1362 = vst [vmem:[#allocation2 + $0xd9] sm:$0xff] %v2435_v38  ;;  %v2441_v18 = vld [vmem:[%s2911_s19 + $0x1b0] sm:$0xff]  ;;  %v2444_v24 = vld [vmem:[%s2911_s19 + $0x1c8] sm:$0xff] }
  0xa9   : > { %1363 = vst [vmem:[#allocation2 + $0xe1] sm:$0xff] %v2436_v36  ;;  %1364 = vst [vmem:[#allocation2 + $0xf1] sm:$0xff] %v2437_v47  ;;  %v2445_v38 = vld [vmem:[%s2911_s19 + $0x1d0] sm:$0xff]  ;;  %v2446_v36 = vld [vmem:[%s2911_s19 + $0x1d8] sm:$0xff]  ;;  %v514_v47 = vsub.s32 1, %v413_v46 }
  0xaa   : > { %1365 = vst [vmem:[#allocation2 + $0xf9] sm:$0xff] %v2438_v0  ;;  %1366 = vst [vmem:[#allocation2 + $0x109] sm:$0xff] %v2439_v21  ;;  %v2447_v21 = vld [vmem:[%s2911_s19 + $0x1e0] sm:$0xff]  ;;  %v3207_v0 = vld [vmem:[#allocation2 + $0x180] sm:$0xff] }
  0xab   : > { %1367 = vst [vmem:[#allocation2 + $0x111] sm:$0xff] %v2440_v63  ;;  %1368 = vst [vmem:[#allocation2 + $0x121] sm:$0xff] %v2441_v18  ;;  %v2448_v63 = vld [vmem:[%s2911_s19 + $0x1e8] sm:$0xff]  ;;  %v3216_v46 = vld [vmem:[#allocation2 + $0x182] sm:$0xff] }
  0xac   : > { %1369 = vst [vmem:[#allocation2 + $0x129] sm:$0xff] %v2442_v19  ;;  %1370 = vst [vmem:[#allocation2 + $0x139] sm:$0xff] %v2443_v20  ;;  %v3214_v20 = vld [vmem:[#allocation2 + $0x188] sm:$0xff] }
  0xad   : > { %1371 = vst [vmem:[#allocation2 + $0x141] sm:$0xff] %v2444_v24  ;;  %1372 = vst [vmem:[#allocation2 + $0x151] sm:$0xff] %v2445_v38  ;;  %v2449_v24 = vld [vmem:[%s2911_s19 + $0x1f0] sm:$0xff]  ;;  %v3219_v18 = vld [vmem:[#allocation2 + $0x18a] sm:$0xff] }
  0xae   : > { %1373 = vst [vmem:[#allocation2 + $0x159] sm:$0xff] %v2446_v36  ;;  %4453 = vst [vmem:[#allocation73_spill] sm:$0xff] %v3207_v0  ;;  %v2450_v19 = vld [vmem:[%s2911_s19 + $0x1f8] sm:$0xff]  ;;  %v262_v38 = vld [vmem:[%s2919_s11] sm:$0x7]  ;;  %s2633_s19 = sshll.u32 %s2725_s23, 4  ;;  %s2634_s19 = int_to_ptr.vmem [resolvable:$false] %s2633_s19 }
  0xaf   : > { %1374 = vst [vmem:[#allocation2 + $0x169] sm:$0xff] %v2447_v21  ;;  %1375 = vst [vmem:[#allocation2 + $0x171] sm:$0xff] %v2448_v63  ;;  %v263_v36 = vld [vmem:[%s2919_s11 + $0x4] sm:$0x7]  ;;  %v264_v0 = vld [vmem:[%s2919_s11 + $0x8] sm:$0x7]  ;;  %v3228_v17 = vrot.slane %v262_v38, %v414_v23  ;;  %v3230_v25 = vrot.slane %v262_v38, %v514_v47  ;;  %v3232_v21 = vrot.slane %v262_v38, %v614_v37  ;;  %p2636_p7 = scmp.lt.s32.totalorder %s4242_s4, %s2634_s19 }
  0xb0   : > { %4454 = vst [vmem:[#allocation74_spill] sm:$0xff] %v3214_v20  ;;  %4455 = vst [vmem:[#allocation75_spill] sm:$0xff] %v3216_v46  ;;  %v380_v63 = vld [vmem:[#allocation2] sm:$0xff]  ;;  %v3234_v62 = vrot.slane %v263_v36, %v414_v23  ;;  %v3240_v56 = vrot.slane %v263_v36, %v614_v37  ;;  %v3242_v26 = vrot.slane %v264_v0, %v414_v23  ;;  %v581_v38 = vld [vmem:[#allocation2 + $0xa] sm:$0xff]  ;;  %s2635_s28 = scalar_lea.vmem %s2634_s19, 16384 }
  0xb1   : > { %1376 = vst [vmem:[#allocation2 + $0x181] sm:$0xff] %v2449_v24  ;;  %4456 = vst [vmem:[#allocation76_spill] sm:$0xff] %v3219_v18  ;;  %v480_v20 = vld [vmem:[#allocation2 + $0x1] sm:$0xff]  ;;  %v416_v24 = vmul.f32 %v3228_v17, %v380_v63  ;;  %v3244_v15 = vrot.slane %v264_v0, %v514_v47  ;;  %v417_v14 = vmul.f32 0.0, %v3228_v17  ;;  %v517_v58 = vmul.f32 %v3230_v25, %v481_v16  ;;  %p2637_p9 = scmp.lt.s32.totalorder %s2635_s28, %s2629_s15 }
  0xb2   : > { %1377 = vst [vmem:[#allocation2 + $0x189] sm:$0xff] %v2450_v19  ;;  %v580_v46 = vld [vmem:[#allocation2 + $0x2] sm:$0xff]  ;;  %v516_v18 = vmul.f32 %v3230_v25, %v480_v20  ;;  %v3238_v19 = vrot.slane %v263_v36, %v514_v47  ;;  %v716_v63 = vmul.f32 %v3234_v62, %v3081_v48  ;;  %v3251_v20 = vrot.slane %v264_v0, %v614_v37 }
  0xb3   : > { %v448_v30 = vadd.f32 %v3226_v22, %v416_v24  ;;  %v616_v60 = vmul.f32 %v3232_v21, %v580_v46  ;;  %v449_v47 = vadd.f32 %v3226_v22, %v417_v14  ;;  %v617_v59 = vmul.f32 %v3232_v21, %v581_v38  ;;  %p2638_p11 = por %p2637_p9, %p2636_p7 }
  0xb4   : > { %v816_v23 = vmul.f32 %v3238_v19, %v2926_v1  ;;  %v916_v46 = vmul.f32 %v3240_v56, %v3097_v55  ;;  %v1017_v24 = vmul.f32 %v3242_v26, %v3029_v27  ;;  %v1117_v37 = vmul.f32 %v3244_v15, %v2932_v3 }
  0xb5   : > { %v548_v36 = vadd.f32 %v516_v18, %v448_v30  ;;  %v418_v16 = vmul.f32 %v3228_v17, %v3081_v48  ;;  %v549_v0 = vadd.f32 %v517_v58, %v449_v47  ;;  %v717_v18 = vmul.f32 %v3234_v62, %v3095_v54  ;;  %p2639_p5 = pnand %p2638_p11, %p2632_p6 }
  0xb6   : > { %v518_v14 = vmul.f32 %v3230_v25, %v2926_v1  ;;  %v1217_v38 = vmul.f32 %v3251_v20, %v3033_v29  ;;  %v817_v13 = vmul.f32 %v3238_v19, %v2929_v2  ;;  %v917_v57 = vmul.f32 %v3240_v56, %v3108_v61 }
  0xb7   : > { %v648_v30 = vadd.f32 %v616_v60, %v548_v36  ;;  %v450_v53 = vadd.f32 %v3226_v22, %v418_v16  ;;  %v649_v60 = vadd.f32 %v617_v59, %v549_v0  ;;  %v1018_v58 = vmul.f32 %v3242_v26, %v3031_v28 }
  0xb8   : > { %v1118_v36 = vmul.f32 %v3244_v15, %v2938_v4  ;;  %v618_v47 = vmul.f32 %v3232_v21, %v3097_v55  ;;  %v419_v12 = vmul.f32 %v3228_v17, %v3095_v54  ;;  %v519_v51 = vmul.f32 %v3230_v25, %v2929_v2 }
  0xb9   : > { %v748_v48 = vadd.f32 %v716_v63, %v648_v30  ;;  %v550_v1 = vadd.f32 %v518_v14, %v450_v53  ;;  %v749_v16 = vadd.f32 %v717_v18, %v649_v60  ;;  %v1218_v59 = vmul.f32 %v3251_v20, %v3038_v31 }
  0xba   : > { %v718_v63 = vmul.f32 %v3234_v62, %v3029_v27  ;;  %v818_v53 = vmul.f32 %v3238_v19, %v2932_v3  ;;  %v918_v55 = vmul.f32 %v3240_v56, %v3033_v29  ;;  %v451_v54 = vadd.f32 %v3226_v22, %v419_v12 }
  0xbb   : > { %v848_v52 = vadd.f32 %v816_v23, %v748_v48  ;;  %v650_v30 = vadd.f32 %v618_v47, %v550_v1  ;;  %v849_v14 = vadd.f32 %v817_v13, %v749_v16  ;;  %v1019_v2 = vmul.f32 %v3242_v26, %v3040_v32 }
  0xbc   : > { %v1119_v23 = vmul.f32 %v3244_v15, %v2941_v5  ;;  %v551_v48 = vadd.f32 %v519_v51, %v451_v54  ;;  %v619_v60 = vmul.f32 %v3232_v21, %v3108_v61  ;;  %v420_v1 = vmul.f32 %v3228_v17, %v3029_v27 }
  0xbd   : > { %v948_v0 = vadd.f32 %v916_v46, %v848_v52  ;;  %v750_v18 = vadd.f32 %v718_v63, %v650_v30  ;;  %v949_v11 = vadd.f32 %v917_v57, %v849_v14  ;;  %v719_v12 = vmul.f32 %v3234_v62, %v3031_v28 }
  0xbe   : > { %v520_v13 = vmul.f32 %v3230_v25, %v2932_v3  ;;  %v651_v46 = vadd.f32 %v619_v60, %v551_v48  ;;  %v819_v16 = vmul.f32 %v3238_v19, %v2938_v4  ;;  %v452_v51 = vadd.f32 %v3226_v22, %v420_v1 }
  0xbf   : > { %v1049_v47 = vadd.f32 %v1017_v24, %v948_v0  ;;  %v850_v52 = vadd.f32 %v818_v53, %v750_v18  ;;  %v1050_v61 = vadd.f32 %v1018_v58, %v949_v11  ;;  %v1219_v27 = vmul.f32 %v3251_v20, %v3044_v34 }
  0xc0   : > { %v919_v57 = vmul.f32 %v3240_v56, %v3038_v31  ;;  %v751_v30 = vadd.f32 %v719_v12, %v651_v46  ;;  %v552_v54 = vadd.f32 %v520_v13, %v452_v51  ;;  %v620_v3 = vmul.f32 %v3232_v21, %v3033_v29 }
  0xc1   : > { %v1149_v63 = vadd.f32 %v1117_v37, %v1049_v47  ;;  %v950_v24 = vadd.f32 %v918_v55, %v850_v52  ;;  %v1150_v0 = vadd.f32 %v1118_v36, %v1050_v61  ;;  %v720_v14 = vmul.f32 %v3234_v62, %v3040_v32 }
  0xc2   : > { %v820_v11 = vmul.f32 %v3238_v19, %v2941_v5  ;;  %v851_v58 = vadd.f32 %v819_v16, %v751_v30  ;;  %v652_v18 = vadd.f32 %v620_v3, %v552_v54  ;;  %v421_v48 = vmul.f32 %v3228_v17, %v3031_v28 }
  0xc3   : > { %v1249_v53 = vadd.f32 %v1217_v38, %v1149_v63  ;;  %v1051_v37 = vadd.f32 %v1019_v2, %v950_v24  ;;  %v1250_v29 = vadd.f32 %v1218_v59, %v1150_v0  ;;  %v1020_v38 = vmul.f32 %v3242_v26, %v3042_v33 }
  0xc4   : > { %v1120_v36 = vmul.f32 %v3244_v15, %v2944_v6  ;;  %v521_v55 = vmul.f32 %v3230_v25, %v2938_v4  ;;  %v951_v60 = vadd.f32 %v919_v57, %v851_v58  ;;  %v752_v28 = vadd.f32 %v720_v14, %v652_v18 }
  0xc5   : > { %1281 = vst [vmem:[%s3325_s6] sm:$0xff] %v1249_v53  ;;  %v1151_v2 = vadd.f32 %v1119_v23, %v1051_v37  ;;  %v453_v1 = vadd.f32 %v3226_v22, %v421_v48  ;;  %1282 = vst [vmem:[%s3325_s6 + $0x8] sm:$0xff] %v1250_v29  ;;  %v1220_v47 = vmul.f32 %v3251_v20, %v3046_v35 }
  0xc6   : > { %v920_v59 = vmul.f32 %v3240_v56, %v3044_v34  ;;  %v1021_v12 = vmul.f32 %v3242_v26, %v3058_v39  ;;  %v621_v13 = vmul.f32 %v3232_v21, %v3038_v31  ;;  %v1052_v23 = vadd.f32 %v1020_v38, %v951_v60 }
  0xc7   : > { %v1251_v4 = vadd.f32 %v1219_v27, %v1151_v2  ;;  %v852_v52 = vadd.f32 %v820_v11, %v752_v28  ;;  %v553_v46 = vadd.f32 %v521_v55, %v453_v1  ;;  %v1121_v16 = vmul.f32 %v3244_v15, %v2950_v7 }
  0xc8   : > { %v721_v51 = vmul.f32 %v3234_v62, %v3042_v33  ;;  %v422_v63 = vmul.f32 %v3228_v17, %v3040_v32  ;;  %v522_v61 = vmul.f32 %v3230_v25, %v2941_v5  ;;  %v1152_v57 = vadd.f32 %v1120_v36, %v1052_v23 }
  0xc9   : > { %1283 = vst [vmem:[%s3325_s6 + $0x10] sm:$0xff] %v1251_v4  ;;  %v952_v31 = vadd.f32 %v920_v59, %v852_v52  ;;  %v653_v27 = vadd.f32 %v621_v13, %v553_v46  ;;  %v821_v24 = vmul.f32 %v3238_v19, %v2944_v6  ;;  %v1221_v30 = vmul.f32 %v3251_v20, %v3062_v41 }
  0xca   : > { %v454_v54 = vadd.f32 %v3226_v22, %v422_v63  ;;  %v1252_v3 = vadd.f32 %v1220_v47, %v1152_v57  ;;  %v921_v32 = vmul.f32 %v3240_v56, %v3046_v35  ;;  %v622_v14 = vmul.f32 %v3232_v21, %v3044_v34 }
  0xcb   : > { %v1053_v53 = vadd.f32 %v1021_v12, %v952_v31  ;;  %v753_v0 = vadd.f32 %v721_v51, %v653_v27  ;;  %v423_v11 = vmul.f32 %v3228_v17, %v3042_v33  ;;  %v523_v37 = vmul.f32 %v3230_v25, %v2944_v6 }
  0xcc   : > { %v554_v5 = vadd.f32 %v522_v61, %v454_v54  ;;  %1284 = vst [vmem:[%s3325_s6 + $0x18] sm:$0xff] %v1252_v3  ;;  %v1022_v48 = vmul.f32 %v3242_v26, %v3060_v40  ;;  %v1122_v29 = vmul.f32 %v3244_v15, %v2953_v8  ;;  %v722_v34 = vmul.f32 %v3234_v62, %v3058_v39 }
  0xcd   : > { %v1153_v58 = vadd.f32 %v1121_v16, %v1053_v53  ;;  %v853_v18 = vadd.f32 %v821_v24, %v753_v0  ;;  %v822_v33 = vmul.f32 %v3238_v19, %v2950_v7  ;;  %v455_v36 = vadd.f32 %v3226_v22, %v423_v11 }
  0xce   : > { %v654_v38 = vadd.f32 %v622_v14, %v554_v5  ;;  %v1222_v2 = vmul.f32 %v3251_v20, %v3064_v42  ;;  %v922_v60 = vmul.f32 %v3240_v56, %v3062_v41  ;;  %v623_v47 = vmul.f32 %v3232_v21, %v3046_v35 }
  0xcf   : > { %v1253_v6 = vadd.f32 %v1221_v30, %v1153_v58  ;;  %v953_v55 = vadd.f32 %v921_v32, %v853_v18  ;;  %v555_v1 = vadd.f32 %v523_v37, %v455_v36  ;;  %v424_v59 = vmul.f32 %v3228_v17, %v3058_v39 }
  0xd0   : > { %v754_v28 = vadd.f32 %v722_v34, %v654_v38  ;;  %v1023_v13 = vmul.f32 %v3242_v26, %v3066_v43  ;;  %v723_v4 = vmul.f32 %v3234_v62, %v3060_v40  ;;  %v524_v23 = vmul.f32 %v3230_v25, %v2950_v7 }
  0xd1   : > { %1285 = vst [vmem:[%s3325_s6 + $0x20] sm:$0xff] %v1253_v6  ;;  %v1054_v12 = vadd.f32 %v1022_v48, %v953_v55  ;;  %v655_v46 = vadd.f32 %v623_v47, %v555_v1  ;;  %v823_v16 = vmul.f32 %v3238_v19, %v2953_v8  ;;  %v456_v35 = vadd.f32 %v3226_v22, %v424_v59  ;;  %v4458_v59 = vld [vmem:[#allocation35_spill] sm:$0xff] }
  0xd2   : > { %v854_v52 = vadd.f32 %v822_v33, %v754_v28  ;;  %v1123_v39 = vmul.f32 %v3244_v15, %v2956_v9  ;;  %v1223_v63 = vmul.f32 %v3251_v20, %v3070_v45  ;;  %v923_v61 = vmul.f32 %v3240_v56, %v3064_v42 }
  0xd3   : > { %v1154_v51 = vadd.f32 %v1122_v29, %v1054_v12  ;;  %v755_v7 = vadd.f32 %v723_v4, %v655_v46  ;;  %v556_v31 = vadd.f32 %v524_v23, %v456_v35  ;;  %v624_v27 = vmul.f32 %v3232_v21, %v3062_v41 }
  0xd4   : > { %v954_v57 = vadd.f32 %v922_v60, %v854_v52  ;;  %v724_v30 = vmul.f32 %v3234_v62, %v3066_v43  ;;  %v425_v54 = vmul.f32 %v3228_v17, %v3060_v40  ;;  %v525_v3 = vmul.f32 %v3230_v25, %v2953_v8 }
  0xd5   : > { %v1254_v24 = vadd.f32 %v1222_v2, %v1154_v51  ;;  %v855_v0 = vadd.f32 %v823_v16, %v755_v7  ;;  %v656_v32 = vadd.f32 %v624_v27, %v556_v31  ;;  %v824_v5 = vmul.f32 %v3238_v19, %v2956_v9  ;;  %v4459_v31 = vld [vmem:[#allocation34_spill] sm:$0xff]  ;;  %v4460_v27 = vld [vmem:[#allocation13_spill] sm:$0xff] }
  0xd6   : > { %v1055_v53 = vadd.f32 %v1023_v13, %v954_v57  ;;  %v1024_v41 = vmul.f32 %v3242_v26, %v3068_v44  ;;  %v1124_v14 = vmul.f32 %v3244_v15, %v2962_v10  ;;  %v1224_v11 = vmul.f32 %v3251_v20, %v3083_v49 }
  0xd7   : > { %1286 = vst [vmem:[%s3325_s6 + $0x28] sm:$0xff] %v1254_v24  ;;  %v457_v40 = vadd.f32 %v3226_v22, %v425_v54  ;;  %v955_v8 = vadd.f32 %v923_v61, %v855_v0  ;;  %v756_v58 = vadd.f32 %v724_v30, %v656_v32  ;;  %v924_v18 = vmul.f32 %v3240_v56, %v3070_v45  ;;  %v4461_v30 = vld [vmem:[#allocation36_spill] sm:$0xff] }
  0xd8   : > { %v1155_v37 = vadd.f32 %v1123_v39, %v1055_v53  ;;  %v625_v29 = vmul.f32 %v3232_v21, %v3064_v42  ;;  %v426_v38 = vmul.f32 %v3228_v17, %v3066_v43  ;;  %v526_v34 = vmul.f32 %v3230_v25, %v2956_v9  ;;  %v4457_v9 = vld [vmem:[#allocation12_spill] sm:$0xff] }
  0xd9   : > { %v557_v48 = vadd.f32 %v525_v3, %v457_v40  ;;  %v1056_v36 = vadd.f32 %v1024_v41, %v955_v8  ;;  %v856_v6 = vadd.f32 %v824_v5, %v756_v58  ;;  %v1025_v55 = vmul.f32 %v3242_v26, %v3085_v50  ;;  %v4462_v40 = vld [vmem:[#allocation37_spill] sm:$0xff] }
  0xda   : > { %v1255_v33 = vadd.f32 %v1223_v63, %v1155_v37  ;;  %v725_v60 = vmul.f32 %v3234_v62, %v3068_v44  ;;  %v825_v28 = vmul.f32 %v3238_v19, %v2962_v10  ;;  %v458_v42 = vadd.f32 %v3226_v22, %v426_v38  ;;  %v4463_v38 = vld [vmem:[#allocation14_spill] sm:$0xff] }
  0xdb   : > { %v657_v2 = vadd.f32 %v625_v29, %v557_v48  ;;  %v1156_v43 = vadd.f32 %v1124_v14, %v1056_v36  ;;  %v956_v1 = vadd.f32 %v924_v18, %v856_v6  ;;  %v1125_v47 = vmul.f32 %v3244_v15, %v4457_v9 }
  0xdc   : > { %1287 = vst [vmem:[%s3325_s6 + $0x30] sm:$0xff] %v1255_v33  ;;  %v1225_v12 = vmul.f32 %v3251_v20, %v4458_v59  ;;  %v925_v4 = vmul.f32 %v3240_v56, %v3083_v49  ;;  %v558_v23 = vadd.f32 %v526_v34, %v458_v42  ;;  %v626_v52 = vmul.f32 %v3232_v21, %v3070_v45  ;;  %v4464_v33 = vld [vmem:[#allocation39_spill] sm:$0xff] }
  0xdd   : > { %v757_v13 = vadd.f32 %v725_v60, %v657_v2  ;;  %v1256_v46 = vadd.f32 %v1224_v11, %v1156_v43  ;;  %v1057_v16 = vadd.f32 %v1025_v55, %v956_v1  ;;  %v427_v35 = vmul.f32 %v3228_v17, %v3068_v44 }
  0xde   : > { %v527_v51 = vmul.f32 %v3230_v25, %v2962_v10  ;;  %v658_v63 = vadd.f32 %v626_v52, %v558_v23  ;;  %v726_v61 = vmul.f32 %v3234_v62, %v3085_v50  ;;  %v826_v57 = vmul.f32 %v3238_v19, %v4457_v9  ;;  %v4465_v23 = vld [vmem:[#allocation38_spill] sm:$0xff]  ;;  %v4466_v52 = vld [vmem:[#allocation15_spill] sm:$0xff] }
  0xdf   : > { %v857_v39 = vadd.f32 %v825_v28, %v757_v13  ;;  %1288 = vst [vmem:[%s3325_s6 + $0x38] sm:$0xff] %v1256_v46  ;;  %v1157_v7 = vadd.f32 %v1125_v47, %v1057_v16  ;;  %v1026_v45 = vmul.f32 %v3242_v26, %v4459_v31  ;;  %v1126_v44 = vmul.f32 %v3244_v15, %v4460_v27 }
  0xe0   : > { %v459_v24 = vadd.f32 %v3226_v22, %v427_v35  ;;  %v1226_v54 = vmul.f32 %v3251_v20, %v4461_v30  ;;  %v758_v3 = vadd.f32 %v726_v61, %v658_v63  ;;  %v926_v53 = vmul.f32 %v3240_v56, %v4458_v59 }
  0xe1   : > { %v957_v10 = vadd.f32 %v925_v4, %v857_v39  ;;  %v1257_v0 = vadd.f32 %v1225_v12, %v1157_v7  ;;  %v627_v5 = vmul.f32 %v3232_v21, %v3083_v49  ;;  %v428_v41 = vmul.f32 %v3228_v17, %v3085_v50 }
  0xe2   : > { %v559_v32 = vadd.f32 %v527_v51, %v459_v24  ;;  %v858_v11 = vadd.f32 %v826_v57, %v758_v3  ;;  %v1027_v37 = vmul.f32 %v3242_v26, %v4462_v40  ;;  %v528_v8 = vmul.f32 %v3230_v25, %v4457_v9  ;;  %v4467_v51 = vld [vmem:[#allocation40_spill] sm:$0xff]  ;;  %v4468_v24 = vld [vmem:[#allocation41_spill] sm:$0xff] }
  0xe3   : > { %v1058_v14 = vadd.f32 %v1026_v45, %v957_v10  ;;  %1289 = vst [vmem:[%s3325_s6 + $0x40] sm:$0xff] %v1257_v0  ;;  %v727_v18 = vmul.f32 %v3234_v62, %v4459_v31  ;;  %v827_v48 = vmul.f32 %v3238_v19, %v4460_v27  ;;  %v460_v49 = vadd.f32 %v3226_v22, %v428_v41  ;;  %v4469_v41 = vld [vmem:[#allocation16_spill] sm:$0xff] }
  0xe4   : > { %v659_v58 = vadd.f32 %v627_v5, %v559_v32  ;;  %v958_v50 = vadd.f32 %v926_v53, %v858_v11  ;;  %v1127_v34 = vmul.f32 %v3244_v15, %v4463_v38  ;;  %v1227_v36 = vmul.f32 %v3251_v20, %v4464_v33  ;;  %v4470_v11 = vld [vmem:[#allocation43_spill] sm:$0xff] }
  0xe5   : > { %v1158_v29 = vadd.f32 %v1126_v44, %v1058_v14  ;;  %v927_v55 = vmul.f32 %v3240_v56, %v4461_v30  ;;  %v560_v2 = vadd.f32 %v528_v8, %v460_v49  ;;  %v628_v60 = vmul.f32 %v3232_v21, %v4458_v59 }
  0xe6   : > { %v759_v6 = vadd.f32 %v727_v18, %v659_v58  ;;  %v1059_v42 = vadd.f32 %v1027_v37, %v958_v50  ;;  %v429_v43 = vmul.f32 %v3228_v17, %v4459_v31  ;;  %v529_v1 = vmul.f32 %v3230_v25, %v4460_v27 }
  0xe7   : > { %v1258_v28 = vadd.f32 %v1226_v54, %v1158_v29  ;;  %v660_v47 = vadd.f32 %v628_v60, %v560_v2  ;;  %v728_v12 = vmul.f32 %v3234_v62, %v4462_v40  ;;  %v828_v13 = vmul.f32 %v3238_v19, %v4463_v38  ;;  %v4471_v2 = vld [vmem:[#allocation42_spill] sm:$0xff]  ;;  %v4472_v60 = vld [vmem:[#allocation17_spill] sm:$0xff] }
  0xe8   : > { %v859_v9 = vadd.f32 %v827_v48, %v759_v6  ;;  %v1159_v4 = vadd.f32 %v1127_v34, %v1059_v42  ;;  %v1028_v59 = vmul.f32 %v3242_v26, %v4465_v23  ;;  %v1128_v46 = vmul.f32 %v3244_v15, %v4466_v52 }
  0xe9   : > { %1290 = vst [vmem:[%s3325_s6 + $0x48] sm:$0xff] %v1258_v28  ;;  %v461_v16 = vadd.f32 %v3226_v22, %v429_v43  ;;  %v1228_v39 = vmul.f32 %v3251_v20, %v4467_v51  ;;  %v760_v63 = vadd.f32 %v728_v12, %v660_v47  ;;  %v928_v61 = vmul.f32 %v3240_v56, %v4464_v33 }
  0xea   : > { %v959_v35 = vadd.f32 %v927_v55, %v859_v9  ;;  %v1259_v57 = vadd.f32 %v1227_v36, %v1159_v4  ;;  %v629_v31 = vmul.f32 %v3232_v21, %v4461_v30  ;;  %v430_v45 = vmul.f32 %v3228_v17, %v4462_v40 }
  0xeb   : > { %v561_v7 = vadd.f32 %v529_v1, %v461_v16  ;;  %v860_v44 = vadd.f32 %v828_v13, %v760_v63  ;;  %v1029_v10 = vmul.f32 %v3242_v26, %v4468_v24  ;;  %v530_v54 = vmul.f32 %v3230_v25, %v4463_v38  ;;  %v4473_v1 = vld [vmem:[#allocation44_spill] sm:$0xff]  ;;  %v4474_v16 = vld [vmem:[#allocation45_spill] sm:$0xff] }
  0xec   : > { %v1060_v27 = vadd.f32 %v1028_v59, %v959_v35  ;;  %1291 = vst [vmem:[%s3325_s6 + $0x50] sm:$0xff] %v1259_v57  ;;  %v729_v53 = vmul.f32 %v3234_v62, %v4465_v23  ;;  %v829_v0 = vmul.f32 %v3238_v19, %v4466_v52  ;;  %v462_v30 = vadd.f32 %v3226_v22, %v430_v45  ;;  %v4475_v45 = vld [vmem:[#allocation18_spill] sm:$0xff] }
  0xed   : > { %v661_v3 = vadd.f32 %v629_v31, %v561_v7  ;;  %v960_v5 = vadd.f32 %v928_v61, %v860_v44  ;;  %v1129_v14 = vmul.f32 %v3244_v15, %v4469_v41  ;;  %v1229_v40 = vmul.f32 %v3251_v20, %v4470_v11  ;;  %v4476_v44 = vld [vmem:[#allocation47_spill] sm:$0xff] }
  0xee   : > { %v1160_v32 = vadd.f32 %v1128_v46, %v1060_v27  ;;  %v929_v8 = vmul.f32 %v3240_v56, %v4467_v51  ;;  %v562_v58 = vadd.f32 %v530_v54, %v462_v30  ;;  %v630_v18 = vmul.f32 %v3232_v21, %v4464_v33 }
  0xef   : > { %v761_v37 = vadd.f32 %v729_v53, %v661_v3  ;;  %v1061_v49 = vadd.f32 %v1029_v10, %v960_v5  ;;  %v431_v29 = vmul.f32 %v3228_v17, %v4465_v23  ;;  %v531_v50 = vmul.f32 %v3230_v25, %v4466_v52 }
  0xf0   : > { %v1260_v48 = vadd.f32 %v1228_v39, %v1160_v32  ;;  %v662_v34 = vadd.f32 %v630_v18, %v562_v58  ;;  %v730_v36 = vmul.f32 %v3234_v62, %v4468_v24  ;;  %v830_v6 = vmul.f32 %v3238_v19, %v4469_v41  ;;  %v4477_v58 = vld [vmem:[#allocation46_spill] sm:$0xff]  ;;  %v4478_v18 = vld [vmem:[#allocation19_spill] sm:$0xff] }
  0xf1   : > { %v861_v38 = vadd.f32 %v829_v0, %v761_v37  ;;  %v1161_v55 = vadd.f32 %v1129_v14, %v1061_v49  ;;  %v1030_v33 = vmul.f32 %v3242_v26, %v4471_v2  ;;  %v1130_v28 = vmul.f32 %v3244_v15, %v4472_v60 }
  0xf2   : > { %1292 = vst [vmem:[%s3325_s6 + $0x58] sm:$0xff] %v1260_v48  ;;  %v463_v42 = vadd.f32 %v3226_v22, %v431_v29  ;;  %v1230_v9 = vmul.f32 %v3251_v20, %v4473_v1  ;;  %v762_v47 = vadd.f32 %v730_v36, %v662_v34  ;;  %v930_v12 = vmul.f32 %v3240_v56, %v4470_v11 }
  0xf3   : > { %v961_v43 = vadd.f32 %v929_v8, %v861_v38  ;;  %v1261_v13 = vadd.f32 %v1229_v40, %v1161_v55  ;;  %v631_v23 = vmul.f32 %v3232_v21, %v4467_v51  ;;  %v432_v59 = vmul.f32 %v3228_v17, %v4468_v24 }
  0xf4   : > { %v563_v4 = vadd.f32 %v531_v50, %v463_v42  ;;  %v862_v46 = vadd.f32 %v830_v6, %v762_v47  ;;  %v1031_v35 = vmul.f32 %v3242_v26, %v4474_v16  ;;  %v532_v39 = vmul.f32 %v3230_v25, %v4469_v41  ;;  %v4479_v50 = vld [vmem:[#allocation48_spill] sm:$0xff]  ;;  %v4480_v42 = vld [vmem:[#allocation49_spill] sm:$0xff] }
  0xf5   : > { %v1062_v52 = vadd.f32 %v1030_v33, %v961_v43  ;;  %1293 = vst [vmem:[%s3325_s6 + $0x60] sm:$0xff] %v1261_v13  ;;  %v731_v61 = vmul.f32 %v3234_v62, %v4471_v2  ;;  %v831_v57 = vmul.f32 %v3238_v19, %v4472_v60  ;;  %v464_v51 = vadd.f32 %v3226_v22, %v432_v59  ;;  %v4481_v59 = vld [vmem:[#allocation20_spill] sm:$0xff] }
  0xf6   : > { %v663_v63 = vadd.f32 %v631_v23, %v563_v4  ;;  %v962_v31 = vadd.f32 %v930_v12, %v862_v46  ;;  %v1131_v27 = vmul.f32 %v3244_v15, %v4475_v45  ;;  %v1231_v24 = vmul.f32 %v3251_v20, %v4476_v44  ;;  %v4482_v46 = vld [vmem:[#allocation51_spill] sm:$0xff] }
  0xf7   : > { %v1162_v7 = vadd.f32 %v1130_v28, %v1062_v52  ;;  %v931_v54 = vmul.f32 %v3240_v56, %v4473_v1  ;;  %v564_v3 = vadd.f32 %v532_v39, %v464_v51  ;;  %v632_v53 = vmul.f32 %v3232_v21, %v4470_v11 }
  0xf8   : > { %v763_v10 = vadd.f32 %v731_v61, %v663_v63  ;;  %v1063_v30 = vadd.f32 %v1031_v35, %v962_v31  ;;  %v433_v32 = vmul.f32 %v3228_v17, %v4471_v2  ;;  %v533_v5 = vmul.f32 %v3230_v25, %v4472_v60 }
  0xf9   : > { %v1262_v0 = vadd.f32 %v1230_v9, %v1162_v7  ;;  %v664_v14 = vadd.f32 %v632_v53, %v564_v3  ;;  %v732_v40 = vmul.f32 %v3234_v62, %v4474_v16  ;;  %v832_v37 = vmul.f32 %v3238_v19, %v4475_v45  ;;  %v4483_v3 = vld [vmem:[#allocation50_spill] sm:$0xff]  ;;  %v4484_v53 = vld [vmem:[#allocation21_spill] sm:$0xff] }
  0xfa   : > { %v863_v41 = vadd.f32 %v831_v57, %v763_v10  ;;  %v1163_v8 = vadd.f32 %v1131_v27, %v1063_v30  ;;  %v1032_v11 = vmul.f32 %v3242_v26, %v4477_v58  ;;  %v1132_v48 = vmul.f32 %v3244_v15, %v4478_v18 }
  0xfb   : > { %1294 = vst [vmem:[%s3325_s6 + $0x68] sm:$0xff] %v1262_v0  ;;  %v465_v49 = vadd.f32 %v3226_v22, %v433_v32  ;;  %v1232_v38 = vmul.f32 %v3251_v20, %v4479_v50  ;;  %v764_v34 = vadd.f32 %v732_v40, %v664_v14  ;;  %v932_v36 = vmul.f32 %v3240_v56, %v4476_v44 }
  0xfc   : > { %v963_v29 = vadd.f32 %v931_v54, %v863_v41  ;;  %v1263_v6 = vadd.f32 %v1231_v24, %v1163_v8  ;;  %v633_v2 = vmul.f32 %v3232_v21, %v4473_v1  ;;  %v434_v33 = vmul.f32 %v3228_v17, %v4474_v16 }
  0xfd   : > { %v565_v55 = vadd.f32 %v533_v5, %v465_v49  ;;  %v864_v28 = vadd.f32 %v832_v37, %v764_v34  ;;  %v1033_v43 = vmul.f32 %v3242_v26, %v4480_v42  ;;  %v534_v9 = vmul.f32 %v3230_v25, %v4475_v45  ;;  %v4485_v5 = vld [vmem:[#allocation52_spill] sm:$0xff]  ;;  %v4486_v49 = vld [vmem:[#allocation53_spill] sm:$0xff] }
  0xfe   : > { %v1064_v60 = vadd.f32 %v1032_v11, %v963_v29  ;;  %1295 = vst [vmem:[%s3325_s6 + $0x70] sm:$0xff] %v1263_v6  ;;  %v733_v12 = vmul.f32 %v3234_v62, %v4477_v58  ;;  %v833_v13 = vmul.f32 %v3238_v19, %v4478_v18  ;;  %v466_v1 = vadd.f32 %v3226_v22, %v434_v33  ;;  %v4487_v33 = vld [vmem:[#allocation22_spill] sm:$0xff] }
  0xff   : > { %v665_v47 = vadd.f32 %v633_v2, %v565_v55  ;;  %v964_v23 = vadd.f32 %v932_v36, %v864_v28  ;;  %v1133_v52 = vmul.f32 %v3244_v15, %v4481_v59  ;;  %v1233_v16 = vmul.f32 %v3251_v20, %v4482_v46  ;;  %v4488_v28 = vld [vmem:[#allocation55_spill] sm:$0xff] }
 0x100   : > { %v1164_v4 = vadd.f32 %v1132_v48, %v1064_v60  ;;  %v933_v39 = vmul.f32 %v3240_v56, %v4479_v50  ;;  %v566_v63 = vadd.f32 %v534_v9, %v466_v1  ;;  %v634_v61 = vmul.f32 %v3232_v21, %v4476_v44 }
 0x101   : > { %v765_v35 = vadd.f32 %v733_v12, %v665_v47  ;;  %v1065_v51 = vadd.f32 %v1033_v43, %v964_v23  ;;  %v435_v7 = vmul.f32 %v3228_v17, %v4477_v58  ;;  %v535_v31 = vmul.f32 %v3230_v25, %v4478_v18 }
 0x102   : > { %v1264_v57 = vadd.f32 %v1232_v38, %v1164_v4  ;;  %v666_v27 = vadd.f32 %v634_v61, %v566_v63  ;;  %v734_v24 = vmul.f32 %v3234_v62, %v4480_v42  ;;  %v834_v10 = vmul.f32 %v3238_v19, %v4481_v59  ;;  %v4489_v63 = vld [vmem:[#allocation54_spill] sm:$0xff]  ;;  %v4490_v61 = vld [vmem:[#allocation23_spill] sm:$0xff] }
 0x103   : > { %v865_v45 = vadd.f32 %v833_v13, %v765_v35  ;;  %v1165_v54 = vadd.f32 %v1133_v52, %v1065_v51  ;;  %v1034_v44 = vmul.f32 %v3242_v26, %v4483_v3  ;;  %v1134_v0 = vmul.f32 %v3244_v15, %v4484_v53 }
 0x104   : > { %1296 = vst [vmem:[%s3325_s6 + $0x78] sm:$0xff] %v1264_v57  ;;  %v467_v30 = vadd.f32 %v3226_v22, %v435_v7  ;;  %v1234_v41 = vmul.f32 %v3251_v20, %v4485_v5  ;;  %v766_v14 = vadd.f32 %v734_v24, %v666_v27  ;;  %v934_v40 = vmul.f32 %v3240_v56, %v4482_v46 }
 0x105   : > { %v965_v32 = vadd.f32 %v933_v39, %v865_v45  ;;  %v1265_v37 = vadd.f32 %v1233_v16, %v1165_v54  ;;  %v635_v58 = vmul.f32 %v3232_v21, %v4479_v50  ;;  %v436_v11 = vmul.f32 %v3228_v17, %v4480_v42 }
 0x106   : > { %v567_v8 = vadd.f32 %v535_v31, %v467_v30  ;;  %v866_v48 = vadd.f32 %v834_v10, %v766_v14  ;;  %v1035_v29 = vmul.f32 %v3242_v26, %v4486_v49  ;;  %v536_v38 = vmul.f32 %v3230_v25, %v4481_v59  ;;  %v4491_v31 = vld [vmem:[#allocation56_spill] sm:$0xff]  ;;  %v4492_v30 = vld [vmem:[#allocation57_spill] sm:$0xff] }
 0x107   : > { %v1066_v18 = vadd.f32 %v1034_v44, %v965_v32  ;;  %1297 = vst [vmem:[%s3325_s6 + $0x80] sm:$0xff] %v1265_v37  ;;  %v735_v36 = vmul.f32 %v3234_v62, %v4483_v3  ;;  %v835_v6 = vmul.f32 %v3238_v19, %v4484_v53  ;;  %v468_v50 = vadd.f32 %v3226_v22, %v436_v11  ;;  %v4493_v11 = vld [vmem:[#allocation24_spill] sm:$0xff] }
 0x108   : > { %v667_v34 = vadd.f32 %v635_v58, %v567_v8  ;;  %v966_v2 = vadd.f32 %v934_v40, %v866_v48  ;;  %v1135_v60 = vmul.f32 %v3244_v15, %v4487_v33  ;;  %v1235_v42 = vmul.f32 %v3251_v20, %v4488_v28  ;;  %v4494_v48 = vld [vmem:[#allocation59_spill] sm:$0xff] }
 0x109   : > { %v1166_v55 = vadd.f32 %v1134_v0, %v1066_v18  ;;  %v935_v9 = vmul.f32 %v3240_v56, %v4485_v5  ;;  %v568_v47 = vadd.f32 %v536_v38, %v468_v50  ;;  %v636_v12 = vmul.f32 %v3232_v21, %v4482_v46 }
 0x10a   : > { %v767_v43 = vadd.f32 %v735_v36, %v667_v34  ;;  %v1067_v1 = vadd.f32 %v1035_v29, %v966_v2  ;;  %v437_v4 = vmul.f32 %v3228_v17, %v4483_v3  ;;  %v537_v23 = vmul.f32 %v3230_v25, %v4484_v53 }
 0x10b   : > { %v1266_v13 = vadd.f32 %v1234_v41, %v1166_v55  ;;  %v668_v52 = vadd.f32 %v636_v12, %v568_v47  ;;  %v736_v16 = vmul.f32 %v3234_v62, %v4486_v49  ;;  %v836_v35 = vmul.f32 %v3238_v19, %v4487_v33  ;;  %v4495_v47 = vld [vmem:[#allocation58_spill] sm:$0xff]  ;;  %v4496_v12 = vld [vmem:[#allocation25_spill] sm:$0xff] }
 0x10c   : > { %v867_v59 = vadd.f32 %v835_v6, %v767_v43  ;;  %v1167_v39 = vadd.f32 %v1135_v60, %v1067_v1  ;;  %v1036_v46 = vmul.f32 %v3242_v26, %v4489_v63  ;;  %v1136_v57 = vmul.f32 %v3244_v15, %v4490_v61 }
 0x10d   : > { %1298 = vst [vmem:[%s3325_s6 + $0x88] sm:$0xff] %v1266_v13  ;;  %v469_v51 = vadd.f32 %v3226_v22, %v437_v4  ;;  %v1236_v45 = vmul.f32 %v3251_v20, %v4491_v31  ;;  %v768_v27 = vadd.f32 %v736_v16, %v668_v52  ;;  %v936_v24 = vmul.f32 %v3240_v56, %v4488_v28 }
 0x10e   : > { %v967_v7 = vadd.f32 %v935_v9, %v867_v59  ;;  %v1267_v10 = vadd.f32 %v1235_v42, %v1167_v39  ;;  %v637_v3 = vmul.f32 %v3232_v21, %v4485_v5  ;;  %v438_v44 = vmul.f32 %v3228_v17, %v4486_v49 }
 0x10f   : > { %v569_v54 = vadd.f32 %v537_v23, %v469_v51  ;;  %v868_v0 = vadd.f32 %v836_v35, %v768_v27  ;;  %v1037_v32 = vmul.f32 %v3242_v26, %v4492_v30  ;;  %v538_v41 = vmul.f32 %v3230_v25, %v4487_v33  ;;  %v4497_v23 = vld [vmem:[#allocation60_spill] sm:$0xff]  ;;  %v4498_v51 = vld [vmem:[#allocation61_spill] sm:$0xff] }
 0x110   : > { %v1068_v53 = vadd.f32 %v1036_v46, %v967_v7  ;;  %1299 = vst [vmem:[%s3325_s6 + $0x90] sm:$0xff] %v1267_v10  ;;  %v737_v40 = vmul.f32 %v3234_v62, %v4489_v63  ;;  %v837_v37 = vmul.f32 %v3238_v19, %v4490_v61  ;;  %v470_v5 = vadd.f32 %v3226_v22, %v438_v44  ;;  %v4499_v44 = vld [vmem:[#allocation26_spill] sm:$0xff] }
 0x111   : > { %v669_v14 = vadd.f32 %v637_v3, %v569_v54  ;;  %v968_v58 = vadd.f32 %v936_v24, %v868_v0  ;;  %v1137_v18 = vmul.f32 %v3244_v15, %v4493_v11  ;;  %v1237_v49 = vmul.f32 %v3251_v20, %v4494_v48  ;;  %v4500_v0 = vld [vmem:[#allocation63_spill] sm:$0xff] }
 0x112   : > { %v1168_v8 = vadd.f32 %v1136_v57, %v1068_v53  ;;  %v937_v38 = vmul.f32 %v3240_v56, %v4491_v31  ;;  %v570_v34 = vadd.f32 %v538_v41, %v470_v5  ;;  %v638_v36 = vmul.f32 %v3232_v21, %v4488_v28 }
 0x113   : > { %v769_v29 = vadd.f32 %v737_v40, %v669_v14  ;;  %v1069_v50 = vadd.f32 %v1037_v32, %v968_v58  ;;  %v439_v55 = vmul.f32 %v3228_v17, %v4489_v63  ;;  %v539_v2 = vmul.f32 %v3230_v25, %v4490_v61 }
 0x114   : > { %v1268_v6 = vadd.f32 %v1236_v45, %v1168_v8  ;;  %v670_v60 = vadd.f32 %v638_v36, %v570_v34  ;;  %v738_v42 = vmul.f32 %v3234_v62, %v4492_v30  ;;  %v838_v43 = vmul.f32 %v3238_v19, %v4493_v11  ;;  %v4501_v34 = vld [vmem:[#allocation62_spill] sm:$0xff]  ;;  %v4502_v36 = vld [vmem:[#allocation27_spill] sm:$0xff] }
 0x115   : > { %v869_v33 = vadd.f32 %v837_v37, %v769_v29  ;;  %v1169_v9 = vadd.f32 %v1137_v18, %v1069_v50  ;;  %v1038_v28 = vmul.f32 %v3242_v26, %v4495_v47  ;;  %v1138_v13 = vmul.f32 %v3244_v15, %v4496_v12 }
 0x116   : > { %1300 = vst [vmem:[%s3325_s6 + $0x98] sm:$0xff] %v1268_v6  ;;  %v471_v1 = vadd.f32 %v3226_v22, %v439_v55  ;;  %v1238_v59 = vmul.f32 %v3251_v20, %v4497_v23  ;;  %v770_v52 = vadd.f32 %v738_v42, %v670_v60  ;;  %v938_v16 = vmul.f32 %v3240_v56, %v4494_v48 }
 0x117   : > { %v969_v4 = vadd.f32 %v937_v38, %v869_v33  ;;  %v1269_v35 = vadd.f32 %v1237_v49, %v1169_v9  ;;  %v639_v63 = vmul.f32 %v3232_v21, %v4491_v31  ;;  %v440_v46 = vmul.f32 %v3228_v17, %v4492_v30 }
 0x118   : > { %v571_v39 = vadd.f32 %v539_v2, %v471_v1  ;;  %v870_v57 = vadd.f32 %v838_v43, %v770_v52  ;;  %v1039_v7 = vmul.f32 %v3242_v26, %v4498_v51  ;;  %v540_v45 = vmul.f32 %v3230_v25, %v4493_v11  ;;  %v4503_v2 = vld [vmem:[#allocation64_spill] sm:$0xff]  ;;  %v4504_v1 = vld [vmem:[#allocation65_spill] sm:$0xff] }
 0x119   : > { %v1070_v61 = vadd.f32 %v1038_v28, %v969_v4  ;;  %1301 = vst [vmem:[%s3325_s6 + $0xa0] sm:$0xff] %v1269_v35  ;;  %v739_v24 = vmul.f32 %v3234_v62, %v4495_v47  ;;  %v839_v10 = vmul.f32 %v3238_v19, %v4496_v12  ;;  %v472_v31 = vadd.f32 %v3226_v22, %v440_v46  ;;  %v4505_v46 = vld [vmem:[#allocation28_spill] sm:$0xff] }
 0x11a   : > { %v671_v27 = vadd.f32 %v639_v63, %v571_v39  ;;  %v970_v3 = vadd.f32 %v938_v16, %v870_v57  ;;  %v1139_v53 = vmul.f32 %v3244_v15, %v4499_v44  ;;  %v1239_v30 = vmul.f32 %v3251_v20, %v4500_v0  ;;  %v4506_v57 = vld [vmem:[#allocation67_spill] sm:$0xff] }
 0x11b   : > { %v1170_v54 = vadd.f32 %v1138_v13, %v1070_v61  ;;  %v939_v41 = vmul.f32 %v3240_v56, %v4497_v23  ;;  %v572_v14 = vadd.f32 %v540_v45, %v472_v31  ;;  %v640_v40 = vmul.f32 %v3232_v21, %v4494_v48 }
 0x11c   : > { %v771_v32 = vadd.f32 %v739_v24, %v671_v27  ;;  %v1071_v5 = vadd.f32 %v1039_v7, %v970_v3  ;;  %v441_v8 = vmul.f32 %v3228_v17, %v4495_v47  ;;  %v541_v58 = vmul.f32 %v3230_v25, %v4496_v12 }
 0x11d   : > { %v1270_v37 = vadd.f32 %v1238_v59, %v1170_v54  ;;  %v672_v18 = vadd.f32 %v640_v40, %v572_v14  ;;  %v740_v49 = vmul.f32 %v3234_v62, %v4498_v51  ;;  %v840_v29 = vmul.f32 %v3238_v19, %v4499_v44  ;;  %v4508_v14 = vld [vmem:[#allocation29_spill] sm:$0xff] }
 0x11e   : > { %v871_v11 = vadd.f32 %v839_v10, %v771_v32  ;;  %v1171_v38 = vadd.f32 %v1139_v53, %v1071_v5  ;;  %v1040_v48 = vmul.f32 %v3242_v26, %v4501_v34  ;;  %v1140_v6 = vmul.f32 %v3244_v15, %v4502_v36 }
 0x11f   : > { %1302 = vst [vmem:[%s3325_s6 + $0xa8] sm:$0xff] %v1270_v37  ;;  %v473_v50 = vadd.f32 %v3226_v22, %v441_v8  ;;  %v1240_v33 = vmul.f32 %v3251_v20, %v4503_v2  ;;  %v772_v60 = vadd.f32 %v740_v49, %v672_v18  ;;  %v940_v42 = vmul.f32 %v3240_v56, %v4500_v0  ;;  %v3776_v37 = vld [vmem:[%s3212_s5] ss:$0 sm:$0xff] }
 0x120   : > { %v971_v55 = vadd.f32 %v939_v41, %v871_v11  ;;  %v1271_v43 = vadd.f32 %v1239_v30, %v1171_v38  ;;  %v641_v47 = vmul.f32 %v3232_v21, %v4497_v23  ;;  %v442_v28 = vmul.f32 %v3228_v17, %v4498_v51  ;;  %v4507_v41 = vld [vmem:[#allocation66_spill] sm:$0xff] }
 0x121   : > { %v573_v9 = vadd.f32 %v541_v58, %v473_v50  ;;  %v872_v13 = vadd.f32 %v840_v29, %v772_v60  ;;  %v1041_v4 = vmul.f32 %v3242_v26, %v4504_v1  ;;  %v542_v59 = vmul.f32 %v3230_v25, %v4499_v44  ;;  %v4509_v58 = vld [vmem:[#allocation68_spill] sm:$0xff]  ;;  %v4510_v50 = vld [vmem:[#allocation69_spill] sm:$0xff] }
 0x122   : > { %v1072_v12 = vadd.f32 %v1040_v48, %v971_v55  ;;  %1303 = vst [vmem:[%s3325_s6 + $0xb0] sm:$0xff] %v1271_v43  ;;  %v741_v16 = vmul.f32 %v3234_v62, %v4501_v34  ;;  %v841_v35 = vmul.f32 %v3238_v19, %v4502_v36  ;;  %v474_v23 = vadd.f32 %v3226_v22, %v442_v28  ;;  %v4511_v28 = vld [vmem:[#allocation30_spill] sm:$0xff] }
 0x123   : > { %v673_v52 = vadd.f32 %v641_v47, %v573_v9  ;;  %v972_v63 = vadd.f32 %v940_v42, %v872_v13  ;;  %v1141_v61 = vmul.f32 %v3244_v15, %v4505_v46  ;;  %v1241_v51 = vmul.f32 %v3251_v20, %v4506_v57  ;;  %v4512_v13 = vld [vmem:[#allocation71_spill] sm:$0xff] }
 0x124   : > { %v1172_v39 = vadd.f32 %v1140_v6, %v1072_v12  ;;  %v941_v45 = vmul.f32 %v3240_v56, %v4503_v2  ;;  %v574_v27 = vadd.f32 %v542_v59, %v474_v23  ;;  %v642_v24 = vmul.f32 %v3232_v21, %v4500_v0 }
 0x125   : > { %v773_v7 = vadd.f32 %v741_v16, %v673_v52  ;;  %v1073_v22 = vadd.f32 %v1041_v4, %v972_v63  ;;  %v443_v31 = vmul.f32 %v3228_v17, %v4501_v34  ;;  %v543_v54 = vmul.f32 %v3230_v25, %v4502_v36 }
 0x126   : > { %v1272_v10 = vadd.f32 %v1240_v33, %v1172_v39  ;;  %v674_v44 = vadd.f32 %v642_v24, %v574_v27  ;;  %v742_v53 = vmul.f32 %v3234_v62, %v4504_v1  ;;  %v842_v30 = vmul.f32 %v3238_v19, %v4505_v46  ;;  %v4513_v27 = vld [vmem:[#allocation70_spill] sm:$0xff]  ;;  %v4514_v24 = vld [vmem:[#allocation31_spill] sm:$0xff] }
 0x127   : > { %v873_v3 = vadd.f32 %v841_v35, %v773_v7  ;;  %v1173_v32 = vadd.f32 %v1141_v61, %v1073_v22  ;;  %v1042_v0 = vmul.f32 %v3242_v26, %v4507_v41  ;;  %v1142_v40 = vmul.f32 %v3244_v15, %v4508_v14 }
 0x128   : > { %1304 = vst [vmem:[%s3325_s6 + $0xb8] sm:$0xff] %v1272_v10  ;;  %v475_v5 = vadd.f32 %v3776_v37, %v443_v31  ;;  %v1242_v11 = vmul.f32 %v3251_v20, %v4509_v58  ;;  %v774_v18 = vadd.f32 %v742_v53, %v674_v44  ;;  %v942_v49 = vmul.f32 %v3240_v56, %v4506_v57 }
 0x129   : > { %v973_v8 = vadd.f32 %v941_v45, %v873_v3  ;;  %v1273_v29 = vadd.f32 %v1241_v51, %v1173_v32  ;;  %v643_v34 = vmul.f32 %v3232_v21, %v4503_v2  ;;  %v444_v48 = vmul.f32 %v3228_v17, %v4504_v1 }
 0x12a   : > { %v575_v38 = vadd.f32 %v543_v54, %v475_v5  ;;  %v874_v6 = vadd.f32 %v842_v30, %v774_v18  ;;  %v1043_v55 = vmul.f32 %v3242_v26, %v4510_v50  ;;  %v544_v33 = vmul.f32 %v3230_v25, %v4505_v46  ;;  %v4515_v54 = vld [vmem:[#allocation72_spill] sm:$0xff]  ;;  %v4516_v5 = vld [vmem:[#allocation73_spill] sm:$0xff] }
 0x12b   : > { %v1074_v36 = vadd.f32 %v1042_v0, %v973_v8  ;;  %1305 = vst [vmem:[%s3325_s6 + $0xc0] sm:$0xff] %v1273_v29  ;;  %v743_v42 = vmul.f32 %v3234_v62, %v4507_v41  ;;  %v843_v43 = vmul.f32 %v3238_v19, %v4508_v14  ;;  %v476_v2 = vadd.f32 %v3776_v37, %v444_v48  ;;  %v4517_v48 = vld [vmem:[#allocation32_spill] sm:$0xff] }
 0x12c   : > { %v675_v60 = vadd.f32 %v643_v34, %v575_v38  ;;  %v974_v47 = vadd.f32 %v942_v49, %v874_v6  ;;  %v1143_v12 = vmul.f32 %v3244_v15, %v4511_v28  ;;  %v1243_v1 = vmul.f32 %v3251_v20, %v4512_v13  ;;  %v4518_v6 = vld [vmem:[#allocation75_spill] sm:$0xff] }
 0x12d   : > { %v1174_v9 = vadd.f32 %v1142_v40, %v1074_v36  ;;  %v943_v59 = vmul.f32 %v3240_v56, %v4509_v58  ;;  %v576_v52 = vadd.f32 %v544_v33, %v476_v2  ;;  %v644_v16 = vmul.f32 %v3232_v21, %v4506_v57 }
 0x12e   : > { %v775_v4 = vadd.f32 %v743_v42, %v675_v60  ;;  %v1075_v23 = vadd.f32 %v1043_v55, %v974_v47  ;;  %v445_v39 = vmul.f32 %v3228_v17, %v4507_v41  ;;  %v545_v63 = vmul.f32 %v3230_v25, %v4508_v14 }
 0x12f   : > { %v1274_v35 = vadd.f32 %v1242_v11, %v1174_v9  ;;  %v676_v61 = vadd.f32 %v644_v16, %v576_v52  ;;  %v744_v51 = vmul.f32 %v3234_v62, %v4510_v50  ;;  %v844_v7 = vmul.f32 %v3238_v19, %v4511_v28  ;;  %v4519_v52 = vld [vmem:[#allocation74_spill] sm:$0xff] }
 0x130   : > { %v875_v46 = vadd.f32 %v843_v43, %v775_v4  ;;  %v1175_v45 = vadd.f32 %v1143_v12, %v1075_v23  ;;  %v1044_v57 = vmul.f32 %v3242_v26, %v4513_v27  ;;  %v1144_v10 = vmul.f32 %v3244_v15, %v4514_v24 }
 0x131   : > { %1306 = vst [vmem:[%s3325_s6 + $0xc8] sm:$0xff] %v1274_v35  ;;  %v477_v22 = vadd.f32 %v3776_v37, %v445_v39  ;;  %v1244_v3 = vmul.f32 %v3251_v20, %v4515_v54  ;;  %v776_v44 = vadd.f32 %v744_v51, %v676_v61  ;;  %v944_v53 = vmul.f32 %v3240_v56, %v4512_v13  ;;  %v4520_v35 = vld [vmem:[#allocation33_spill] sm:$0xff]  ;;  %v1011_v39 = vld [vmem:[#allocation2 + $0x198] sm:$0xff] }
 0x132   : > { %v975_v31 = vadd.f32 %v943_v59, %v875_v46  ;;  %v1275_v30 = vadd.f32 %v1243_v1, %v1175_v45  ;;  %v645_v41 = vmul.f32 %v3232_v21, %v4509_v58  ;;  %v446_v0 = vmul.f32 %v3228_v17, %v4510_v50  ;;  %v1474_v46 = vld [vmem:[#allocation2 + $0x1] sm:$0xff] }
 0x133   : > { %v577_v32 = vadd.f32 %v545_v63, %v477_v22  ;;  %v876_v40 = vadd.f32 %v844_v7, %v776_v44  ;;  %v1045_v8 = vmul.f32 %v3242_v26, %v4516_v5  ;;  %v546_v11 = vmul.f32 %v3230_v25, %v4511_v28 }
 0x134   : > { %v1076_v14 = vadd.f32 %v1044_v57, %v975_v31  ;;  %1307 = vst [vmem:[%s3325_s6 + $0xd0] sm:$0xff] %v1275_v30  ;;  %v745_v49 = vmul.f32 %v3234_v62, %v4513_v27  ;;  %v845_v29 = vmul.f32 %v3238_v19, %v4514_v24  ;;  %v478_v58 = vadd.f32 %v3776_v37, %v446_v0  ;;  %v1211_v30 = vld [vmem:[#allocation2 + $0x19a] sm:$0xff] }
 0x135   : > { %v677_v18 = vadd.f32 %v645_v41, %v577_v32  ;;  %v976_v34 = vadd.f32 %v944_v53, %v876_v40  ;;  %v1145_v36 = vmul.f32 %v3244_v15, %v4517_v48  ;;  %v1245_v50 = vmul.f32 %v3251_v20, %v4518_v6  ;;  %v1666_v41 = vld [vmem:[#allocation2 + $0x18] sm:$0xff] }
 0x136   : > { %v1176_v38 = vadd.f32 %v1144_v10, %v1076_v14  ;;  %v578_v33 = vadd.f32 %v546_v11, %v478_v58  ;;  %v646_v60 = vmul.f32 %v3232_v21, %v4512_v13  ;;  %v746_v42 = vmul.f32 %v3234_v62, %v4516_v5  ;;  %v1378_v13 = vld [vmem:[#allocation2] sm:$0xff]  ;;  %v1475_v5 = vld [vmem:[#allocation2 + $0x9] sm:$0xff] }
 0x137   : > { %v777_v55 = vadd.f32 %v745_v49, %v677_v18  ;;  %v1077_v2 = vadd.f32 %v1045_v8, %v976_v34  ;;  %v447_v9 = vmul.f32 %v3228_v17, %v4513_v27  ;;  %v547_v47 = vmul.f32 %v3230_v25, %v4514_v24  ;;  %v1570_v27 = vld [vmem:[#allocation2 + $0x2] sm:$0xff]  ;;  %v1111_v24 = vld [vmem:[#allocation2 + $0x199] sm:$0xff] }
 0x138   : > { %v1276_v43 = vadd.f32 %v1244_v3, %v1176_v38  ;;  %v945_v12 = vmul.f32 %v3240_v56, %v4515_v54  ;;  %v678_v1 = vadd.f32 %v646_v60, %v578_v33  ;;  %v846_v4 = vmul.f32 %v3238_v19, %v4517_v48  ;;  %v4521_v11 = vld [vmem:[#allocation76_spill] sm:$0xff]  ;;  %v1762_v33 = vld [vmem:[#allocation2 + $0x19] sm:$0xff] }
 0x139   : > { %v877_v28 = vadd.f32 %v845_v29, %v777_v55  ;;  %v1177_v59 = vadd.f32 %v1145_v36, %v1077_v2  ;;  %v1046_v16 = vmul.f32 %v3242_v26, %v4519_v52  ;;  %v1146_v23 = vmul.f32 %v3244_v15, %v4520_v35  ;;  %v1571_v36 = vld [vmem:[#allocation2 + $0xa] sm:$0xff]  ;;  %v1112_v55 = vld [vmem:[#allocation2 + $0x1a1] sm:$0xff] }
 0x13a   : > { %1308 = vst [vmem:[%s3325_s6 + $0xd8] sm:$0xff] %v1276_v43  ;;  %v479_v63 = vadd.f32 %v3776_v37, %v447_v9  ;;  %v778_v51 = vadd.f32 %v746_v42, %v678_v1  ;;  %v946_v7 = vmul.f32 %v3240_v56, %v4518_v6  ;;  %v647_v45 = vmul.f32 %v3232_v21, %v4515_v54  ;;  %v2566_v60 = vld [vmem:[#allocation2 + $0x8] sm:$0xff] }
 0x13b   : > { %v977_v61 = vadd.f32 %v945_v12, %v877_v28  ;;  %v1277_v57 = vadd.f32 %v1245_v50, %v1177_v59  ;;  %v747_v22 = vmul.f32 %v3234_v62, %v4519_v52  ;;  %v1410_v31 = vmul.f32 %v1378_v13, %v3228_v17  ;;  %v1667_v12 = vld [vmem:[#allocation2 + $0x20] sm:$0xff] }
 0x13c   : > { %v579_v10 = vadd.f32 %v547_v47, %v479_v63  ;;  %v878_v44 = vadd.f32 %v846_v4, %v778_v51  ;;  %v1047_v53 = vmul.f32 %v3242_v26, %v1011_v39  ;;  %v1506_v32 = vmul.f32 %v1474_v46, %v3230_v25  ;;  %v1212_v4 = vld [vmem:[#allocation2 + $0x1a2] sm:$0xff]  ;;  %v1858_v13 = vld [vmem:[#allocation2 + $0x1a] sm:$0xff]  ;;  %v1954_v46 = vld [vmem:[#allocation2 + $0x30] sm:$0xff] }
 0x13d   : > { %v1078_v3 = vadd.f32 %v1046_v16, %v977_v61  ;;  %1309 = vst [vmem:[%s3325_s6 + $0xe0] sm:$0xff] %v1277_v57  ;;  %v847_v54 = vmul.f32 %v3238_v19, %v4520_v35  ;;  %v1442_v14 = vadd.f32 %v3776_v37, %v1410_v31  ;;  %v1602_v40 = vmul.f32 %v1570_v27, %v3232_v21  ;;  %v2050_v61 = vld [vmem:[#allocation2 + $0x31] sm:$0xff] }
 0x13e   : > { %v679_v0 = vadd.f32 %v647_v45, %v579_v10  ;;  %v1246_v18 = vmul.f32 %v3251_v20, %v4521_v11  ;;  %v978_v49 = vadd.f32 %v946_v7, %v878_v44  ;;  %v1147_v29 = vmul.f32 %v3244_v15, %v1111_v24  ;;  %v2146_v31 = vld [vmem:[#allocation2 + $0x32] sm:$0xff] }
 0x13f   : > { %v1178_v8 = vadd.f32 %v1146_v23, %v1078_v3  ;;  %v1247_v58 = vmul.f32 %v3251_v20, %v1211_v30  ;;  %v1538_v34 = vadd.f32 %v1506_v32, %v1442_v14  ;;  %v1698_v48 = vmul.f32 %v1666_v41, %v3234_v62 }
 0x140   : > { %v779_v38 = vadd.f32 %v747_v22, %v679_v0  ;;  %v1079_v50 = vadd.f32 %v1047_v53, %v978_v49  ;;  %v1411_v42 = vmul.f32 %v2566_v60, %v3228_v17  ;;  %v1507_v43 = vmul.f32 %v1475_v5, %v3230_v25  ;;  %v1763_v22 = vld [vmem:[#allocation2 + $0x21] sm:$0xff]  ;;  %v1955_v5 = vld [vmem:[#allocation2 + $0x38] sm:$0xff] }
 0x141   : > { %v1278_v6 = vadd.f32 %v1246_v18, %v1178_v8  ;;  %v947_v9 = vmul.f32 %v3240_v56, %v4521_v11  ;;  %v1048_v47 = vmul.f32 %v2566_v60, %v3242_v26  ;;  %v1634_v28 = vadd.f32 %v1602_v40, %v1538_v34 }
 0x142   : > { %v879_v2 = vadd.f32 %v847_v54, %v779_v38  ;;  %v1179_v1 = vadd.f32 %v1147_v29, %v1079_v50  ;;  %v1443_v59 = vadd.f32 %v3776_v37, %v1411_v42  ;;  %v1603_v52 = vmul.f32 %v1571_v36, %v3232_v21  ;;  %v1859_v54 = vld [vmem:[#allocation2 + $0x22] sm:$0xff] }
 0x143   : > { %1310 = vst [vmem:[%s3325_s6 + $0xe8] sm:$0xff] %v1278_v6  ;;  %v1148_v35 = vmul.f32 %v3244_v15, %v1112_v55  ;;  %v1730_v23 = vadd.f32 %v1698_v48, %v1634_v28  ;;  %v1794_v39 = vmul.f32 %v1762_v33, %v3238_v19  ;;  %v1699_v7 = vmul.f32 %v1667_v12, %v3234_v62 }
 0x144   : > { %v979_v16 = vadd.f32 %v947_v9, %v879_v2  ;;  %v1279_v63 = vadd.f32 %v1247_v58, %v1179_v1  ;;  %v1539_v51 = vadd.f32 %v1507_v43, %v1443_v59  ;;  %v1412_v45 = vmul.f32 %v1666_v41, %v3228_v17  ;;  %v2051_v58 = vld [vmem:[#allocation2 + $0x39] sm:$0xff]  ;;  %v2052_v1 = vld [vmem:[#allocation2 + $0x49] sm:$0xff] }
 0x145   : > { %v1248_v57 = vmul.f32 %v3251_v20, %v1212_v4  ;;  %v1826_v24 = vadd.f32 %v1794_v39, %v1730_v23  ;;  %v1890_v10 = vmul.f32 %v1858_v13, %v3240_v56  ;;  %v1508_v53 = vmul.f32 %v1762_v33, %v3230_v25  ;;  %v2147_v33 = vld [vmem:[#allocation2 + $0x3a] sm:$0xff]  ;;  %v2148_v39 = vld [vmem:[#allocation2 + $0x4a] sm:$0xff] }
 0x146   : > { %v1080_v27 = vadd.f32 %v1048_v47, %v979_v16  ;;  %1311 = vst [vmem:[%s3325_s6 + $0xf0] sm:$0xff] %v1279_v63  ;;  %v1635_v3 = vadd.f32 %v1603_v52, %v1539_v51  ;;  %v1444_v44 = vadd.f32 %v3776_v37, %v1412_v45  ;;  %v1986_v0 = vmul.f32 %v1954_v46, %v3242_v26 }
 0x147   : > { %v1922_v32 = vadd.f32 %v1890_v10, %v1826_v24  ;;  %v2082_v41 = vmul.f32 %v2050_v61, %v3244_v15  ;;  %v1795_v40 = vmul.f32 %v1763_v22, %v3238_v19  ;;  %v1604_v11 = vmul.f32 %v1858_v13, %v3232_v21 }
 0x148   : > { %v1180_v30 = vadd.f32 %v1148_v35, %v1080_v27  ;;  %v1731_v14 = vadd.f32 %v1699_v7, %v1635_v3  ;;  %v1540_v8 = vadd.f32 %v1508_v53, %v1444_v44  ;;  %v2178_v29 = vmul.f32 %v2146_v31, %v3251_v20  ;;  %v1957_v3 = vld [vmem:[#allocation2 + $0x50] sm:$0xff] }
 0x149   : > { %v2018_v49 = vadd.f32 %v1986_v0, %v1922_v32  ;;  %v1413_v38 = vmul.f32 %v1667_v12, %v3228_v17  ;;  %v1891_v48 = vmul.f32 %v1859_v54, %v3240_v56  ;;  %v1700_v6 = vmul.f32 %v1954_v46, %v3234_v62  ;;  %v1956_v12 = vld [vmem:[#allocation2 + $0x48] sm:$0xff] }
 0x14a   : > { %v1280_v18 = vadd.f32 %v1248_v57, %v1180_v30  ;;  %v1827_v34 = vadd.f32 %v1795_v40, %v1731_v14  ;;  %v1636_v36 = vadd.f32 %v1604_v11, %v1540_v8  ;;  %v1987_v55 = vmul.f32 %v1955_v5, %v3242_v26 }
 0x14b   : > { %v2114_v50 = vadd.f32 %v2082_v41, %v2018_v49  ;;  %v1445_v60 = vadd.f32 %v3776_v37, %v1413_v38  ;;  %v1509_v42 = vmul.f32 %v1763_v22, %v3230_v25  ;;  %v2083_v2 = vmul.f32 %v2051_v58, %v3244_v15  ;;  %v2053_v41 = vld [vmem:[#allocation2 + $0x51] sm:$0xff] }
 0x14c   : > { %1312 = vst [vmem:[%s3325_s6 + $0xf8] sm:$0xff] %v1280_v18  ;;  %v1923_v43 = vadd.f32 %v1891_v48, %v1827_v34  ;;  %v1732_v9 = vadd.f32 %v1700_v6, %v1636_v36  ;;  %v1796_v47 = vmul.f32 %v2050_v61, %v3238_v19  ;;  %v1605_v13 = vmul.f32 %v1859_v54, %v3232_v21  ;;  %v2149_v49 = vld [vmem:[#allocation2 + $0x52] sm:$0xff]  ;;  %v1958_v6 = vld [vmem:[#allocation2 + $0x60] sm:$0xff] }
 0x14d   : > { %v2210_v28 = vadd.f32 %v2178_v29, %v2114_v50  ;;  %v1541_v4 = vadd.f32 %v1509_v42, %v1445_v60  ;;  %v1414_v59 = vmul.f32 %v1954_v46, %v3228_v17  ;;  %v2179_v16 = vmul.f32 %v2147_v33, %v3251_v20  ;;  %v2054_v50 = vld [vmem:[#allocation2 + $0x61] sm:$0xff] }
 0x14e   : > { %v2019_v52 = vadd.f32 %v1987_v55, %v1923_v43  ;;  %v1828_v35 = vadd.f32 %v1796_v47, %v1732_v9  ;;  %v1892_v23 = vmul.f32 %v2146_v31, %v3240_v56  ;;  %v1701_v51 = vmul.f32 %v1955_v5, %v3234_v62  ;;  %v2150_v47 = vld [vmem:[#allocation2 + $0x62] sm:$0xff] }
 0x14f   : > { %2451 = vst [vmem:[%s3325_s6 + $0x100] sm:$0xff] %v2210_v28  ;;  %v1637_v63 = vadd.f32 %v1605_v13, %v1541_v4  ;;  %v1446_v7 = vadd.f32 %v3776_v37, %v1414_v59  ;;  %v1510_v45 = vmul.f32 %v2050_v61, %v3230_v25  ;;  %v1988_v24 = vmul.f32 %v1956_v12, %v3242_v26 }
 0x150   : > { %v2115_v27 = vadd.f32 %v2083_v2, %v2019_v52  ;;  %v1924_v57 = vadd.f32 %v1892_v23, %v1828_v35  ;;  %v2084_v46 = vmul.f32 %v2052_v1, %v3244_v15  ;;  %v1797_v22 = vmul.f32 %v2051_v58, %v3238_v19 }
 0x151   : > { %v1733_v10 = vadd.f32 %v1701_v51, %v1637_v63  ;;  %v1542_v44 = vadd.f32 %v1510_v45, %v1446_v7  ;;  %v1606_v53 = vmul.f32 %v2146_v31, %v3232_v21  ;;  %v2180_v0 = vmul.f32 %v2148_v39, %v3251_v20  ;;  %v1959_v63 = vld [vmem:[#allocation2 + $0x68] sm:$0xff] }
 0x152   : > { %v2211_v30 = vadd.f32 %v2179_v16, %v2115_v27  ;;  %v2020_v32 = vadd.f32 %v1988_v24, %v1924_v57  ;;  %v1415_v61 = vmul.f32 %v1955_v5, %v3228_v17  ;;  %v1893_v14 = vmul.f32 %v2147_v33, %v3240_v56  ;;  %v2055_v24 = vld [vmem:[#allocation2 + $0x69] sm:$0xff] }
 0x153   : > { %v1829_v54 = vadd.f32 %v1797_v22, %v1733_v10  ;;  %v1638_v40 = vadd.f32 %v1606_v53, %v1542_v44  ;;  %v1702_v8 = vmul.f32 %v1956_v12, %v3234_v62  ;;  %v1989_v18 = vmul.f32 %v1957_v3, %v3242_v26 }
 0x154   : > { %2452 = vst [vmem:[%s3325_s6 + $0x108] sm:$0xff] %v2211_v30  ;;  %v2116_v11 = vadd.f32 %v2084_v46, %v2020_v32  ;;  %v1447_v31 = vadd.f32 %v3776_v37, %v1415_v61  ;;  %v1511_v29 = vmul.f32 %v2051_v58, %v3230_v25  ;;  %v2085_v34 = vmul.f32 %v2053_v41, %v3244_v15  ;;  %v2151_v32 = vld [vmem:[#allocation2 + $0x6a] sm:$0xff] }
 0x155   : > { %v1925_v38 = vadd.f32 %v1893_v14, %v1829_v54  ;;  %v1734_v5 = vadd.f32 %v1702_v8, %v1638_v40  ;;  %v1798_v48 = vmul.f32 %v2052_v1, %v3238_v19  ;;  %v1607_v60 = vmul.f32 %v2147_v33, %v3232_v21  ;;  %v1960_v8 = vld [vmem:[#allocation2 + $0x78] sm:$0xff] }
 0x156   : > { %v2212_v36 = vadd.f32 %v2180_v0, %v2116_v11  ;;  %v1543_v55 = vadd.f32 %v1511_v29, %v1447_v31  ;;  %v1416_v42 = vmul.f32 %v1956_v12, %v3228_v17  ;;  %v2181_v2 = vmul.f32 %v2149_v49, %v3251_v20  ;;  %v2056_v11 = vld [vmem:[#allocation2 + $0x79] sm:$0xff] }
 0x157   : > { %v2021_v43 = vadd.f32 %v1989_v18, %v1925_v38  ;;  %v1830_v9 = vadd.f32 %v1798_v48, %v1734_v5  ;;  %v1894_v58 = vmul.f32 %v2148_v39, %v3240_v56  ;;  %v1703_v4 = vmul.f32 %v1957_v3, %v3234_v62  ;;  %v2152_v48 = vld [vmem:[#allocation2 + $0x7a] sm:$0xff] }
 0x158   : > { %2453 = vst [vmem:[%s3325_s6 + $0x110] sm:$0xff] %v2212_v36  ;;  %v1639_v28 = vadd.f32 %v1607_v60, %v1543_v55  ;;  %v1448_v13 = vadd.f32 %v3776_v37, %v1416_v42  ;;  %v1512_v59 = vmul.f32 %v2052_v1, %v3230_v25  ;;  %v1990_v33 = vmul.f32 %v1958_v6, %v3242_v26 }
 0x159   : > { %v2117_v52 = vadd.f32 %v2085_v34, %v2021_v43  ;;  %v1926_v16 = vadd.f32 %v1894_v58, %v1830_v9  ;;  %v2086_v12 = vmul.f32 %v2054_v50, %v3244_v15  ;;  %v1799_v23 = vmul.f32 %v2053_v41, %v3238_v19 }
 0x15a   : > { %v1735_v35 = vadd.f32 %v1703_v4, %v1639_v28  ;;  %v1544_v51 = vadd.f32 %v1512_v59, %v1448_v13  ;;  %v1608_v7 = vmul.f32 %v2148_v39, %v3232_v21  ;;  %v2182_v57 = vmul.f32 %v2150_v47, %v3251_v20  ;;  %v1961_v28 = vld [vmem:[#allocation2 + $0x80] sm:$0xff] }
 0x15b   : > { %v2213_v45 = vadd.f32 %v2181_v2, %v2117_v52  ;;  %v2022_v27 = vadd.f32 %v1990_v33, %v1926_v16  ;;  %v1417_v1 = vmul.f32 %v1957_v3, %v3228_v17  ;;  %v1895_v10 = vmul.f32 %v2149_v49, %v3240_v56  ;;  %v2057_v33 = vld [vmem:[#allocation2 + $0x81] sm:$0xff] }
 0x15c   : > { %v1831_v46 = vadd.f32 %v1799_v23, %v1735_v35  ;;  %v1640_v22 = vadd.f32 %v1608_v7, %v1544_v51  ;;  %v1704_v44 = vmul.f32 %v1958_v6, %v3234_v62  ;;  %v1991_v30 = vmul.f32 %v1959_v63, %v3242_v26 }
 0x15d   : > { %2454 = vst [vmem:[%s3325_s6 + $0x118] sm:$0xff] %v2213_v45  ;;  %v2118_v53 = vadd.f32 %v2086_v12, %v2022_v27  ;;  %v1449_v39 = vadd.f32 %v3776_v37, %v1417_v1  ;;  %v1513_v0 = vmul.f32 %v2053_v41, %v3230_v25  ;;  %v2087_v54 = vmul.f32 %v2055_v24, %v3244_v15  ;;  %v2153_v27 = vld [vmem:[#allocation2 + $0x82] sm:$0xff] }
 0x15e   : > { %v1927_v61 = vadd.f32 %v1895_v10, %v1831_v46  ;;  %v1736_v3 = vadd.f32 %v1704_v44, %v1640_v22  ;;  %v1800_v14 = vmul.f32 %v2054_v50, %v3238_v19  ;;  %v1609_v31 = vmul.f32 %v2149_v49, %v3232_v21  ;;  %v1962_v44 = vld [vmem:[#allocation2 + $0x90] sm:$0xff] }
 0x15f   : > { %v2214_v40 = vadd.f32 %v2182_v57, %v2118_v53  ;;  %v1545_v18 = vadd.f32 %v1513_v0, %v1449_v39  ;;  %v1418_v29 = vmul.f32 %v1958_v6, %v3228_v17  ;;  %v2183_v34 = vmul.f32 %v2151_v32, %v3251_v20  ;;  %v2058_v53 = vld [vmem:[#allocation2 + $0x91] sm:$0xff] }
 0x160   : > { %v2023_v38 = vadd.f32 %v1991_v30, %v1927_v61  ;;  %v1832_v5 = vadd.f32 %v1800_v14, %v1736_v3  ;;  %v1896_v41 = vmul.f32 %v2150_v47, %v3240_v56  ;;  %v1705_v55 = vmul.f32 %v1959_v63, %v3234_v62  ;;  %v2154_v14 = vld [vmem:[#allocation2 + $0x92] sm:$0xff] }
 0x161   : > { %2455 = vst [vmem:[%s3325_s6 + $0x120] sm:$0xff] %v2214_v40  ;;  %v1641_v36 = vadd.f32 %v1609_v31, %v1545_v18  ;;  %v1450_v60 = vadd.f32 %v3776_v37, %v1418_v29  ;;  %v1514_v42 = vmul.f32 %v2054_v50, %v3230_v25  ;;  %v1992_v49 = vmul.f32 %v1960_v8, %v3242_v26 }
 0x162   : > { %v2119_v43 = vadd.f32 %v2087_v54, %v2023_v38  ;;  %v1928_v2 = vadd.f32 %v1896_v41, %v1832_v5  ;;  %v2088_v6 = vmul.f32 %v2056_v11, %v3244_v15  ;;  %v1801_v58 = vmul.f32 %v2055_v24, %v3238_v19 }
 0x163   : > { %v1737_v9 = vadd.f32 %v1705_v55, %v1641_v36  ;;  %v1546_v4 = vadd.f32 %v1514_v42, %v1450_v60  ;;  %v1610_v13 = vmul.f32 %v2150_v47, %v3232_v21  ;;  %v2184_v16 = vmul.f32 %v2152_v48, %v3251_v20  ;;  %v1963_v36 = vld [vmem:[#allocation2 + $0x98] sm:$0xff] }
 0x164   : > { %v2215_v59 = vadd.f32 %v2183_v34, %v2119_v43  ;;  %v2024_v52 = vadd.f32 %v1992_v49, %v1928_v2  ;;  %v1419_v50 = vmul.f32 %v1959_v63, %v3228_v17  ;;  %v1897_v35 = vmul.f32 %v2151_v32, %v3240_v56  ;;  %v2059_v49 = vld [vmem:[#allocation2 + $0x99] sm:$0xff] }
 0x165   : > { %v1833_v12 = vadd.f32 %v1801_v58, %v1737_v9  ;;  %v1642_v23 = vadd.f32 %v1610_v13, %v1546_v4  ;;  %v1706_v51 = vmul.f32 %v1960_v8, %v3234_v62  ;;  %v1993_v45 = vmul.f32 %v1961_v28, %v3242_v26 }
 0x166   : > { %2456 = vst [vmem:[%s3325_s6 + $0x128] sm:$0xff] %v2215_v59  ;;  %v2120_v7 = vadd.f32 %v2088_v6, %v2024_v52  ;;  %v1451_v47 = vadd.f32 %v3776_v37, %v1419_v50  ;;  %v1515_v57 = vmul.f32 %v2055_v24, %v3230_v25  ;;  %v2089_v46 = vmul.f32 %v2057_v33, %v3244_v15  ;;  %v2155_v52 = vld [vmem:[#allocation2 + $0x9a] sm:$0xff] }
 0x167   : > { %v1929_v1 = vadd.f32 %v1897_v35, %v1833_v12  ;;  %v1738_v63 = vadd.f32 %v1706_v51, %v1642_v23  ;;  %v1802_v10 = vmul.f32 %v2056_v11, %v3238_v19  ;;  %v1611_v39 = vmul.f32 %v2151_v32, %v3232_v21  ;;  %v1964_v51 = vld [vmem:[#allocation2 + $0xa8] sm:$0xff] }
 0x168   : > { %v2216_v22 = vadd.f32 %v2184_v16, %v2120_v7  ;;  %v1547_v30 = vadd.f32 %v1515_v57, %v1451_v47  ;;  %v1420_v0 = vmul.f32 %v1960_v8, %v3228_v17  ;;  %v2185_v54 = vmul.f32 %v2153_v27, %v3251_v20  ;;  %v2060_v7 = vld [vmem:[#allocation2 + $0xa9] sm:$0xff] }
 0x169   : > { %v2025_v61 = vadd.f32 %v1993_v45, %v1929_v1  ;;  %v1834_v3 = vadd.f32 %v1802_v10, %v1738_v63  ;;  %v1898_v24 = vmul.f32 %v2152_v48, %v3240_v56  ;;  %v1707_v18 = vmul.f32 %v1961_v28, %v3234_v62  ;;  %v2156_v10 = vld [vmem:[#allocation2 + $0xaa] sm:$0xff] }
 0x16a   : > { %2457 = vst [vmem:[%s3325_s6 + $0x130] sm:$0xff] %v2216_v22  ;;  %v1643_v40 = vadd.f32 %v1611_v39, %v1547_v30  ;;  %v1452_v31 = vadd.f32 %v3776_v37, %v1420_v0  ;;  %v1516_v29 = vmul.f32 %v2056_v11, %v3230_v25  ;;  %v1994_v32 = vmul.f32 %v1962_v44, %v3242_v26 }
 0x16b   : > { %v2121_v38 = vadd.f32 %v2089_v46, %v2025_v61  ;;  %v1930_v34 = vadd.f32 %v1898_v24, %v1834_v3  ;;  %v2090_v8 = vmul.f32 %v2058_v53, %v3244_v15  ;;  %v1803_v41 = vmul.f32 %v2057_v33, %v3238_v19 }
 0x16c   : > { %v1739_v5 = vadd.f32 %v1707_v18, %v1643_v40  ;;  %v1548_v55 = vadd.f32 %v1516_v29, %v1452_v31  ;;  %v1612_v60 = vmul.f32 %v2152_v48, %v3232_v21  ;;  %v2186_v2 = vmul.f32 %v2154_v14, %v3251_v20  ;;  %v1965_v40 = vld [vmem:[#allocation2 + $0xb0] sm:$0xff] }
 0x16d   : > { %v2217_v42 = vadd.f32 %v2185_v54, %v2121_v38  ;;  %v2026_v43 = vadd.f32 %v1994_v32, %v1930_v34  ;;  %v1421_v11 = vmul.f32 %v1961_v28, %v3228_v17  ;;  %v1899_v9 = vmul.f32 %v2153_v27, %v3240_v56  ;;  %v2061_v32 = vld [vmem:[#allocation2 + $0xb1] sm:$0xff] }
 0x16e   : > { %v1835_v6 = vadd.f32 %v1803_v41, %v1739_v5  ;;  %v1644_v58 = vadd.f32 %v1612_v60, %v1548_v55  ;;  %v1708_v4 = vmul.f32 %v1962_v44, %v3234_v62  ;;  %v1995_v59 = vmul.f32 %v1963_v36, %v3242_v26 }
 0x16f   : > { %2458 = vst [vmem:[%s3325_s6 + $0x138] sm:$0xff] %v2217_v42  ;;  %v2122_v13 = vadd.f32 %v2090_v8, %v2026_v43  ;;  %v1453_v48 = vadd.f32 %v3776_v37, %v1421_v11  ;;  %v1517_v16 = vmul.f32 %v2057_v33, %v3230_v25  ;;  %v2091_v12 = vmul.f32 %v2059_v49, %v3244_v15  ;;  %v2157_v43 = vld [vmem:[#allocation2 + $0xb2] sm:$0xff] }
 0x170   : > { %v1931_v50 = vadd.f32 %v1899_v9, %v1835_v6  ;;  %v1740_v28 = vadd.f32 %v1708_v4, %v1644_v58  ;;  %v1804_v35 = vmul.f32 %v2058_v53, %v3238_v19  ;;  %v1613_v47 = vmul.f32 %v2153_v27, %v3232_v21  ;;  %v1966_v4 = vld [vmem:[#allocation2 + $0xc0] sm:$0xff] }
 0x171   : > { %v2218_v23 = vadd.f32 %v2186_v2, %v2122_v13  ;;  %v1549_v45 = vadd.f32 %v1517_v16, %v1453_v48  ;;  %v1422_v57 = vmul.f32 %v1962_v44, %v3228_v17  ;;  %v2187_v46 = vmul.f32 %v2155_v52, %v3251_v20  ;;  %v2062_v13 = vld [vmem:[#allocation2 + $0xc1] sm:$0xff] }
 0x172   : > { %v2027_v1 = vadd.f32 %v1995_v59, %v1931_v50  ;;  %v1836_v63 = vadd.f32 %v1804_v35, %v1740_v28  ;;  %v1900_v33 = vmul.f32 %v2154_v14, %v3240_v56  ;;  %v1709_v30 = vmul.f32 %v1963_v36, %v3234_v62  ;;  %v2158_v35 = vld [vmem:[#allocation2 + $0xc2] sm:$0xff] }
 0x173   : > { %2459 = vst [vmem:[%s3325_s6 + $0x140] sm:$0xff] %v2218_v23  ;;  %v1645_v22 = vadd.f32 %v1613_v47, %v1549_v45  ;;  %v1454_v39 = vadd.f32 %v3776_v37, %v1422_v57  ;;  %v1518_v0 = vmul.f32 %v2058_v53, %v3230_v25  ;;  %v1996_v27 = vmul.f32 %v1964_v51, %v3242_v26 }
 0x174   : > { %v2123_v61 = vadd.f32 %v2091_v12, %v2027_v1  ;;  %v1932_v54 = vadd.f32 %v1900_v33, %v1836_v63  ;;  %v2092_v44 = vmul.f32 %v2060_v7, %v3244_v15  ;;  %v1805_v24 = vmul.f32 %v2059_v49, %v3238_v19 }
 0x175   : > { %v1741_v3 = vadd.f32 %v1709_v30, %v1645_v22  ;;  %v1550_v18 = vadd.f32 %v1518_v0, %v1454_v39  ;;  %v1614_v31 = vmul.f32 %v2154_v14, %v3232_v21  ;;  %v2188_v34 = vmul.f32 %v2156_v10, %v3251_v20  ;;  %v1967_v22 = vld [vmem:[#allocation2 + $0xc8] sm:$0xff] }
 0x176   : > { %v2219_v29 = vadd.f32 %v2187_v46, %v2123_v61  ;;  %v2028_v38 = vadd.f32 %v1996_v27, %v1932_v54  ;;  %v1423_v53 = vmul.f32 %v1963_v36, %v3228_v17  ;;  %v1901_v5 = vmul.f32 %v2155_v52, %v3240_v56  ;;  %v2063_v27 = vld [vmem:[#allocation2 + $0xc9] sm:$0xff] }
 0x177   : > { %v1837_v8 = vadd.f32 %v1805_v24, %v1741_v3  ;;  %v1646_v41 = vadd.f32 %v1614_v31, %v1550_v18  ;;  %v1710_v55 = vmul.f32 %v1964_v51, %v3234_v62  ;;  %v1997_v42 = vmul.f32 %v1965_v40, %v3242_v26 }
 0x178   : > { %2460 = vst [vmem:[%s3325_s6 + $0x148] sm:$0xff] %v2219_v29  ;;  %v2124_v60 = vadd.f32 %v2092_v44, %v2028_v38  ;;  %v1455_v14 = vadd.f32 %v3776_v37, %v1423_v53  ;;  %v1519_v2 = vmul.f32 %v2059_v49, %v3230_v25  ;;  %v2093_v6 = vmul.f32 %v2061_v32, %v3244_v15  ;;  %v2159_v38 = vld [vmem:[#allocation2 + $0xca] sm:$0xff] }
 0x179   : > { %v1933_v11 = vadd.f32 %v1901_v5, %v1837_v8  ;;  %v1742_v36 = vadd.f32 %v1710_v55, %v1646_v41  ;;  %v1806_v9 = vmul.f32 %v2060_v7, %v3238_v19  ;;  %v1615_v48 = vmul.f32 %v2155_v52, %v3232_v21  ;;  %v1968_v55 = vld [vmem:[#allocation2 + $0xd8] sm:$0xff] }
 0x17a   : > { %v2220_v58 = vadd.f32 %v2188_v34, %v2124_v60  ;;  %v1551_v59 = vadd.f32 %v1519_v2, %v1455_v14  ;;  %v1424_v16 = vmul.f32 %v1964_v51, %v3228_v17  ;;  %v2189_v12 = vmul.f32 %v2157_v43, %v3251_v20  ;;  %v2064_v60 = vld [vmem:[#allocation2 + $0xd9] sm:$0xff] }
 0x17b   : > { %v2029_v50 = vadd.f32 %v1997_v42, %v1933_v11  ;;  %v1838_v28 = vadd.f32 %v1806_v9, %v1742_v36  ;;  %v1902_v49 = vmul.f32 %v2156_v10, %v3240_v56  ;;  %v1711_v45 = vmul.f32 %v1965_v40, %v3234_v62  ;;  %v2160_v9 = vld [vmem:[#allocation2 + $0xda] sm:$0xff] }
 0x17c   : > { %2461 = vst [vmem:[%s3325_s6 + $0x150] sm:$0xff] %v2220_v58  ;;  %v1647_v23 = vadd.f32 %v1615_v48, %v1551_v59  ;;  %v1456_v47 = vadd.f32 %v3776_v37, %v1424_v16  ;;  %v1520_v57 = vmul.f32 %v2060_v7, %v3230_v25  ;;  %v1998_v52 = vmul.f32 %v1966_v4, %v3242_v26 }
 0x17d   : > { %v2125_v1 = vadd.f32 %v2093_v6, %v2029_v50  ;;  %v1934_v46 = vadd.f32 %v1902_v49, %v1838_v28  ;;  %v2094_v51 = vmul.f32 %v2062_v13, %v3244_v15  ;;  %v1807_v33 = vmul.f32 %v2061_v32, %v3238_v19 }
 0x17e   : > { %v1743_v63 = vadd.f32 %v1711_v45, %v1647_v23  ;;  %v1552_v30 = vadd.f32 %v1520_v57, %v1456_v47  ;;  %v1616_v39 = vmul.f32 %v2156_v10, %v3232_v21  ;;  %v2190_v54 = vmul.f32 %v2158_v35, %v3251_v20  ;;  %v1969_v23 = vld [vmem:[#allocation2 + $0xe0] sm:$0xff] }
 0x17f   : > { %v2221_v0 = vadd.f32 %v2189_v12, %v2125_v1  ;;  %v2030_v61 = vadd.f32 %v1998_v52, %v1934_v46  ;;  %v1425_v7 = vmul.f32 %v1965_v40, %v3228_v17  ;;  %v1903_v3 = vmul.f32 %v2157_v43, %v3240_v56  ;;  %v2065_v52 = vld [vmem:[#allocation2 + $0xe1] sm:$0xff] }
 0x180   : > { %v1839_v44 = vadd.f32 %v1807_v33, %v1743_v63  ;;  %v1648_v24 = vadd.f32 %v1616_v39, %v1552_v30  ;;  %v1712_v18 = vmul.f32 %v1966_v4, %v3234_v62  ;;  %v1999_v29 = vmul.f32 %v1967_v22, %v3242_v26 }
 0x181   : > { %2462 = vst [vmem:[%s3325_s6 + $0x158] sm:$0xff] %v2221_v0  ;;  %v2126_v31 = vadd.f32 %v2094_v51, %v2030_v61  ;;  %v1457_v10 = vadd.f32 %v3776_v37, %v1425_v7  ;;  %v1521_v34 = vmul.f32 %v2061_v32, %v3230_v25  ;;  %v2095_v8 = vmul.f32 %v2063_v27, %v3244_v15  ;;  %v2161_v61 = vld [vmem:[#allocation2 + $0xe2] sm:$0xff] }
 0x182   : > { %v1935_v53 = vadd.f32 %v1903_v3, %v1839_v44  ;;  %v1744_v40 = vadd.f32 %v1712_v18, %v1648_v24  ;;  %v1808_v5 = vmul.f32 %v2062_v13, %v3238_v19  ;;  %v1617_v14 = vmul.f32 %v2157_v43, %v3232_v21  ;;  %v1970_v18 = vld [vmem:[#allocation2 + $0xf0] sm:$0xff] }
 0x183   : > { %v2222_v41 = vadd.f32 %v2190_v54, %v2126_v31  ;;  %v1553_v42 = vadd.f32 %v1521_v34, %v1457_v10  ;;  %v1426_v2 = vmul.f32 %v1966_v4, %v3228_v17  ;;  %v2191_v6 = vmul.f32 %v2159_v38, %v3251_v20  ;;  %v2066_v31 = vld [vmem:[#allocation2 + $0xf1] sm:$0xff] }
 0x184   : > { %v2031_v11 = vadd.f32 %v1999_v29, %v1935_v53  ;;  %v1840_v36 = vadd.f32 %v1808_v5, %v1744_v40  ;;  %v1904_v32 = vmul.f32 %v2158_v35, %v3240_v56  ;;  %v1713_v59 = vmul.f32 %v1967_v22, %v3234_v62  ;;  %v2162_v5 = vld [vmem:[#allocation2 + $0xf2] sm:$0xff] }
 0x185   : > { %2463 = vst [vmem:[%s3325_s6 + $0x160] sm:$0xff] %v2222_v41  ;;  %v1649_v58 = vadd.f32 %v1617_v14, %v1553_v42  ;;  %v1458_v48 = vadd.f32 %v3776_v37, %v1426_v2  ;;  %v1522_v16 = vmul.f32 %v2062_v13, %v3230_v25  ;;  %v2000_v43 = vmul.f32 %v1968_v55, %v3242_v26 }
 0x186   : > { %v2127_v50 = vadd.f32 %v2095_v8, %v2031_v11  ;;  %v1936_v12 = vadd.f32 %v1904_v32, %v1840_v36  ;;  %v2096_v4 = vmul.f32 %v2064_v60, %v3244_v15  ;;  %v1809_v49 = vmul.f32 %v2063_v27, %v3238_v19 }
 0x187   : > { %v1745_v28 = vadd.f32 %v1713_v59, %v1649_v58  ;;  %v1554_v45 = vadd.f32 %v1522_v16, %v1458_v48  ;;  %v1618_v47 = vmul.f32 %v2158_v35, %v3232_v21  ;;  %v2192_v46 = vmul.f32 %v2160_v9, %v3251_v20  ;;  %v1971_v58 = vld [vmem:[#allocation2 + $0xf8] sm:$0xff] }
 0x188   : > { %v2223_v57 = vadd.f32 %v2191_v6, %v2127_v50  ;;  %v2032_v1 = vadd.f32 %v2000_v43, %v1936_v12  ;;  %v1427_v13 = vmul.f32 %v1967_v22, %v3228_v17  ;;  %v1905_v63 = vmul.f32 %v2159_v38, %v3240_v56 }
 0x189   : > { %v1841_v51 = vadd.f32 %v1809_v49, %v1745_v28  ;;  %v1650_v33 = vadd.f32 %v1618_v47, %v1554_v45  ;;  %v1714_v30 = vmul.f32 %v1968_v55, %v3234_v62  ;;  %v2001_v0 = vmul.f32 %v1969_v23, %v3242_v26 }
 0x18a   : > { %2464 = vst [vmem:[%s3325_s6 + $0x168] sm:$0xff] %v2223_v57  ;;  %v2128_v39 = vadd.f32 %v2096_v4, %v2032_v1  ;;  %v1459_v35 = vadd.f32 %v3776_v37, %v1427_v13  ;;  %v1523_v54 = vmul.f32 %v2063_v27, %v3230_v25  ;;  %v2097_v44 = vmul.f32 %v2065_v52, %v3244_v15  ;;  %v2163_v57 = vld [vmem:[#allocation2 + $0xfa] sm:$0xff] }
 0x18b   : > { %v1937_v7 = vadd.f32 %v1905_v63, %v1841_v51  ;;  %v1746_v22 = vadd.f32 %v1714_v30, %v1650_v33  ;;  %v1810_v3 = vmul.f32 %v2064_v60, %v3238_v19  ;;  %v1619_v10 = vmul.f32 %v2159_v38, %v3232_v21  ;;  %v4082_v1 = vld [vmem:[%s3212_s5] ss:$0 sm:$0xff]  ;;  %v1972_v30 = vld [vmem:[#allocation2 + $0x108] sm:$0xff] }
 0x18c   : > { %v2224_v24 = vadd.f32 %v2192_v46, %v2128_v39  ;;  %v1555_v29 = vadd.f32 %v1523_v54, %v1459_v35  ;;  %v1428_v34 = vmul.f32 %v1968_v55, %v3228_v17  ;;  %v2193_v8 = vmul.f32 %v2161_v61, %v3251_v20  ;;  %v2068_v39 = vld [vmem:[#allocation2 + $0x109] sm:$0xff] }
 0x18d   : > { %v2033_v53 = vadd.f32 %v2001_v0, %v1937_v7  ;;  %v1842_v40 = vadd.f32 %v1810_v3, %v1746_v22  ;;  %v1906_v27 = vmul.f32 %v2160_v9, %v3240_v56  ;;  %v1715_v42 = vmul.f32 %v1969_v23, %v3234_v62  ;;  %v2164_v3 = vld [vmem:[#allocation2 + $0x10a] sm:$0xff] }
 0x18e   : > { %2465 = vst [vmem:[%s3325_s6 + $0x170] sm:$0xff] %v2224_v24  ;;  %v1651_v41 = vadd.f32 %v1619_v10, %v1555_v29  ;;  %v1460_v14 = vadd.f32 %v3776_v37, %v1428_v34  ;;  %v1524_v2 = vmul.f32 %v2064_v60, %v3230_v25  ;;  %v2002_v38 = vmul.f32 %v1970_v18, %v3242_v26  ;;  %v2067_v60 = vld [vmem:[#allocation2 + $0xf9] sm:$0xff] }
 0x18f   : > { %v2129_v11 = vadd.f32 %v2097_v44, %v2033_v53  ;;  %v1938_v6 = vadd.f32 %v1906_v27, %v1842_v40  ;;  %v2098_v55 = vmul.f32 %v2066_v31, %v3244_v15  ;;  %v1811_v32 = vmul.f32 %v2065_v52, %v3238_v19 }
 0x190   : > { %v1747_v36 = vadd.f32 %v1715_v42, %v1651_v41  ;;  %v1556_v59 = vadd.f32 %v1524_v2, %v1460_v14  ;;  %v1620_v48 = vmul.f32 %v2160_v9, %v3232_v21  ;;  %v2194_v37 = vmul.f32 %v2162_v5, %v3251_v20  ;;  %v1973_v41 = vld [vmem:[#allocation2 + $0x110] sm:$0xff] }
 0x191   : > { %v2225_v16 = vadd.f32 %v2193_v8, %v2129_v11  ;;  %v2034_v50 = vadd.f32 %v2002_v38, %v1938_v6  ;;  %v1429_v12 = vmul.f32 %v1969_v23, %v3228_v17  ;;  %v1907_v4 = vmul.f32 %v2161_v61, %v3240_v56  ;;  %v2069_v38 = vld [vmem:[#allocation2 + $0x111] sm:$0xff] }
 0x192   : > { %v1843_v43 = vadd.f32 %v1811_v32, %v1747_v36  ;;  %v1652_v28 = vadd.f32 %v1620_v48, %v1556_v59  ;;  %v1716_v49 = vmul.f32 %v1970_v18, %v3234_v62  ;;  %v2003_v47 = vmul.f32 %v1971_v58, %v3242_v26 }
 0x193   : > { %2466 = vst [vmem:[%s3325_s6 + $0x178] sm:$0xff] %v2225_v16  ;;  %v2130_v45 = vadd.f32 %v2098_v55, %v2034_v50  ;;  %v1461_v9 = vadd.f32 %v4082_v1, %v1429_v12  ;;  %v1525_v46 = vmul.f32 %v2065_v52, %v3230_v25  ;;  %v2099_v23 = vmul.f32 %v2067_v60, %v3244_v15  ;;  %v2165_v50 = vld [vmem:[#allocation2 + $0x112] sm:$0xff] }
 0x194   : > { %v1939_v13 = vadd.f32 %v1907_v4, %v1843_v43  ;;  %v1748_v51 = vadd.f32 %v1716_v49, %v1652_v28  ;;  %v1812_v63 = vmul.f32 %v2066_v31, %v3238_v19  ;;  %v1621_v35 = vmul.f32 %v2161_v61, %v3232_v21  ;;  %v1974_v49 = vld [vmem:[#allocation2 + $0x120] sm:$0xff] }
 0x195   : > { %v2226_v33 = vadd.f32 %v2194_v37, %v2130_v45  ;;  %v1557_v0 = vadd.f32 %v1525_v46, %v1461_v9  ;;  %v1430_v54 = vmul.f32 %v1970_v18, %v3228_v17  ;;  %v2195_v44 = vmul.f32 %v2163_v57, %v3251_v20  ;;  %v2070_v45 = vld [vmem:[#allocation2 + $0x121] sm:$0xff] }
 0x196   : > { %v2035_v7 = vadd.f32 %v2003_v47, %v1939_v13  ;;  %v1844_v22 = vadd.f32 %v1812_v63, %v1748_v51  ;;  %v1908_v52 = vmul.f32 %v2162_v5, %v3240_v56  ;;  %v1717_v29 = vmul.f32 %v1971_v58, %v3234_v62  ;;  %v2166_v63 = vld [vmem:[#allocation2 + $0x122] sm:$0xff] }
 0x197   : > { %2467 = vst [vmem:[%s3325_s6 + $0x180] sm:$0xff] %v2226_v33  ;;  %v1653_v24 = vadd.f32 %v1621_v35, %v1557_v0  ;;  %v1462_v10 = vadd.f32 %v4082_v1, %v1430_v54  ;;  %v1526_v34 = vmul.f32 %v2066_v31, %v3230_v25  ;;  %v2004_v61 = vmul.f32 %v1972_v30, %v3242_v26 }
 0x198   : > { %v2131_v53 = vadd.f32 %v2099_v23, %v2035_v7  ;;  %v1940_v8 = vadd.f32 %v1908_v52, %v1844_v22  ;;  %v2100_v18 = vmul.f32 %v2068_v39, %v3244_v15  ;;  %v1813_v27 = vmul.f32 %v2067_v60, %v3238_v19 }
 0x199   : > { %v1749_v40 = vadd.f32 %v1717_v29, %v1653_v24  ;;  %v1558_v42 = vadd.f32 %v1526_v34, %v1462_v10  ;;  %v1622_v14 = vmul.f32 %v2162_v5, %v3232_v21  ;;  %v2196_v6 = vmul.f32 %v2164_v3, %v3251_v20  ;;  %v1975_v24 = vld [vmem:[#allocation2 + $0x128] sm:$0xff] }
 0x19a   : > { %v2227_v2 = vadd.f32 %v2195_v44, %v2131_v53  ;;  %v2036_v11 = vadd.f32 %v2004_v61, %v1940_v8  ;;  %v1431_v31 = vmul.f32 %v1971_v58, %v3228_v17  ;;  %v1909_v36 = vmul.f32 %v2163_v57, %v3240_v56  ;;  %v2071_v61 = vld [vmem:[#allocation2 + $0x129] sm:$0xff] }
 0x19b   : > { %v1845_v55 = vadd.f32 %v1813_v27, %v1749_v40  ;;  %v1654_v32 = vadd.f32 %v1622_v14, %v1558_v42  ;;  %v1718_v59 = vmul.f32 %v1972_v30, %v3234_v62  ;;  %v2005_v16 = vmul.f32 %v1973_v41, %v3242_v26 }
 0x19c   : > { %2468 = vst [vmem:[%s3325_s6 + $0x188] sm:$0xff] %v2227_v2  ;;  %v2132_v48 = vadd.f32 %v2100_v18, %v2036_v11  ;;  %v1463_v5 = vadd.f32 %v4082_v1, %v1431_v31  ;;  %v1527_v37 = vmul.f32 %v2067_v60, %v3230_v25  ;;  %v2101_v43 = vmul.f32 %v2069_v38, %v3244_v15  ;;  %v2167_v11 = vld [vmem:[#allocation2 + $0x12a] sm:$0xff] }
 0x19d   : > { %v1941_v12 = vadd.f32 %v1909_v36, %v1845_v55  ;;  %v1750_v58 = vadd.f32 %v1718_v59, %v1654_v32  ;;  %v1814_v4 = vmul.f32 %v2068_v39, %v3238_v19  ;;  %v1623_v9 = vmul.f32 %v2163_v57, %v3232_v21  ;;  %v1976_v59 = vld [vmem:[#allocation2 + $0x138] sm:$0xff] }
 0x19e   : > { %v2228_v28 = vadd.f32 %v2196_v6, %v2132_v48  ;;  %v1559_v47 = vadd.f32 %v1527_v37, %v1463_v5  ;;  %v1432_v46 = vmul.f32 %v1972_v30, %v3228_v17  ;;  %v2197_v23 = vmul.f32 %v2165_v50, %v3251_v20  ;;  %v2072_v48 = vld [vmem:[#allocation2 + $0x139] sm:$0xff] }
 0x19f   : > { %v2037_v13 = vadd.f32 %v2005_v16, %v1941_v12  ;;  %v1846_v51 = vadd.f32 %v1814_v4, %v1750_v58  ;;  %v1910_v60 = vmul.f32 %v2164_v3, %v3240_v56  ;;  %v1719_v0 = vmul.f32 %v1973_v41, %v3234_v62  ;;  %v2168_v4 = vld [vmem:[#allocation2 + $0x13a] sm:$0xff] }
 0x1a0   : > { %2469 = vst [vmem:[%s3325_s6 + $0x190] sm:$0xff] %v2228_v28  ;;  %v1655_v33 = vadd.f32 %v1623_v9, %v1559_v47  ;;  %v1464_v35 = vadd.f32 %v4082_v1, %v1432_v46  ;;  %v1528_v54 = vmul.f32 %v2068_v39, %v3230_v25  ;;  %v2006_v57 = vmul.f32 %v1974_v49, %v3242_v26 }
 0x1a1   : > { %v2133_v7 = vadd.f32 %v2101_v43, %v2037_v13  ;;  %v1942_v44 = vadd.f32 %v1910_v60, %v1846_v51  ;;  %v2102_v30 = vmul.f32 %v2070_v45, %v3244_v15  ;;  %v1815_v52 = vmul.f32 %v2069_v38, %v3238_v19 }
 0x1a2   : > { %v1751_v22 = vadd.f32 %v1719_v0, %v1655_v33  ;;  %v1560_v29 = vadd.f32 %v1528_v54, %v1464_v35  ;;  %v1624_v10 = vmul.f32 %v2164_v3, %v3232_v21  ;;  %v2198_v8 = vmul.f32 %v2166_v63, %v3251_v20  ;;  %v1977_v33 = vld [vmem:[#allocation2 + $0x140] sm:$0xff] }
 0x1a3   : > { %v2229_v34 = vadd.f32 %v2197_v23, %v2133_v7  ;;  %v2038_v53 = vadd.f32 %v2006_v57, %v1942_v44  ;;  %v1433_v39 = vmul.f32 %v1973_v41, %v3228_v17  ;;  %v1911_v40 = vmul.f32 %v2165_v50, %v3240_v56  ;;  %v2073_v57 = vld [vmem:[#allocation2 + $0x141] sm:$0xff] }
 0x1a4   : > { %v1847_v18 = vadd.f32 %v1815_v52, %v1751_v22  ;;  %v1656_v27 = vadd.f32 %v1624_v10, %v1560_v29  ;;  %v1720_v42 = vmul.f32 %v1974_v49, %v3234_v62  ;;  %v2007_v2 = vmul.f32 %v1975_v24, %v3242_v26 }
 0x1a5   : > { %2470 = vst [vmem:[%s3325_s6 + $0x198] sm:$0xff] %v2229_v34  ;;  %v2134_v14 = vadd.f32 %v2102_v30, %v2038_v53  ;;  %v1465_v3 = vadd.f32 %v4082_v1, %v1433_v39  ;;  %v1529_v6 = vmul.f32 %v2069_v38, %v3230_v25  ;;  %v2103_v55 = vmul.f32 %v2071_v61, %v3244_v15  ;;  %v2169_v53 = vld [vmem:[#allocation2 + $0x142] sm:$0xff] }
 0x1a6   : > { %v1943_v31 = vadd.f32 %v1911_v40, %v1847_v18  ;;  %v1752_v41 = vadd.f32 %v1720_v42, %v1656_v27  ;;  %v1816_v36 = vmul.f32 %v2070_v45, %v3238_v19  ;;  %v1625_v5 = vmul.f32 %v2165_v50, %v3232_v21  ;;  %v1978_v42 = vld [vmem:[#allocation2 + $0x150] sm:$0xff] }
 0x1a7   : > { %v2230_v32 = vadd.f32 %v2198_v8, %v2134_v14  ;;  %v1561_v16 = vadd.f32 %v1529_v6, %v1465_v3  ;;  %v1434_v37 = vmul.f32 %v1974_v49, %v3228_v17  ;;  %v2199_v43 = vmul.f32 %v2167_v11, %v3251_v20  ;;  %v2074_v14 = vld [vmem:[#allocation2 + $0x151] sm:$0xff] }
 0x1a8   : > { %v2039_v12 = vadd.f32 %v2007_v2, %v1943_v31  ;;  %v1848_v58 = vadd.f32 %v1816_v36, %v1752_v41  ;;  %v1912_v38 = vmul.f32 %v2166_v63, %v3240_v56  ;;  %v1721_v47 = vmul.f32 %v1975_v24, %v3234_v62  ;;  %v2170_v36 = vld [vmem:[#allocation2 + $0x152] sm:$0xff] }
 0x1a9   : > { %2471 = vst [vmem:[%s3325_s6 + $0x1a0] sm:$0xff] %v2230_v32  ;;  %v1657_v28 = vadd.f32 %v1625_v5, %v1561_v16  ;;  %v1466_v9 = vadd.f32 %v4082_v1, %v1434_v37  ;;  %v1530_v46 = vmul.f32 %v2070_v45, %v3230_v25  ;;  %v2008_v50 = vmul.f32 %v1976_v59, %v3242_v26 }
 0x1aa   : > { %v2135_v13 = vadd.f32 %v2103_v55, %v2039_v12  ;;  %v1944_v23 = vadd.f32 %v1912_v38, %v1848_v58  ;;  %v2104_v49 = vmul.f32 %v2072_v48, %v3244_v15  ;;  %v1817_v60 = vmul.f32 %v2071_v61, %v3238_v19 }
 0x1ab   : > { %v1753_v51 = vadd.f32 %v1721_v47, %v1657_v28  ;;  %v1562_v0 = vadd.f32 %v1530_v46, %v1466_v9  ;;  %v1626_v35 = vmul.f32 %v2166_v63, %v3232_v21  ;;  %v2200_v44 = vmul.f32 %v2168_v4, %v3251_v20  ;;  %v1979_v28 = vld [vmem:[#allocation2 + $0x158] sm:$0xff] }
 0x1ac   : > { %v2231_v54 = vadd.f32 %v2199_v43, %v2135_v13  ;;  %v2040_v7 = vadd.f32 %v2008_v50, %v1944_v23  ;;  %v1435_v45 = vmul.f32 %v1975_v24, %v3228_v17  ;;  %v1913_v22 = vmul.f32 %v2167_v11, %v3240_v56  ;;  %v2075_v50 = vld [vmem:[#allocation2 + $0x159] sm:$0xff] }
 0x1ad   : > { %v1849_v30 = vadd.f32 %v1817_v60, %v1753_v51  ;;  %v1658_v52 = vadd.f32 %v1626_v35, %v1562_v0  ;;  %v1722_v29 = vmul.f32 %v1976_v59, %v3234_v62  ;;  %v2009_v34 = vmul.f32 %v1977_v33, %v3242_v26 }
 0x1ae   : > { %2472 = vst [vmem:[%s3325_s6 + $0x1a8] sm:$0xff] %v2231_v54  ;;  %v2136_v10 = vadd.f32 %v2104_v49, %v2040_v7  ;;  %v1467_v63 = vadd.f32 %v4082_v1, %v1435_v45  ;;  %v1531_v8 = vmul.f32 %v2071_v61, %v3230_v25  ;;  %v2105_v18 = vmul.f32 %v2073_v57, %v3244_v15  ;;  %v2171_v7 = vld [vmem:[#allocation2 + $0x15a] sm:$0xff] }
 0x1af   : > { %v1945_v39 = vadd.f32 %v1913_v22, %v1849_v30  ;;  %v1754_v24 = vadd.f32 %v1722_v29, %v1658_v52  ;;  %v1818_v40 = vmul.f32 %v2072_v48, %v3238_v19  ;;  %v1627_v3 = vmul.f32 %v2167_v11, %v3232_v21  ;;  %v1980_v29 = vld [vmem:[#allocation2 + $0x168] sm:$0xff] }
 0x1b0   : > { %v2232_v27 = vadd.f32 %v2200_v44, %v2136_v10  ;;  %v1563_v2 = vadd.f32 %v1531_v8, %v1467_v63  ;;  %v1436_v6 = vmul.f32 %v1976_v59, %v3228_v17  ;;  %v2201_v55 = vmul.f32 %v2169_v53, %v3251_v20  ;;  %v2076_v10 = vld [vmem:[#allocation2 + $0x169] sm:$0xff] }
 0x1b1   : > { %v2041_v31 = vadd.f32 %v2009_v34, %v1945_v39  ;;  %v1850_v41 = vadd.f32 %v1818_v40, %v1754_v24  ;;  %v1914_v61 = vmul.f32 %v2168_v4, %v3240_v56  ;;  %v1723_v16 = vmul.f32 %v1977_v33, %v3234_v62  ;;  %v2172_v40 = vld [vmem:[#allocation2 + $0x16a] sm:$0xff] }
 0x1b2   : > { %2473 = vst [vmem:[%s3325_s6 + $0x1b0] sm:$0xff] %v2232_v27  ;;  %v1659_v32 = vadd.f32 %v1627_v3, %v1563_v2  ;;  %v1468_v5 = vadd.f32 %v4082_v1, %v1436_v6  ;;  %v1532_v37 = vmul.f32 %v2072_v48, %v3230_v25  ;;  %v2010_v11 = vmul.f32 %v1978_v42, %v3242_v26 }
 0x1b3   : > { %v2137_v12 = vadd.f32 %v2105_v18, %v2041_v31  ;;  %v1946_v43 = vadd.f32 %v1914_v61, %v1850_v41  ;;  %v2106_v59 = vmul.f32 %v2074_v14, %v3244_v15  ;;  %v1819_v38 = vmul.f32 %v2073_v57, %v3238_v19 }
 0x1b4   : > { %v1755_v58 = vadd.f32 %v1723_v16, %v1659_v32  ;;  %v1564_v47 = vadd.f32 %v1532_v37, %v1468_v5  ;;  %v1628_v9 = vmul.f32 %v2168_v4, %v3232_v21  ;;  %v2202_v23 = vmul.f32 %v2170_v36, %v3251_v20  ;;  %v1981_v32 = vld [vmem:[#allocation2 + $0x170] sm:$0xff] }
 0x1b5   : > { %v2233_v46 = vadd.f32 %v2201_v55, %v2137_v12  ;;  %v2042_v13 = vadd.f32 %v2010_v11, %v1946_v43  ;;  %v1437_v48 = vmul.f32 %v1977_v33, %v3228_v17  ;;  %v1915_v51 = vmul.f32 %v2169_v53, %v3240_v56  ;;  %v2077_v11 = vld [vmem:[#allocation2 + $0x171] sm:$0xff] }
 0x1b6   : > { %v1851_v49 = vadd.f32 %v1819_v38, %v1755_v58  ;;  %v1660_v60 = vadd.f32 %v1628_v9, %v1564_v47  ;;  %v1724_v0 = vmul.f32 %v1978_v42, %v3234_v62  ;;  %v2011_v54 = vmul.f32 %v1979_v28, %v3242_v26 }
 0x1b7   : > { %2474 = vst [vmem:[%s3325_s6 + $0x1b8] sm:$0xff] %v2233_v46  ;;  %v2138_v35 = vadd.f32 %v2106_v59, %v2042_v13  ;;  %v1469_v4 = vadd.f32 %v4082_v1, %v1437_v48  ;;  %v1533_v44 = vmul.f32 %v2073_v57, %v3230_v25  ;;  %v2107_v30 = vmul.f32 %v2075_v50, %v3244_v15  ;;  %v2173_v13 = vld [vmem:[#allocation2 + $0x172] sm:$0xff] }
 0x1b8   : > { %v1947_v45 = vadd.f32 %v1915_v51, %v1851_v49  ;;  %v1756_v33 = vadd.f32 %v1724_v0, %v1660_v60  ;;  %v1820_v22 = vmul.f32 %v2074_v14, %v3238_v19  ;;  %v1629_v63 = vmul.f32 %v2169_v53, %v3232_v21  ;;  %v1982_v0 = vld [vmem:[#allocation2 + $0x180] sm:$0xff] }
 0x1b9   : > { %v2234_v52 = vadd.f32 %v2202_v23, %v2138_v35  ;;  %v1565_v34 = vadd.f32 %v1533_v44, %v1469_v4  ;;  %v1438_v8 = vmul.f32 %v1978_v42, %v3228_v17  ;;  %v2203_v18 = vmul.f32 %v2171_v7, %v3251_v20  ;;  %v2078_v35 = vld [vmem:[#allocation2 + $0x181] sm:$0xff] }
 0x1ba   : > { %v2043_v39 = vadd.f32 %v2011_v54, %v1947_v45  ;;  %v1852_v24 = vadd.f32 %v1820_v22, %v1756_v33  ;;  %v1916_v57 = vmul.f32 %v2170_v36, %v3240_v56  ;;  %v1725_v2 = vmul.f32 %v1979_v28, %v3234_v62  ;;  %v2174_v22 = vld [vmem:[#allocation2 + $0x182] sm:$0xff] }
 0x1bb   : > { %2475 = vst [vmem:[%s3325_s6 + $0x1c0] sm:$0xff] %v2234_v52  ;;  %v1661_v27 = vadd.f32 %v1629_v63, %v1565_v34  ;;  %v1470_v3 = vadd.f32 %v4082_v1, %v1438_v8  ;;  %v1534_v6 = vmul.f32 %v2074_v14, %v3230_v25  ;;  %v2012_v53 = vmul.f32 %v1980_v29, %v3242_v26 }
 0x1bc   : > { %v2139_v31 = vadd.f32 %v2107_v30, %v2043_v39  ;;  %v1948_v55 = vadd.f32 %v1916_v57, %v1852_v24  ;;  %v2108_v42 = vmul.f32 %v2076_v10, %v3244_v15  ;;  %v1821_v61 = vmul.f32 %v2075_v50, %v3238_v19 }
 0x1bd   : > { %v1757_v41 = vadd.f32 %v1725_v2, %v1661_v27  ;;  %v1566_v16 = vadd.f32 %v1534_v6, %v1470_v3  ;;  %v1630_v5 = vmul.f32 %v2170_v36, %v3232_v21  ;;  %v2204_v43 = vmul.f32 %v2172_v40, %v3251_v20  ;;  %v1983_v27 = vld [vmem:[#allocation2 + $0x188] sm:$0xff] }
 0x1be   : > { %v2235_v37 = vadd.f32 %v2203_v18, %v2139_v31  ;;  %v2044_v12 = vadd.f32 %v2012_v53, %v1948_v55  ;;  %v1439_v14 = vmul.f32 %v1979_v28, %v3228_v17  ;;  %v1917_v58 = vmul.f32 %v2171_v7, %v3240_v56  ;;  %v2079_v53 = vld [vmem:[#allocation2 + $0x189] sm:$0xff] }
 0x1bf   : > { %v1853_v59 = vadd.f32 %v1821_v61, %v1757_v41  ;;  %v1662_v38 = vadd.f32 %v1630_v5, %v1566_v16  ;;  %v1726_v47 = vmul.f32 %v1980_v29, %v3234_v62  ;;  %v2013_v46 = vmul.f32 %v1981_v32, %v3242_v26 }
 0x1c0   : > { %2476 = vst [vmem:[%s3325_s6 + $0x1c8] sm:$0xff] %v2235_v37  ;;  %v2140_v9 = vadd.f32 %v2108_v42, %v2044_v12  ;;  %v1471_v36 = vadd.f32 %v4082_v1, %v1439_v14  ;;  %v1535_v23 = vmul.f32 %v2075_v50, %v3230_v25  ;;  %v2109_v49 = vmul.f32 %v2077_v11, %v3244_v15  ;;  %v1984_v12 = vld [vmem:[#allocation2 + $0x198] sm:$0xff] }
 0x1c1   : > { %v1949_v48 = vadd.f32 %v1917_v58, %v1853_v59  ;;  %v1758_v28 = vadd.f32 %v1726_v47, %v1662_v38  ;;  %v1822_v51 = vmul.f32 %v2076_v10, %v3238_v19  ;;  %v1631_v4 = vmul.f32 %v2171_v7, %v3232_v21  ;;  %v2175_v38 = vld [vmem:[#allocation2 + $0x18a] sm:$0xff] }
 0x1c2   : > { %v2236_v60 = vadd.f32 %v2204_v43, %v2140_v9  ;;  %v1567_v54 = vadd.f32 %v1535_v23, %v1471_v36  ;;  %v1440_v44 = vmul.f32 %v1980_v29, %v3228_v17  ;;  %v2205_v30 = vmul.f32 %v2173_v13, %v3251_v20 }
 0x1c3   : > { %v2045_v45 = vadd.f32 %v2013_v46, %v1949_v48  ;;  %v1854_v33 = vadd.f32 %v1822_v51, %v1758_v28  ;;  %v1918_v50 = vmul.f32 %v2172_v40, %v3240_v56  ;;  %v1727_v34 = vmul.f32 %v1981_v32, %v3234_v62 }
 0x1c4   : > { %2477 = vst [vmem:[%s3325_s6 + $0x1d0] sm:$0xff] %v2236_v60  ;;  %v1663_v52 = vadd.f32 %v1631_v4, %v1567_v54  ;;  %v1472_v63 = vadd.f32 %v4082_v1, %v1440_v44  ;;  %v1536_v8 = vmul.f32 %v2076_v10, %v3230_v25  ;;  %v2014_v7 = vmul.f32 %v1982_v0, %v3242_v26  ;;  %v2176_v60 = vld [vmem:[#allocation2 + $0x19a] sm:$0xff] }
 0x1c5   : > { %v2141_v39 = vadd.f32 %v2109_v49, %v2045_v45  ;;  %v1950_v18 = vadd.f32 %v1918_v50, %v1854_v33  ;;  %v2110_v29 = vmul.f32 %v2078_v35, %v3244_v15  ;;  %v1823_v57 = vmul.f32 %v2077_v11, %v3238_v19  ;;  %v2081_v54 = vld [vmem:[#allocation2 + $0x1a1] sm:$0xff] }
 0x1c6   : > { %v1759_v24 = vadd.f32 %v1727_v34, %v1663_v52  ;;  %v1568_v2 = vadd.f32 %v1536_v8, %v1472_v63  ;;  %v1632_v3 = vmul.f32 %v2172_v40, %v3232_v21  ;;  %v2206_v55 = vmul.f32 %v2174_v22, %v3251_v20  ;;  %v2568_v45 = vld [vmem:[#allocation2 + $0x8] sm:$0xff] }
 0x1c7   : > { %v2237_v6 = vadd.f32 %v2205_v30, %v2141_v39  ;;  %v2046_v31 = vadd.f32 %v2014_v7, %v1950_v18  ;;  %v1441_v10 = vmul.f32 %v1981_v32, %v3228_v17  ;;  %v1919_v41 = vmul.f32 %v2173_v13, %v3240_v56  ;;  %v2177_v34 = vld [vmem:[#allocation2 + $0x1a2] sm:$0xff] }
 0x1c8   : > { %v1855_v42 = vadd.f32 %v1823_v57, %v1759_v24  ;;  %v1664_v61 = vadd.f32 %v1632_v3, %v1568_v2  ;;  %v1728_v16 = vmul.f32 %v1982_v0, %v3234_v62  ;;  %v2015_v37 = vmul.f32 %v1983_v27, %v3242_v26 }
 0x1c9   : > { %2478 = vst [vmem:[%s3325_s6 + $0x1d8] sm:$0xff] %v2237_v6  ;;  %v2142_v5 = vadd.f32 %v2110_v29, %v2046_v31  ;;  %v1473_v40 = vadd.f32 %v4082_v1, %v1441_v10  ;;  %v1537_v43 = vmul.f32 %v2077_v11, %v3230_v25  ;;  %v2111_v59 = vmul.f32 %v2079_v53, %v3244_v15  ;;  %v2080_v25 = vld [vmem:[#allocation2 + $0x199] sm:$0xff] }
 0x1ca   : > { %v1951_v14 = vadd.f32 %v1919_v41, %v1855_v42  ;;  %v1760_v17 = vadd.f32 %v1728_v16, %v1664_v61  ;;  %v1824_v32 = vmul.f32 %v2078_v35, %v3238_v19  ;;  %v1633_v9 = vmul.f32 %v2173_v13, %v3232_v21 }
 0x1cb   : > { %v2238_v58 = vadd.f32 %v2206_v55, %v2142_v5  ;;  %v1569_v47 = vadd.f32 %v1537_v43, %v1473_v40  ;;  %v1729_v46 = vmul.f32 %v1983_v27, %v3234_v62  ;;  %v1920_v48 = vmul.f32 %v2174_v22, %v3240_v56 }
 0x1cc   : > { %v2047_v36 = vadd.f32 %v2015_v37, %v1951_v14  ;;  %v1856_v23 = vadd.f32 %v1824_v32, %v1760_v17  ;;  %v2016_v1 = vmul.f32 %v1984_v12, %v3242_v26  ;;  %v2207_v28 = vmul.f32 %v2175_v38, %v3251_v20 }
 0x1cd   : > { %2479 = vst [vmem:[%s3325_s6 + $0x1e0] sm:$0xff] %v2238_v58  ;;  %v1665_v11 = vadd.f32 %v1633_v9, %v1569_v47  ;;  %v1825_v21 = vmul.f32 %v2079_v53, %v3238_v19  ;;  %v2112_v35 = vmul.f32 %v2080_v25, %v3244_v15  ;;  %v1921_v44 = vmul.f32 %v2175_v38, %v3240_v56 }
 0x1ce   : > { %v2143_v49 = vadd.f32 %v2111_v59, %v2047_v36  ;;  %v1952_v51 = vadd.f32 %v1920_v48, %v1856_v23  ;;  %v2017_v30 = vmul.f32 %v2568_v45, %v3242_v26  ;;  %v2208_v19 = vmul.f32 %v2176_v60, %v3251_v20 }
 0x1cf   : > { %v1761_v0 = vadd.f32 %v1729_v46, %v1665_v11  ;;  %v2113_v22 = vmul.f32 %v2081_v54, %v3244_v15  ;;  %v2209_v8 = vmul.f32 %v2177_v34, %v3251_v20 }
 0x1d0   : > { %v2239_v62 = vadd.f32 %v2207_v28, %v2143_v49  ;;  %v2048_v13 = vadd.f32 %v2016_v1, %v1952_v51 }
 0x1d1   : > { %v1857_v4 = vadd.f32 %v1825_v21, %v1761_v0 }
 0x1d2   : > { %2480 = vst [vmem:[%s3325_s6 + $0x1e8] sm:$0xff] %v2239_v62  ;;  %v2144_v33 = vadd.f32 %v2112_v35, %v2048_v13 }
 0x1d3   : > { %v1953_v50 = vadd.f32 %v1921_v44, %v1857_v4 }
 0x1d4   : > { %v2240_v52 = vadd.f32 %v2208_v19, %v2144_v33 }
 0x1d5   : > { %v2049_v63 = vadd.f32 %v2017_v30, %v1953_v50 }
 0x1d6   : > { %2481 = vst [vmem:[%s3325_s6 + $0x1f0] sm:$0xff] %v2240_v52 }
 0x1d7   : > { %v2145_v56 = vadd.f32 %v2113_v22, %v2049_v63 }
 0x1d9   : > { %v2241_v15 = vadd.f32 %v2209_v8, %v2145_v56 }
 0x1db   : > { %2482 = vst [vmem:[%s3325_s6 + $0x1f8] sm:$0xff] %v2241_v15 }
 0x1dc   : > { %2642 = shalt.err (!%p2639_p5)
}
 0x1dd   : > { %s2643_s9 = scalar_lea.hbm %s4240_s7, 8192  ;;  %s2647_s21 = scalar_lea.hbm %s4295_s3, 16384 }
 0x1de   : > { %p2644_p10 = scmp.ne.s32.totalorder %s4240_s7, %s2643_s9  ;;  %p2648_p4 = scmp.lt.u32.totalorder %s4240_s7, %s4295_s3 }
 0x1df   : > { %p2649_p8 = scmp.lt.u32.totalorder %s2647_s21, %s2643_s9  ;;  %p2651_p2 = scmp.lt.u32.totalorder %s2643_s9, %s4240_s7 }
 0x1e0   : > { %p2645_p1 = pnand %p2644_p10, %p4522_p12 }
 0x1e1   : > { %p2650_p0 = por %p2649_p8, %p2648_p4 }
 0x1e2   : > { %p2646_p3 = pneg %p2645_p1 }
 0x1e3   : > { %p2652_p13 = por %p2651_p2, %p2650_p0 }
 0x1e5   : > { %p2653_p6 = pnand %p2652_p13, %p2646_p3 }
 0x1e7   : > { %2656 = shalt.err (!%p2653_p6)
}
 0x1e8   : > { %s2726_s6 = smov 128   ;;  %s2727_s29 = smov 256  }
 0x1e9   : > { %s2728_s10 = smov 8  }
 0x1ea   : > { %2493 = dma.vmem_to_hbm [thread:$0]  (%p4522_p12), %s4242_s4, 8192, %s4240_s7, %s2276_s22, %s2726_s6, %s2727_s29, %s2728_s10  }
 0x1eb PF: > { %s2306_s8 = sand.u32 1, %s2695_s12   ;;  %p4523_p7 = scmp.ne.s32.totalorder %s4388_s27, 0 }
 0x1ec   : > { %p4524_p9 = scmp.ge.s32.totalorder %s2715_s17, 2  ;;  %s2307_s15 = scalar_lea.sflag [#allocation5], %s2306_s8 }
 0x1ee   : > { %p2503_p11 = pnand %p4524_p9, %p4523_p7 }
 0x1f0   : > { %2690 = dma.done.wait (!%p2503_p11), %s2307_s15, 8192  }
 0x1f1   : > { %2692 = vsyncadd (!%p2503_p11), %s2307_s15, 4294959104  ;;  %s22_s17 = sadd.s32 1, %s2715_s17   ;;  %s4525_s12 = smov %s2699_s13 }
 0x1f2   : > { %p19_p5 = scmp.ge.s32.totalorder %s22_s17, 4   ;;  %s4526_s13 = smov %s2703_s14 }
 0x1f3   : > { %s4527_s14 = smov %s2805_s26  ;;  %s4528_s15 = smov %s2711_s16 }
 0x1f4   : > { %s4529_s16 = smov %s4531_s20  ;;  %21 = sbr.rel (!%p19_p5) target bundleno = 8 (0x8), region = 98 }
 0x1fb   :  { %2312 = vsyncpa [#allocation4], 1 }
 0x1fc   :  { %2314 = vsyncpa [#allocation4 + $0x1], 1 }
 0x1fd   :  { %2315 = vsyncpa [#allocation7], 1 }
 0x1fe   :  { %2317 = vsyncpa [#allocation7 + $0x1], 1 }
 0x1ff   :  { %2318 = vsyncpa [#allocation5], 1 }
 0x200   :  { %2320 = vsyncpa [#allocation5 + $0x1], 1 }

</bundles_post_ra>
